<compile_context>
chip_gen: v7x
topology: tpu7x:2x2x1
jax: 0.10.0
libtpu: 0.0.40
codegen_flags: <defaults>
</compile_context>

<pallas_src>
import math
import functools

import jax
import jax.numpy as jnp
from jax import lax
from jax.experimental import pallas as pl
from jax.experimental.pallas import tpu as pltpu

# ---- scaled-down config (real model: H=768, 6 layers, 12 heads, vocab ~119k) ----
B = 2             # batch
S = 8             # sequence length
H = 64            # hidden size (stand-in for TRANSFORMER_EMBED = 768)
NH = 4            # attention heads
HD = H // NH      # head dim
FFN = 128         # feed-forward hidden
NLAYERS = 2
VOCAB = 128
D_OUT = 32        # projection output dim (stand-in for EMBED_DIM = 512)
D_PAD = 128       # lane-dense padded output width (sliced back to D_OUT in the wrapper)
LN_EPS_BERT = 1e-12    # DistilBERT LayerNorm eps
LN_EPS_PROJ = 1e-5     # nn.LayerNorm default eps
NEG_INF = float(jnp.finfo(jnp.float32).min)   # masked_fill value used by DistilBERT
SCALE = 1.0 / math.sqrt(HD)


# ---------------------------------------------------------------------------
# numerics helpers (traced inside the kernel; all elementwise math stays f32)
# ---------------------------------------------------------------------------
def _gelu(x):
    # exact (erf-based) GELU, matching torch.nn.functional.gelu default
    return 0.5 * x * (1.0 + lax.erf(x * 0.7071067811865476))


def _ln(x, g, b, eps):
    mu = jnp.mean(x, axis=-1, keepdims=True)
    var = jnp.mean((x - mu) ** 2, axis=-1, keepdims=True)
    return (x - mu) * lax.rsqrt(var + eps) * g + b


def _softmax(x):
    m = jnp.max(x, axis=-1, keepdims=True)
    e = jnp.exp(x - m)
    # reciprocal goes to the EUP slot (co-issues with VPU work)
    return e * pl.reciprocal(jnp.sum(e, axis=-1, keepdims=True), approx=True)


def _bf16(x):
    return x.astype(jnp.bfloat16)


# ---------------------------------------------------------------------------
# fused Pallas kernel: whole forward in one invocation (no grid, no HBM bounces)
# ---------------------------------------------------------------------------
def fused_text_encoder_kernel(
        ids_ref, mask_ref,                                     # SMEM ids, VMEM mask
        we_ref, pe_ref, eg_ref, eb_ref,                        # embeddings + emb LN
        wq_ref, bq_ref, wk_ref, bk_ref, wv_ref, bv_ref, wo_ref, bo_ref,
        g1_ref, t1_ref, w1_ref, c1_ref, w2_ref, c2_ref, g2_ref, t2_ref,
        pw1_ref, pw2_ref, pg_ref, pb_ref,                      # projection head
        o_ref):
    # --- embedding gather (token ids in SMEM, table resident in VMEM) + pos + LN ---
    tok_rows = [we_ref[pl.ds(ids_ref[t], 1), :] for t in range(B * S)]
    emb = jnp.concatenate(tok_rows, axis=0)                    # (B*S, H) f32
    pos = jnp.concatenate([pe_ref[...]] * B, axis=0)           # (B*S, H)
    x = _ln(emb + pos, eg_ref[...], eb_ref[...], LN_EPS_BERT)

    mask = mask_ref[...]                                       # (B, S) : 1 keep / 0 pad

    # --- NLAYERS transformer blocks (static unroll); batch folded into matmul M dim ---
    for l in range(NLAYERS):
        wq, wk, wv, wo = wq_ref[l], wk_ref[l], wv_ref[l], wo_ref[l]   # (H,H) bf16, (in,out)
        bq, bk, bv, bo = bq_ref[l], bk_ref[l], bv_ref[l], bo_ref[l]   # (1,H) f32

        xb = _bf16(x)                                          # bf16 MXU operands, f32 acc
        q = jnp.dot(xb, wq, preferred_element_type=jnp.float32) + bq
        k = jnp.dot(xb, wk, preferred_element_type=jnp.float32) + bk
        v = jnp.dot(xb, wv, preferred_element_type=jnp.float32) + bv

        # per-(batch, head) attention; each head's context is folded directly into the
        # output projection (acc += ctx_h @ Wo[h_rows]) -> no head concatenation.
        attn_rows = []
        for bi in range(B):
            rs = slice(bi * S, (bi + 1) * S)
            mask_b = mask[bi:bi + 1, :]                        # (1, S) key mask
            acc = jnp.zeros((S, H), jnp.float32)
            for h in range(NH):
                cs = slice(h * HD, (h + 1) * HD)
                qh, kh, vh = _bf16(q[rs, cs]), _bf16(k[rs, cs]), _bf16(v[rs, cs])
                s = lax.dot_general(qh, kh, (((1,), (1,)), ((), ())),   # q @ k^T (no .T)
                                    preferred_element_type=jnp.float32) * SCALE
                s = jnp.where(mask_b == 0.0, NEG_INF, s)       # masked_fill semantics
                p = _softmax(s)
                ctx = jnp.dot(_bf16(p), vh, preferred_element_type=jnp.float32)
                acc = acc + jnp.dot(_bf16(ctx), wo[cs, :],
                                    preferred_element_type=jnp.float32)
            attn_rows.append(acc)
        attn = jnp.concatenate(attn_rows, axis=0) + bo         # (B*S, H)

        sa = _ln(x + attn, g1_ref[l], t1_ref[l], LN_EPS_BERT)  # post-attention LN

        hid = _gelu(jnp.dot(_bf16(sa), w1_ref[l],
                            preferred_element_type=jnp.float32) + c1_ref[l])
        ff = jnp.dot(_bf16(hid), w2_ref[l],
                     preferred_element_type=jnp.float32) + c2_ref[l]
        x = _ln(sa + ff, g2_ref[l], t2_ref[l], LN_EPS_BERT)    # output LN

    # --- CLS token -> Projection head (dropout = identity in eval) -> L2 normalize ---
    cls = jnp.concatenate([x[bi * S:bi * S + 1, :] for bi in range(B)], axis=0)  # (B, H)
    e1 = jnp.dot(_bf16(cls), pw1_ref[...], preferred_element_type=jnp.float32)
    e2 = jnp.dot(_bf16(_gelu(e1)), pw2_ref[...], preferred_element_type=jnp.float32)
    y = _ln(e1 + e2, pg_ref[...], pb_ref[...], LN_EPS_PROJ)
    # rsqrt with tiny eps: EUP op + NaN-safe for a pathological all-zero projection
    y = y * lax.rsqrt(jnp.sum(y * y, axis=-1, keepdims=True) + 1e-12)

    # lane-dense store: pad D_OUT=32 -> 128 lanes (unmasked vst); wrapper slices back.
    o_ref[...] = jnp.concatenate(
        [y, jnp.zeros((B, D_PAD - D_OUT), jnp.float32)], axis=-1)


# ---------------------------------------------------------------------------
# wrapper (single pallas_call; no grid -> no per-step overhead on 1-TC chips)
# ---------------------------------------------------------------------------
_VMEM = functools.partial(pl.BlockSpec, memory_space=pltpu.MemorySpace.VMEM)
_SMEM = functools.partial(pl.BlockSpec, memory_space=pltpu.MemorySpace.SMEM)


@jax.jit
def text_encoder_bert(prepared, input_ids, attention_mask):
    ids = input_ids.reshape(B * S).astype(jnp.int32)
    mask = attention_mask.reshape(B, S).astype(jnp.float32)
    operands = (ids, mask) + tuple(prepared)
    out = pl.pallas_call(
        fused_text_encoder_kernel,
        out_shape=jax.ShapeDtypeStruct((B, D_PAD), jnp.float32),
        in_specs=[_SMEM()] + [_VMEM()] * (len(operands) - 1),
        out_specs=_VMEM(),
        # TODO(synk): on v7x, split the batch across the 2 TensorCores with a parallel
        # grid axis; on single-TC v5e/v6e the fused grid-less form above is optimal.
    )(*operands)
    return out[:, :D_OUT]


# ---------------------------------------------------------------------------
# deterministic parameter init (synthetic stand-in for the pretrained checkpoint),
# stored in the PyTorch (out_features, in_features) convention.
# ---------------------------------------------------------------------------
def init_params(key):
    keys = iter(jax.random.split(key, 64))

    def w(shape):
        return 0.02 * jax.random.normal(next(keys), shape, jnp.float32)

    ones = lambda d: jnp.ones((1, d), jnp.float32)
    zeros = lambda d: jnp.zeros((1, d), jnp.float32)

    params = {
        "word_emb": w((VOCAB, H)),
        "pos_emb": w((S, H)),
        "emb_g": ones(H), "emb_b": zeros(H),
        "layers": [],
        "proj_w1": w((D_OUT, H)),        # Projection.linear1 (bias=False)
        "proj_w2": w((D_OUT, D_OUT)),    # Projection.linear2 (bias=False)
        "proj_g": ones(D_OUT), "proj_b": zeros(D_OUT),
    }
    for _ in range(NLAYERS):
        params["layers"].append((
            w((H, H)), zeros(H),         # 0,1  q_lin
            w((H, H)), zeros(H),         # 2,3  k_lin
            w((H, H)), zeros(H),         # 4,5  v_lin
            w((H, H)), zeros(H),         # 6,7  out_lin
            ones(H), zeros(H),           # 8,9  sa LayerNorm
            w((FFN, H)), zeros(FFN),     # 10,11 ffn lin1
            w((H, FFN)), zeros(H),       # 12,13 ffn lin2
            ones(H), zeros(H),           # 14,15 output LayerNorm
        ))
    return params


def prepare_params(params):
    """Pre-transpose matmul weights to (in, out), stack per-layer tensors on a leading
    NLAYERS axis, and cast MXU operands to bf16 (biases / LN params stay f32)."""
    bf = lambda a: a.astype(jnp.bfloat16)
    tr = lambda a: jnp.transpose(a, (0, 2, 1))
    stack = lambda i: jnp.stack([lp[i] for lp in params["layers"]])
    return (
        params["word_emb"], params["pos_emb"], params["emb_g"], params["emb_b"],
        bf(tr(stack(0))), stack(1),      # wq (L,H,H)=(in,out), bq (L,1,H)
        bf(tr(stack(2))), stack(3),      # wk, bk
        bf(tr(stack(4))), stack(5),      # wv, bv
        bf(tr(stack(6))), stack(7),      # wo, bo
        stack(8), stack(9),              # sa LN gamma, beta
        bf(tr(stack(10))), stack(11),    # w1 (L,H,FFN), c1 (L,1,FFN)
        bf(tr(stack(12))), stack(13),    # w2 (L,FFN,H), c2 (L,1,H)
        stack(14), stack(15),            # output LN gamma, beta
        bf(params["proj_w1"].T),         # (H, D_OUT)
        bf(params["proj_w2"].T),         # (D_OUT, D_OUT)
        params["proj_g"], params["proj_b"],
    )


if __name__ == "__main__":
    key = jax.random.PRNGKey(0)
    pkey, ikey = jax.random.split(key)
    params = init_params(pkey)
    prepared = prepare_params(params)

    input_ids = jax.random.randint(ikey, (B, S), 0, VOCAB, dtype=jnp.int32)
    attention_mask = jnp.ones((B, S), dtype=jnp.int32)
    attention_mask = attention_mask.at[1, S - 2:].set(0)   # pad tail of 2nd example

    out = text_encoder_bert(prepared, input_ids, attention_mask)
    out = jax.block_until_ready(out)

    assert out.shape == (B, D_OUT) and out.dtype == jnp.float32
    # unit-norm check of the L2-normalized projection
    assert bool(jnp.allclose(jnp.sum(out * out, axis=-1), 1.0, atol=1e-4))
    print("KERNEL_OK")
</pallas_src>

<mosaic_0001>
module attributes {stable_mosaic.version = 11 : i64} {
  func.func @fused_text_encoder_kernel(%arg0: memref<16xi32, #tpu.memory_space<smem>>, %arg1: memref<2x8xf32, #tpu.memory_space<vmem>>, %arg2: memref<128x64xf32, #tpu.memory_space<vmem>>, %arg3: memref<8x64xf32, #tpu.memory_space<vmem>>, %arg4: memref<1x64xf32, #tpu.memory_space<vmem>>, %arg5: memref<1x64xf32, #tpu.memory_space<vmem>>, %arg6: memref<2x64x64xbf16, #tpu.memory_space<vmem>>, %arg7: memref<2x1x64xf32, #tpu.memory_space<vmem>>, %arg8: memref<2x64x64xbf16, #tpu.memory_space<vmem>>, %arg9: memref<2x1x64xf32, #tpu.memory_space<vmem>>, %arg10: memref<2x64x64xbf16, #tpu.memory_space<vmem>>, %arg11: memref<2x1x64xf32, #tpu.memory_space<vmem>>, %arg12: memref<2x64x64xbf16, #tpu.memory_space<vmem>>, %arg13: memref<2x1x64xf32, #tpu.memory_space<vmem>>, %arg14: memref<2x1x64xf32, #tpu.memory_space<vmem>>, %arg15: memref<2x1x64xf32, #tpu.memory_space<vmem>>, %arg16: memref<2x64x128xbf16, #tpu.memory_space<vmem>>, %arg17: memref<2x1x128xf32, #tpu.memory_space<vmem>>, %arg18: memref<2x128x64xbf16, #tpu.memory_space<vmem>>, %arg19: memref<2x1x64xf32, #tpu.memory_space<vmem>>, %arg20: memref<2x1x64xf32, #tpu.memory_space<vmem>>, %arg21: memref<2x1x64xf32, #tpu.memory_space<vmem>>, %arg22: memref<64x32xbf16, #tpu.memory_space<vmem>>, %arg23: memref<32x32xbf16, #tpu.memory_space<vmem>>, %arg24: memref<1x32xf32, #tpu.memory_space<vmem>>, %arg25: memref<1x32xf32, #tpu.memory_space<vmem>>, %arg26: memref<2x128xf32, #tpu.memory_space<vmem>>) attributes {dimension_semantics = [], scalar_prefetch = 0 : i64, scratch_operands = 0 : i64, tpu.core_type = #tpu.core_type<tc>} {
    %c0 = arith.constant 0 : index
    %0 = memref.load %arg0[%c0] : memref<16xi32, #tpu.memory_space<smem>>
    %1 = arith.index_cast %0 : i32 to index
    %c0_0 = arith.constant 0 : index
    %2 = vector.load %arg2[%1, %c0_0] : memref<128x64xf32, #tpu.memory_space<vmem>>, vector<1x64xf32>
    %c1 = arith.constant 1 : index
    %3 = memref.load %arg0[%c1] : memref<16xi32, #tpu.memory_space<smem>>
    %4 = arith.index_cast %3 : i32 to index
    %c0_1 = arith.constant 0 : index
    %5 = vector.load %arg2[%4, %c0_1] : memref<128x64xf32, #tpu.memory_space<vmem>>, vector<1x64xf32>
    %c2 = arith.constant 2 : index
    %6 = memref.load %arg0[%c2] : memref<16xi32, #tpu.memory_space<smem>>
    %7 = arith.index_cast %6 : i32 to index
    %c0_2 = arith.constant 0 : index
    %8 = vector.load %arg2[%7, %c0_2] : memref<128x64xf32, #tpu.memory_space<vmem>>, vector<1x64xf32>
    %c3 = arith.constant 3 : index
    %9 = memref.load %arg0[%c3] : memref<16xi32, #tpu.memory_space<smem>>
    %10 = arith.index_cast %9 : i32 to index
    %c0_3 = arith.constant 0 : index
    %11 = vector.load %arg2[%10, %c0_3] : memref<128x64xf32, #tpu.memory_space<vmem>>, vector<1x64xf32>
    %c4 = arith.constant 4 : index
    %12 = memref.load %arg0[%c4] : memref<16xi32, #tpu.memory_space<smem>>
    %13 = arith.index_cast %12 : i32 to index
    %c0_4 = arith.constant 0 : index
    %14 = vector.load %arg2[%13, %c0_4] : memref<128x64xf32, #tpu.memory_space<vmem>>, vector<1x64xf32>
    %c5 = arith.constant 5 : index
    %15 = memref.load %arg0[%c5] : memref<16xi32, #tpu.memory_space<smem>>
    %16 = arith.index_cast %15 : i32 to index
    %c0_5 = arith.constant 0 : index
    %17 = vector.load %arg2[%16, %c0_5] : memref<128x64xf32, #tpu.memory_space<vmem>>, vector<1x64xf32>
    %c6 = arith.constant 6 : index
    %18 = memref.load %arg0[%c6] : memref<16xi32, #tpu.memory_space<smem>>
    %19 = arith.index_cast %18 : i32 to index
    %c0_6 = arith.constant 0 : index
    %20 = vector.load %arg2[%19, %c0_6] : memref<128x64xf32, #tpu.memory_space<vmem>>, vector<1x64xf32>
    %c7 = arith.constant 7 : index
    %21 = memref.load %arg0[%c7] : memref<16xi32, #tpu.memory_space<smem>>
    %22 = arith.index_cast %21 : i32 to index
    %c0_7 = arith.constant 0 : index
    %23 = vector.load %arg2[%22, %c0_7] : memref<128x64xf32, #tpu.memory_space<vmem>>, vector<1x64xf32>
    %c8 = arith.constant 8 : index
    %24 = memref.load %arg0[%c8] : memref<16xi32, #tpu.memory_space<smem>>
    %25 = arith.index_cast %24 : i32 to index
    %c0_8 = arith.constant 0 : index
    %26 = vector.load %arg2[%25, %c0_8] : memref<128x64xf32, #tpu.memory_space<vmem>>, vector<1x64xf32>
    %c9 = arith.constant 9 : index
    %27 = memref.load %arg0[%c9] : memref<16xi32, #tpu.memory_space<smem>>
    %28 = arith.index_cast %27 : i32 to index
    %c0_9 = arith.constant 0 : index
    %29 = vector.load %arg2[%28, %c0_9] : memref<128x64xf32, #tpu.memory_space<vmem>>, vector<1x64xf32>
    %c10 = arith.constant 10 : index
    %30 = memref.load %arg0[%c10] : memref<16xi32, #tpu.memory_space<smem>>
    %31 = arith.index_cast %30 : i32 to index
    %c0_10 = arith.constant 0 : index
    %32 = vector.load %arg2[%31, %c0_10] : memref<128x64xf32, #tpu.memory_space<vmem>>, vector<1x64xf32>
    %c11 = arith.constant 11 : index
    %33 = memref.load %arg0[%c11] : memref<16xi32, #tpu.memory_space<smem>>
    %34 = arith.index_cast %33 : i32 to index
    %c0_11 = arith.constant 0 : index
    %35 = vector.load %arg2[%34, %c0_11] : memref<128x64xf32, #tpu.memory_space<vmem>>, vector<1x64xf32>
    %c12 = arith.constant 12 : index
    %36 = memref.load %arg0[%c12] : memref<16xi32, #tpu.memory_space<smem>>
    %37 = arith.index_cast %36 : i32 to index
    %c0_12 = arith.constant 0 : index
    %38 = vector.load %arg2[%37, %c0_12] : memref<128x64xf32, #tpu.memory_space<vmem>>, vector<1x64xf32>
    %c13 = arith.constant 13 : index
    %39 = memref.load %arg0[%c13] : memref<16xi32, #tpu.memory_space<smem>>
    %40 = arith.index_cast %39 : i32 to index
    %c0_13 = arith.constant 0 : index
    %41 = vector.load %arg2[%40, %c0_13] : memref<128x64xf32, #tpu.memory_space<vmem>>, vector<1x64xf32>
    %c14 = arith.constant 14 : index
    %42 = memref.load %arg0[%c14] : memref<16xi32, #tpu.memory_space<smem>>
    %43 = arith.index_cast %42 : i32 to index
    %c0_14 = arith.constant 0 : index
    %44 = vector.load %arg2[%43, %c0_14] : memref<128x64xf32, #tpu.memory_space<vmem>>, vector<1x64xf32>
    %c15 = arith.constant 15 : index
    %45 = memref.load %arg0[%c15] : memref<16xi32, #tpu.memory_space<smem>>
    %46 = arith.index_cast %45 : i32 to index
    %c0_15 = arith.constant 0 : index
    %47 = vector.load %arg2[%46, %c0_15] : memref<128x64xf32, #tpu.memory_space<vmem>>, vector<1x64xf32>
    %48 = tpu.concatenate %2, %5, %8, %11, %14, %17, %20, %23, %26, %29, %32, %35, %38, %41, %44, %47 in 0 : vector<1x64xf32>, vector<1x64xf32>, vector<1x64xf32>, vector<1x64xf32>, vector<1x64xf32>, vector<1x64xf32>, vector<1x64xf32>, vector<1x64xf32>, vector<1x64xf32>, vector<1x64xf32>, vector<1x64xf32>, vector<1x64xf32>, vector<1x64xf32>, vector<1x64xf32>, vector<1x64xf32>, vector<1x64xf32> -> vector<16x64xf32>
    %c0_16 = arith.constant 0 : index
    %c0_17 = arith.constant 0 : index
    %49 = vector.load %arg3[%c0_16, %c0_17] : memref<8x64xf32, #tpu.memory_space<vmem>>, vector<8x64xf32>
    %50 = tpu.concatenate %49, %49 in 0 : vector<8x64xf32>, vector<8x64xf32> -> vector<16x64xf32>
    %51 = arith.addf %48, %50 : vector<16x64xf32>
    %c0_18 = arith.constant 0 : index
    %c0_19 = arith.constant 0 : index
    %52 = vector.load %arg4[%c0_18, %c0_19] : memref<1x64xf32, #tpu.memory_space<vmem>>, vector<1x64xf32>
    %c0_20 = arith.constant 0 : index
    %c0_21 = arith.constant 0 : index
    %53 = vector.load %arg5[%c0_20, %c0_21] : memref<1x64xf32, #tpu.memory_space<vmem>>, vector<1x64xf32>
    %cst = arith.constant dense<0.000000e+00> : vector<16xf32>
    %54 = vector.multi_reduction <add>, %51, %cst [1] : vector<16x64xf32> to vector<16xf32>
    %55 = vector.shape_cast %54 : vector<16xf32> to vector<16x1xf32>
    %cst_22 = arith.constant 6.400000e+01 : f32
    %56 = vector.broadcast %cst_22 : f32 to vector<16x1xf32>
    %57 = arith.divf %55, %56 : vector<16x1xf32>
    %58 = vector.broadcast %57 : vector<16x1xf32> to vector<16x64xf32>
    %59 = arith.subf %51, %58 : vector<16x64xf32>
    %60 = arith.mulf %59, %59 : vector<16x64xf32>
    %cst_23 = arith.constant dense<0.000000e+00> : vector<16xf32>
    %61 = vector.multi_reduction <add>, %60, %cst_23 [1] : vector<16x64xf32> to vector<16xf32>
    %62 = vector.shape_cast %61 : vector<16xf32> to vector<16x1xf32>
    %cst_24 = arith.constant 6.400000e+01 : f32
    %63 = vector.broadcast %cst_24 : f32 to vector<16x1xf32>
    %64 = arith.divf %62, %63 : vector<16x1xf32>
    %65 = vector.broadcast %57 : vector<16x1xf32> to vector<16x64xf32>
    %66 = arith.subf %51, %65 : vector<16x64xf32>
    %cst_25 = arith.constant 9.99999996E-13 : f32
    %67 = vector.broadcast %cst_25 : f32 to vector<16x1xf32>
    %68 = arith.addf %64, %67 : vector<16x1xf32>
    %69 = math.rsqrt %68 : vector<16x1xf32>
    %70 = vector.broadcast %69 : vector<16x1xf32> to vector<16x64xf32>
    %71 = arith.mulf %66, %70 : vector<16x64xf32>
    %72 = vector.broadcast %52 : vector<1x64xf32> to vector<16x64xf32>
    %73 = arith.mulf %71, %72 : vector<16x64xf32>
    %74 = vector.broadcast %53 : vector<1x64xf32> to vector<16x64xf32>
    %75 = arith.addf %73, %74 : vector<16x64xf32>
    %c0_26 = arith.constant 0 : index
    %c0_27 = arith.constant 0 : index
    %76 = vector.load %arg1[%c0_26, %c0_27] : memref<2x8xf32, #tpu.memory_space<vmem>>, vector<2x8xf32>
    %c0_28 = arith.constant 0 : index
    %c0_29 = arith.constant 0 : index
    %c0_30 = arith.constant 0 : index
    %77 = vector.load %arg6[%c0_28, %c0_29, %c0_30] : memref<2x64x64xbf16, #tpu.memory_space<vmem>>, vector<1x64x64xbf16>
    %78 = vector.shape_cast %77 : vector<1x64x64xbf16> to vector<64x64xbf16>
    %c0_31 = arith.constant 0 : index
    %c0_32 = arith.constant 0 : index
    %c0_33 = arith.constant 0 : index
    %79 = vector.load %arg8[%c0_31, %c0_32, %c0_33] : memref<2x64x64xbf16, #tpu.memory_space<vmem>>, vector<1x64x64xbf16>
    %80 = vector.shape_cast %79 : vector<1x64x64xbf16> to vector<64x64xbf16>
    %c0_34 = arith.constant 0 : index
    %c0_35 = arith.constant 0 : index
    %c0_36 = arith.constant 0 : index
    %81 = vector.load %arg10[%c0_34, %c0_35, %c0_36] : memref<2x64x64xbf16, #tpu.memory_space<vmem>>, vector<1x64x64xbf16>
    %82 = vector.shape_cast %81 : vector<1x64x64xbf16> to vector<64x64xbf16>
    %c0_37 = arith.constant 0 : index
    %c0_38 = arith.constant 0 : index
    %c0_39 = arith.constant 0 : index
    %83 = vector.load %arg12[%c0_37, %c0_38, %c0_39] : memref<2x64x64xbf16, #tpu.memory_space<vmem>>, vector<1x64x64xbf16>
    %84 = vector.shape_cast %83 : vector<1x64x64xbf16> to vector<64x64xbf16>
    %c0_40 = arith.constant 0 : index
    %c0_41 = arith.constant 0 : index
    %c0_42 = arith.constant 0 : index
    %85 = vector.load %arg7[%c0_40, %c0_41, %c0_42] : memref<2x1x64xf32, #tpu.memory_space<vmem>>, vector<1x1x64xf32>
    %86 = vector.shape_cast %85 : vector<1x1x64xf32> to vector<1x64xf32>
    %c0_43 = arith.constant 0 : index
    %c0_44 = arith.constant 0 : index
    %c0_45 = arith.constant 0 : index
    %87 = vector.load %arg9[%c0_43, %c0_44, %c0_45] : memref<2x1x64xf32, #tpu.memory_space<vmem>>, vector<1x1x64xf32>
    %88 = vector.shape_cast %87 : vector<1x1x64xf32> to vector<1x64xf32>
    %c0_46 = arith.constant 0 : index
    %c0_47 = arith.constant 0 : index
    %c0_48 = arith.constant 0 : index
    %89 = vector.load %arg11[%c0_46, %c0_47, %c0_48] : memref<2x1x64xf32, #tpu.memory_space<vmem>>, vector<1x1x64xf32>
    %90 = vector.shape_cast %89 : vector<1x1x64xf32> to vector<1x64xf32>
    %c0_49 = arith.constant 0 : index
    %c0_50 = arith.constant 0 : index
    %c0_51 = arith.constant 0 : index
    %91 = vector.load %arg13[%c0_49, %c0_50, %c0_51] : memref<2x1x64xf32, #tpu.memory_space<vmem>>, vector<1x1x64xf32>
    %92 = vector.shape_cast %91 : vector<1x1x64xf32> to vector<1x64xf32>
    %93 = arith.truncf %75 : vector<16x64xf32> to vector<16x64xbf16>
    %cst_52 = arith.constant dense<0.000000e+00> : vector<16x64xf32>
    %94 = tpu.matmul %93, %78, %cst_52 {dimension_numbers = #tpu.dot_dimension_numbers<[1], [0], [0], [1], [0, 0, 1, 1], [], []>} : vector<16x64xbf16>, vector<64x64xbf16>, vector<16x64xf32> -> vector<16x64xf32>
    %95 = vector.broadcast %86 : vector<1x64xf32> to vector<16x64xf32>
    %96 = arith.addf %94, %95 : vector<16x64xf32>
    %cst_53 = arith.constant dense<0.000000e+00> : vector<16x64xf32>
    %97 = tpu.matmul %93, %80, %cst_53 {dimension_numbers = #tpu.dot_dimension_numbers<[1], [0], [0], [1], [0, 0, 1, 1], [], []>} : vector<16x64xbf16>, vector<64x64xbf16>, vector<16x64xf32> -> vector<16x64xf32>
    %98 = vector.broadcast %88 : vector<1x64xf32> to vector<16x64xf32>
    %99 = arith.addf %97, %98 : vector<16x64xf32>
    %cst_54 = arith.constant dense<0.000000e+00> : vector<16x64xf32>
    %100 = tpu.matmul %93, %82, %cst_54 {dimension_numbers = #tpu.dot_dimension_numbers<[1], [0], [0], [1], [0, 0, 1, 1], [], []>} : vector<16x64xbf16>, vector<64x64xbf16>, vector<16x64xf32> -> vector<16x64xf32>
    %101 = vector.broadcast %90 : vector<1x64xf32> to vector<16x64xf32>
    %102 = arith.addf %100, %101 : vector<16x64xf32>
    %103 = vector.extract_strided_slice %76 {offsets = [0, 0], sizes = [1, 8], strides = [1, 1]} : vector<2x8xf32> to vector<1x8xf32>
    %cst_55 = arith.constant 0.000000e+00 : f32
    %104 = vector.broadcast %cst_55 : f32 to vector<8x64xf32>
    %105 = vector.extract_strided_slice %96 {offsets = [0, 0], sizes = [8, 16], strides = [1, 1]} : vector<16x64xf32> to vector<8x16xf32>
    %106 = arith.truncf %105 : vector<8x16xf32> to vector<8x16xbf16>
    %107 = vector.extract_strided_slice %99 {offsets = [0, 0], sizes = [8, 16], strides = [1, 1]} : vector<16x64xf32> to vector<8x16xf32>
    %108 = arith.truncf %107 : vector<8x16xf32> to vector<8x16xbf16>
    %109 = vector.extract_strided_slice %102 {offsets = [0, 0], sizes = [8, 16], strides = [1, 1]} : vector<16x64xf32> to vector<8x16xf32>
    %110 = arith.truncf %109 : vector<8x16xf32> to vector<8x16xbf16>
    %cst_56 = arith.constant dense<0.000000e+00> : vector<8x8xf32>
    %111 = tpu.matmul %106, %108, %cst_56 {dimension_numbers = #tpu.dot_dimension_numbers<[1], [1], [0], [0], [0, 0, 1, 0], [], []>} : vector<8x16xbf16>, vector<8x16xbf16>, vector<8x8xf32> -> vector<8x8xf32>
    %cst_57 = arith.constant 2.500000e-01 : f32
    %112 = vector.broadcast %cst_57 : f32 to vector<8x8xf32>
    %113 = arith.mulf %111, %112 : vector<8x8xf32>
    %cst_58 = arith.constant 0.000000e+00 : f32
    %114 = vector.broadcast %cst_58 : f32 to vector<1x8xf32>
    %115 = arith.cmpf oeq, %103, %114 : vector<1x8xf32>
    %cst_59 = arith.constant -3.40282347E+38 : f32
    %116 = vector.shape_cast %115 : vector<1x8xi1> to vector<1x8xi1>
    %117 = vector.broadcast %116 : vector<1x8xi1> to vector<8x8xi1>
    %118 = vector.broadcast %cst_59 : f32 to vector<8x8xf32>
    %119 = arith.select %117, %118, %113 : vector<8x8xi1>, vector<8x8xf32>
    %cst_60 = arith.constant dense<0xFF800000> : vector<8xf32>
    %120 = vector.multi_reduction <maximumf>, %119, %cst_60 [1] : vector<8x8xf32> to vector<8xf32>
    %121 = vector.shape_cast %120 : vector<8xf32> to vector<8x1xf32>
    %122 = vector.broadcast %121 : vector<8x1xf32> to vector<8x8xf32>
    %123 = arith.subf %119, %122 : vector<8x8xf32>
    %124 = math.exp %123 : vector<8x8xf32>
    %cst_61 = arith.constant dense<0.000000e+00> : vector<8xf32>
    %125 = vector.multi_reduction <add>, %124, %cst_61 [1] : vector<8x8xf32> to vector<8xf32>
    %126 = vector.shape_cast %125 : vector<8xf32> to vector<8x1xf32>
    %127 = tpu.reciprocal %126 {approx = true} : vector<8x1xf32> -> vector<8x1xf32>
    %128 = vector.broadcast %127 : vector<8x1xf32> to vector<8x8xf32>
    %129 = arith.mulf %124, %128 : vector<8x8xf32>
    %130 = arith.truncf %129 : vector<8x8xf32> to vector<8x8xbf16>
    %cst_62 = arith.constant dense<0.000000e+00> : vector<8x16xf32>
    %131 = tpu.matmul %130, %110, %cst_62 {dimension_numbers = #tpu.dot_dimension_numbers<[1], [0], [0], [1], [0, 0, 1, 1], [], []>} : vector<8x8xbf16>, vector<8x16xbf16>, vector<8x16xf32> -> vector<8x16xf32>
    %132 = arith.truncf %131 : vector<8x16xf32> to vector<8x16xbf16>
    %133 = vector.extract_strided_slice %84 {offsets = [0, 0], sizes = [16, 64], strides = [1, 1]} : vector<64x64xbf16> to vector<16x64xbf16>
    %cst_63 = arith.constant dense<0.000000e+00> : vector<8x64xf32>
    %134 = tpu.matmul %132, %133, %cst_63 {dimension_numbers = #tpu.dot_dimension_numbers<[1], [0], [0], [1], [0, 0, 1, 1], [], []>} : vector<8x16xbf16>, vector<16x64xbf16>, vector<8x64xf32> -> vector<8x64xf32>
    %135 = arith.addf %104, %134 : vector<8x64xf32>
    %136 = vector.extract_strided_slice %96 {offsets = [0, 16], sizes = [8, 16], strides = [1, 1]} : vector<16x64xf32> to vector<8x16xf32>
    %137 = arith.truncf %136 : vector<8x16xf32> to vector<8x16xbf16>
    %138 = vector.extract_strided_slice %99 {offsets = [0, 16], sizes = [8, 16], strides = [1, 1]} : vector<16x64xf32> to vector<8x16xf32>
    %139 = arith.truncf %138 : vector<8x16xf32> to vector<8x16xbf16>
    %140 = vector.extract_strided_slice %102 {offsets = [0, 16], sizes = [8, 16], strides = [1, 1]} : vector<16x64xf32> to vector<8x16xf32>
    %141 = arith.truncf %140 : vector<8x16xf32> to vector<8x16xbf16>
    %cst_64 = arith.constant dense<0.000000e+00> : vector<8x8xf32>
    %142 = tpu.matmul %137, %139, %cst_64 {dimension_numbers = #tpu.dot_dimension_numbers<[1], [1], [0], [0], [0, 0, 1, 0], [], []>} : vector<8x16xbf16>, vector<8x16xbf16>, vector<8x8xf32> -> vector<8x8xf32>
    %cst_65 = arith.constant 2.500000e-01 : f32
    %143 = vector.broadcast %cst_65 : f32 to vector<8x8xf32>
    %144 = arith.mulf %142, %143 : vector<8x8xf32>
    %cst_66 = arith.constant 0.000000e+00 : f32
    %145 = vector.broadcast %cst_66 : f32 to vector<1x8xf32>
    %146 = arith.cmpf oeq, %103, %145 : vector<1x8xf32>
    %cst_67 = arith.constant -3.40282347E+38 : f32
    %147 = vector.shape_cast %146 : vector<1x8xi1> to vector<1x8xi1>
    %148 = vector.broadcast %147 : vector<1x8xi1> to vector<8x8xi1>
    %149 = vector.broadcast %cst_67 : f32 to vector<8x8xf32>
    %150 = arith.select %148, %149, %144 : vector<8x8xi1>, vector<8x8xf32>
    %cst_68 = arith.constant dense<0xFF800000> : vector<8xf32>
    %151 = vector.multi_reduction <maximumf>, %150, %cst_68 [1] : vector<8x8xf32> to vector<8xf32>
    %152 = vector.shape_cast %151 : vector<8xf32> to vector<8x1xf32>
    %153 = vector.broadcast %152 : vector<8x1xf32> to vector<8x8xf32>
    %154 = arith.subf %150, %153 : vector<8x8xf32>
    %155 = math.exp %154 : vector<8x8xf32>
    %cst_69 = arith.constant dense<0.000000e+00> : vector<8xf32>
    %156 = vector.multi_reduction <add>, %155, %cst_69 [1] : vector<8x8xf32> to vector<8xf32>
    %157 = vector.shape_cast %156 : vector<8xf32> to vector<8x1xf32>
    %158 = tpu.reciprocal %157 {approx = true} : vector<8x1xf32> -> vector<8x1xf32>
    %159 = vector.broadcast %158 : vector<8x1xf32> to vector<8x8xf32>
    %160 = arith.mulf %155, %159 : vector<8x8xf32>
    %161 = arith.truncf %160 : vector<8x8xf32> to vector<8x8xbf16>
    %cst_70 = arith.constant dense<0.000000e+00> : vector<8x16xf32>
    %162 = tpu.matmul %161, %141, %cst_70 {dimension_numbers = #tpu.dot_dimension_numbers<[1], [0], [0], [1], [0, 0, 1, 1], [], []>} : vector<8x8xbf16>, vector<8x16xbf16>, vector<8x16xf32> -> vector<8x16xf32>
    %163 = arith.truncf %162 : vector<8x16xf32> to vector<8x16xbf16>
    %164 = vector.extract_strided_slice %84 {offsets = [16, 0], sizes = [16, 64], strides = [1, 1]} : vector<64x64xbf16> to vector<16x64xbf16>
    %cst_71 = arith.constant dense<0.000000e+00> : vector<8x64xf32>
    %165 = tpu.matmul %163, %164, %cst_71 {dimension_numbers = #tpu.dot_dimension_numbers<[1], [0], [0], [1], [0, 0, 1, 1], [], []>} : vector<8x16xbf16>, vector<16x64xbf16>, vector<8x64xf32> -> vector<8x64xf32>
    %166 = arith.addf %135, %165 : vector<8x64xf32>
    %167 = vector.extract_strided_slice %96 {offsets = [0, 32], sizes = [8, 16], strides = [1, 1]} : vector<16x64xf32> to vector<8x16xf32>
    %168 = arith.truncf %167 : vector<8x16xf32> to vector<8x16xbf16>
    %169 = vector.extract_strided_slice %99 {offsets = [0, 32], sizes = [8, 16], strides = [1, 1]} : vector<16x64xf32> to vector<8x16xf32>
    %170 = arith.truncf %169 : vector<8x16xf32> to vector<8x16xbf16>
    %171 = vector.extract_strided_slice %102 {offsets = [0, 32], sizes = [8, 16], strides = [1, 1]} : vector<16x64xf32> to vector<8x16xf32>
    %172 = arith.truncf %171 : vector<8x16xf32> to vector<8x16xbf16>
    %cst_72 = arith.constant dense<0.000000e+00> : vector<8x8xf32>
    %173 = tpu.matmul %168, %170, %cst_72 {dimension_numbers = #tpu.dot_dimension_numbers<[1], [1], [0], [0], [0, 0, 1, 0], [], []>} : vector<8x16xbf16>, vector<8x16xbf16>, vector<8x8xf32> -> vector<8x8xf32>
    %cst_73 = arith.constant 2.500000e-01 : f32
    %174 = vector.broadcast %cst_73 : f32 to vector<8x8xf32>
    %175 = arith.mulf %173, %174 : vector<8x8xf32>
    %cst_74 = arith.constant 0.000000e+00 : f32
    %176 = vector.broadcast %cst_74 : f32 to vector<1x8xf32>
    %177 = arith.cmpf oeq, %103, %176 : vector<1x8xf32>
    %cst_75 = arith.constant -3.40282347E+38 : f32
    %178 = vector.shape_cast %177 : vector<1x8xi1> to vector<1x8xi1>
    %179 = vector.broadcast %178 : vector<1x8xi1> to vector<8x8xi1>
    %180 = vector.broadcast %cst_75 : f32 to vector<8x8xf32>
    %181 = arith.select %179, %180, %175 : vector<8x8xi1>, vector<8x8xf32>
    %cst_76 = arith.constant dense<0xFF800000> : vector<8xf32>
    %182 = vector.multi_reduction <maximumf>, %181, %cst_76 [1] : vector<8x8xf32> to vector<8xf32>
    %183 = vector.shape_cast %182 : vector<8xf32> to vector<8x1xf32>
    %184 = vector.broadcast %183 : vector<8x1xf32> to vector<8x8xf32>
    %185 = arith.subf %181, %184 : vector<8x8xf32>
    %186 = math.exp %185 : vector<8x8xf32>
    %cst_77 = arith.constant dense<0.000000e+00> : vector<8xf32>
    %187 = vector.multi_reduction <add>, %186, %cst_77 [1] : vector<8x8xf32> to vector<8xf32>
    %188 = vector.shape_cast %187 : vector<8xf32> to vector<8x1xf32>
    %189 = tpu.reciprocal %188 {approx = true} : vector<8x1xf32> -> vector<8x1xf32>
    %190 = vector.broadcast %189 : vector<8x1xf32> to vector<8x8xf32>
    %191 = arith.mulf %186, %190 : vector<8x8xf32>
    %192 = arith.truncf %191 : vector<8x8xf32> to vector<8x8xbf16>
    %cst_78 = arith.constant dense<0.000000e+00> : vector<8x16xf32>
    %193 = tpu.matmul %192, %172, %cst_78 {dimension_numbers = #tpu.dot_dimension_numbers<[1], [0], [0], [1], [0, 0, 1, 1], [], []>} : vector<8x8xbf16>, vector<8x16xbf16>, vector<8x16xf32> -> vector<8x16xf32>
    %194 = arith.truncf %193 : vector<8x16xf32> to vector<8x16xbf16>
    %195 = vector.extract_strided_slice %84 {offsets = [32, 0], sizes = [16, 64], strides = [1, 1]} : vector<64x64xbf16> to vector<16x64xbf16>
    %cst_79 = arith.constant dense<0.000000e+00> : vector<8x64xf32>
    %196 = tpu.matmul %194, %195, %cst_79 {dimension_numbers = #tpu.dot_dimension_numbers<[1], [0], [0], [1], [0, 0, 1, 1], [], []>} : vector<8x16xbf16>, vector<16x64xbf16>, vector<8x64xf32> -> vector<8x64xf32>
    %197 = arith.addf %166, %196 : vector<8x64xf32>
    %198 = vector.extract_strided_slice %96 {offsets = [0, 48], sizes = [8, 16], strides = [1, 1]} : vector<16x64xf32> to vector<8x16xf32>
    %199 = arith.truncf %198 : vector<8x16xf32> to vector<8x16xbf16>
    %200 = vector.extract_strided_slice %99 {offsets = [0, 48], sizes = [8, 16], strides = [1, 1]} : vector<16x64xf32> to vector<8x16xf32>
    %201 = arith.truncf %200 : vector<8x16xf32> to vector<8x16xbf16>
    %202 = vector.extract_strided_slice %102 {offsets = [0, 48], sizes = [8, 16], strides = [1, 1]} : vector<16x64xf32> to vector<8x16xf32>
    %203 = arith.truncf %202 : vector<8x16xf32> to vector<8x16xbf16>
    %cst_80 = arith.constant dense<0.000000e+00> : vector<8x8xf32>
    %204 = tpu.matmul %199, %201, %cst_80 {dimension_numbers = #tpu.dot_dimension_numbers<[1], [1], [0], [0], [0, 0, 1, 0], [], []>} : vector<8x16xbf16>, vector<8x16xbf16>, vector<8x8xf32> -> vector<8x8xf32>
    %cst_81 = arith.constant 2.500000e-01 : f32
    %205 = vector.broadcast %cst_81 : f32 to vector<8x8xf32>
    %206 = arith.mulf %204, %205 : vector<8x8xf32>
    %cst_82 = arith.constant 0.000000e+00 : f32
    %207 = vector.broadcast %cst_82 : f32 to vector<1x8xf32>
    %208 = arith.cmpf oeq, %103, %207 : vector<1x8xf32>
    %cst_83 = arith.constant -3.40282347E+38 : f32
    %209 = vector.shape_cast %208 : vector<1x8xi1> to vector<1x8xi1>
    %210 = vector.broadcast %209 : vector<1x8xi1> to vector<8x8xi1>
    %211 = vector.broadcast %cst_83 : f32 to vector<8x8xf32>
    %212 = arith.select %210, %211, %206 : vector<8x8xi1>, vector<8x8xf32>
    %cst_84 = arith.constant dense<0xFF800000> : vector<8xf32>
    %213 = vector.multi_reduction <maximumf>, %212, %cst_84 [1] : vector<8x8xf32> to vector<8xf32>
    %214 = vector.shape_cast %213 : vector<8xf32> to vector<8x1xf32>
    %215 = vector.broadcast %214 : vector<8x1xf32> to vector<8x8xf32>
    %216 = arith.subf %212, %215 : vector<8x8xf32>
    %217 = math.exp %216 : vector<8x8xf32>
    %cst_85 = arith.constant dense<0.000000e+00> : vector<8xf32>
    %218 = vector.multi_reduction <add>, %217, %cst_85 [1] : vector<8x8xf32> to vector<8xf32>
    %219 = vector.shape_cast %218 : vector<8xf32> to vector<8x1xf32>
    %220 = tpu.reciprocal %219 {approx = true} : vector<8x1xf32> -> vector<8x1xf32>
    %221 = vector.broadcast %220 : vector<8x1xf32> to vector<8x8xf32>
    %222 = arith.mulf %217, %221 : vector<8x8xf32>
    %223 = arith.truncf %222 : vector<8x8xf32> to vector<8x8xbf16>
    %cst_86 = arith.constant dense<0.000000e+00> : vector<8x16xf32>
    %224 = tpu.matmul %223, %203, %cst_86 {dimension_numbers = #tpu.dot_dimension_numbers<[1], [0], [0], [1], [0, 0, 1, 1], [], []>} : vector<8x8xbf16>, vector<8x16xbf16>, vector<8x16xf32> -> vector<8x16xf32>
    %225 = arith.truncf %224 : vector<8x16xf32> to vector<8x16xbf16>
    %226 = vector.extract_strided_slice %84 {offsets = [48, 0], sizes = [16, 64], strides = [1, 1]} : vector<64x64xbf16> to vector<16x64xbf16>
    %cst_87 = arith.constant dense<0.000000e+00> : vector<8x64xf32>
    %227 = tpu.matmul %225, %226, %cst_87 {dimension_numbers = #tpu.dot_dimension_numbers<[1], [0], [0], [1], [0, 0, 1, 1], [], []>} : vector<8x16xbf16>, vector<16x64xbf16>, vector<8x64xf32> -> vector<8x64xf32>
    %228 = arith.addf %197, %227 : vector<8x64xf32>
    %229 = vector.extract_strided_slice %76 {offsets = [1, 0], sizes = [1, 8], strides = [1, 1]} : vector<2x8xf32> to vector<1x8xf32>
    %cst_88 = arith.constant 0.000000e+00 : f32
    %230 = vector.broadcast %cst_88 : f32 to vector<8x64xf32>
    %231 = vector.extract_strided_slice %96 {offsets = [8, 0], sizes = [8, 16], strides = [1, 1]} : vector<16x64xf32> to vector<8x16xf32>
    %232 = arith.truncf %231 : vector<8x16xf32> to vector<8x16xbf16>
    %233 = vector.extract_strided_slice %99 {offsets = [8, 0], sizes = [8, 16], strides = [1, 1]} : vector<16x64xf32> to vector<8x16xf32>
    %234 = arith.truncf %233 : vector<8x16xf32> to vector<8x16xbf16>
    %235 = vector.extract_strided_slice %102 {offsets = [8, 0], sizes = [8, 16], strides = [1, 1]} : vector<16x64xf32> to vector<8x16xf32>
    %236 = arith.truncf %235 : vector<8x16xf32> to vector<8x16xbf16>
    %cst_89 = arith.constant dense<0.000000e+00> : vector<8x8xf32>
    %237 = tpu.matmul %232, %234, %cst_89 {dimension_numbers = #tpu.dot_dimension_numbers<[1], [1], [0], [0], [0, 0, 1, 0], [], []>} : vector<8x16xbf16>, vector<8x16xbf16>, vector<8x8xf32> -> vector<8x8xf32>
    %cst_90 = arith.constant 2.500000e-01 : f32
    %238 = vector.broadcast %cst_90 : f32 to vector<8x8xf32>
    %239 = arith.mulf %237, %238 : vector<8x8xf32>
    %cst_91 = arith.constant 0.000000e+00 : f32
    %240 = vector.broadcast %cst_91 : f32 to vector<1x8xf32>
    %241 = arith.cmpf oeq, %229, %240 : vector<1x8xf32>
    %cst_92 = arith.constant -3.40282347E+38 : f32
    %242 = vector.shape_cast %241 : vector<1x8xi1> to vector<1x8xi1>
    %243 = vector.broadcast %242 : vector<1x8xi1> to vector<8x8xi1>
    %244 = vector.broadcast %cst_92 : f32 to vector<8x8xf32>
    %245 = arith.select %243, %244, %239 : vector<8x8xi1>, vector<8x8xf32>
    %cst_93 = arith.constant dense<0xFF800000> : vector<8xf32>
    %246 = vector.multi_reduction <maximumf>, %245, %cst_93 [1] : vector<8x8xf32> to vector<8xf32>
    %247 = vector.shape_cast %246 : vector<8xf32> to vector<8x1xf32>
    %248 = vector.broadcast %247 : vector<8x1xf32> to vector<8x8xf32>
    %249 = arith.subf %245, %248 : vector<8x8xf32>
    %250 = math.exp %249 : vector<8x8xf32>
    %cst_94 = arith.constant dense<0.000000e+00> : vector<8xf32>
    %251 = vector.multi_reduction <add>, %250, %cst_94 [1] : vector<8x8xf32> to vector<8xf32>
    %252 = vector.shape_cast %251 : vector<8xf32> to vector<8x1xf32>
    %253 = tpu.reciprocal %252 {approx = true} : vector<8x1xf32> -> vector<8x1xf32>
    %254 = vector.broadcast %253 : vector<8x1xf32> to vector<8x8xf32>
    %255 = arith.mulf %250, %254 : vector<8x8xf32>
    %256 = arith.truncf %255 : vector<8x8xf32> to vector<8x8xbf16>
    %cst_95 = arith.constant dense<0.000000e+00> : vector<8x16xf32>
    %257 = tpu.matmul %256, %236, %cst_95 {dimension_numbers = #tpu.dot_dimension_numbers<[1], [0], [0], [1], [0, 0, 1, 1], [], []>} : vector<8x8xbf16>, vector<8x16xbf16>, vector<8x16xf32> -> vector<8x16xf32>
    %258 = arith.truncf %257 : vector<8x16xf32> to vector<8x16xbf16>
    %259 = vector.extract_strided_slice %84 {offsets = [0, 0], sizes = [16, 64], strides = [1, 1]} : vector<64x64xbf16> to vector<16x64xbf16>
    %cst_96 = arith.constant dense<0.000000e+00> : vector<8x64xf32>
    %260 = tpu.matmul %258, %259, %cst_96 {dimension_numbers = #tpu.dot_dimension_numbers<[1], [0], [0], [1], [0, 0, 1, 1], [], []>} : vector<8x16xbf16>, vector<16x64xbf16>, vector<8x64xf32> -> vector<8x64xf32>
    %261 = arith.addf %230, %260 : vector<8x64xf32>
    %262 = vector.extract_strided_slice %96 {offsets = [8, 16], sizes = [8, 16], strides = [1, 1]} : vector<16x64xf32> to vector<8x16xf32>
    %263 = arith.truncf %262 : vector<8x16xf32> to vector<8x16xbf16>
    %264 = vector.extract_strided_slice %99 {offsets = [8, 16], sizes = [8, 16], strides = [1, 1]} : vector<16x64xf32> to vector<8x16xf32>
    %265 = arith.truncf %264 : vector<8x16xf32> to vector<8x16xbf16>
    %266 = vector.extract_strided_slice %102 {offsets = [8, 16], sizes = [8, 16], strides = [1, 1]} : vector<16x64xf32> to vector<8x16xf32>
    %267 = arith.truncf %266 : vector<8x16xf32> to vector<8x16xbf16>
    %cst_97 = arith.constant dense<0.000000e+00> : vector<8x8xf32>
    %268 = tpu.matmul %263, %265, %cst_97 {dimension_numbers = #tpu.dot_dimension_numbers<[1], [1], [0], [0], [0, 0, 1, 0], [], []>} : vector<8x16xbf16>, vector<8x16xbf16>, vector<8x8xf32> -> vector<8x8xf32>
    %cst_98 = arith.constant 2.500000e-01 : f32
    %269 = vector.broadcast %cst_98 : f32 to vector<8x8xf32>
    %270 = arith.mulf %268, %269 : vector<8x8xf32>
    %cst_99 = arith.constant 0.000000e+00 : f32
    %271 = vector.broadcast %cst_99 : f32 to vector<1x8xf32>
    %272 = arith.cmpf oeq, %229, %271 : vector<1x8xf32>
    %cst_100 = arith.constant -3.40282347E+38 : f32
    %273 = vector.shape_cast %272 : vector<1x8xi1> to vector<1x8xi1>
    %274 = vector.broadcast %273 : vector<1x8xi1> to vector<8x8xi1>
    %275 = vector.broadcast %cst_100 : f32 to vector<8x8xf32>
    %276 = arith.select %274, %275, %270 : vector<8x8xi1>, vector<8x8xf32>
    %cst_101 = arith.constant dense<0xFF800000> : vector<8xf32>
    %277 = vector.multi_reduction <maximumf>, %276, %cst_101 [1] : vector<8x8xf32> to vector<8xf32>
    %278 = vector.shape_cast %277 : vector<8xf32> to vector<8x1xf32>
    %279 = vector.broadcast %278 : vector<8x1xf32> to vector<8x8xf32>
    %280 = arith.subf %276, %279 : vector<8x8xf32>
    %281 = math.exp %280 : vector<8x8xf32>
    %cst_102 = arith.constant dense<0.000000e+00> : vector<8xf32>
    %282 = vector.multi_reduction <add>, %281, %cst_102 [1] : vector<8x8xf32> to vector<8xf32>
    %283 = vector.shape_cast %282 : vector<8xf32> to vector<8x1xf32>
    %284 = tpu.reciprocal %283 {approx = true} : vector<8x1xf32> -> vector<8x1xf32>
    %285 = vector.broadcast %284 : vector<8x1xf32> to vector<8x8xf32>
    %286 = arith.mulf %281, %285 : vector<8x8xf32>
    %287 = arith.truncf %286 : vector<8x8xf32> to vector<8x8xbf16>
    %cst_103 = arith.constant dense<0.000000e+00> : vector<8x16xf32>
    %288 = tpu.matmul %287, %267, %cst_103 {dimension_numbers = #tpu.dot_dimension_numbers<[1], [0], [0], [1], [0, 0, 1, 1], [], []>} : vector<8x8xbf16>, vector<8x16xbf16>, vector<8x16xf32> -> vector<8x16xf32>
    %289 = arith.truncf %288 : vector<8x16xf32> to vector<8x16xbf16>
    %290 = vector.extract_strided_slice %84 {offsets = [16, 0], sizes = [16, 64], strides = [1, 1]} : vector<64x64xbf16> to vector<16x64xbf16>
    %cst_104 = arith.constant dense<0.000000e+00> : vector<8x64xf32>
    %291 = tpu.matmul %289, %290, %cst_104 {dimension_numbers = #tpu.dot_dimension_numbers<[1], [0], [0], [1], [0, 0, 1, 1], [], []>} : vector<8x16xbf16>, vector<16x64xbf16>, vector<8x64xf32> -> vector<8x64xf32>
    %292 = arith.addf %261, %291 : vector<8x64xf32>
    %293 = vector.extract_strided_slice %96 {offsets = [8, 32], sizes = [8, 16], strides = [1, 1]} : vector<16x64xf32> to vector<8x16xf32>
    %294 = arith.truncf %293 : vector<8x16xf32> to vector<8x16xbf16>
    %295 = vector.extract_strided_slice %99 {offsets = [8, 32], sizes = [8, 16], strides = [1, 1]} : vector<16x64xf32> to vector<8x16xf32>
    %296 = arith.truncf %295 : vector<8x16xf32> to vector<8x16xbf16>
    %297 = vector.extract_strided_slice %102 {offsets = [8, 32], sizes = [8, 16], strides = [1, 1]} : vector<16x64xf32> to vector<8x16xf32>
    %298 = arith.truncf %297 : vector<8x16xf32> to vector<8x16xbf16>
    %cst_105 = arith.constant dense<0.000000e+00> : vector<8x8xf32>
    %299 = tpu.matmul %294, %296, %cst_105 {dimension_numbers = #tpu.dot_dimension_numbers<[1], [1], [0], [0], [0, 0, 1, 0], [], []>} : vector<8x16xbf16>, vector<8x16xbf16>, vector<8x8xf32> -> vector<8x8xf32>
    %cst_106 = arith.constant 2.500000e-01 : f32
    %300 = vector.broadcast %cst_106 : f32 to vector<8x8xf32>
    %301 = arith.mulf %299, %300 : vector<8x8xf32>
    %cst_107 = arith.constant 0.000000e+00 : f32
    %302 = vector.broadcast %cst_107 : f32 to vector<1x8xf32>
    %303 = arith.cmpf oeq, %229, %302 : vector<1x8xf32>
    %cst_108 = arith.constant -3.40282347E+38 : f32
    %304 = vector.shape_cast %303 : vector<1x8xi1> to vector<1x8xi1>
    %305 = vector.broadcast %304 : vector<1x8xi1> to vector<8x8xi1>
    %306 = vector.broadcast %cst_108 : f32 to vector<8x8xf32>
    %307 = arith.select %305, %306, %301 : vector<8x8xi1>, vector<8x8xf32>
    %cst_109 = arith.constant dense<0xFF800000> : vector<8xf32>
    %308 = vector.multi_reduction <maximumf>, %307, %cst_109 [1] : vector<8x8xf32> to vector<8xf32>
    %309 = vector.shape_cast %308 : vector<8xf32> to vector<8x1xf32>
    %310 = vector.broadcast %309 : vector<8x1xf32> to vector<8x8xf32>
    %311 = arith.subf %307, %310 : vector<8x8xf32>
    %312 = math.exp %311 : vector<8x8xf32>
    %cst_110 = arith.constant dense<0.000000e+00> : vector<8xf32>
    %313 = vector.multi_reduction <add>, %312, %cst_110 [1] : vector<8x8xf32> to vector<8xf32>
    %314 = vector.shape_cast %313 : vector<8xf32> to vector<8x1xf32>
    %315 = tpu.reciprocal %314 {approx = true} : vector<8x1xf32> -> vector<8x1xf32>
    %316 = vector.broadcast %315 : vector<8x1xf32> to vector<8x8xf32>
    %317 = arith.mulf %312, %316 : vector<8x8xf32>
    %318 = arith.truncf %317 : vector<8x8xf32> to vector<8x8xbf16>
    %cst_111 = arith.constant dense<0.000000e+00> : vector<8x16xf32>
    %319 = tpu.matmul %318, %298, %cst_111 {dimension_numbers = #tpu.dot_dimension_numbers<[1], [0], [0], [1], [0, 0, 1, 1], [], []>} : vector<8x8xbf16>, vector<8x16xbf16>, vector<8x16xf32> -> vector<8x16xf32>
    %320 = arith.truncf %319 : vector<8x16xf32> to vector<8x16xbf16>
    %321 = vector.extract_strided_slice %84 {offsets = [32, 0], sizes = [16, 64], strides = [1, 1]} : vector<64x64xbf16> to vector<16x64xbf16>
    %cst_112 = arith.constant dense<0.000000e+00> : vector<8x64xf32>
    %322 = tpu.matmul %320, %321, %cst_112 {dimension_numbers = #tpu.dot_dimension_numbers<[1], [0], [0], [1], [0, 0, 1, 1], [], []>} : vector<8x16xbf16>, vector<16x64xbf16>, vector<8x64xf32> -> vector<8x64xf32>
    %323 = arith.addf %292, %322 : vector<8x64xf32>
    %324 = vector.extract_strided_slice %96 {offsets = [8, 48], sizes = [8, 16], strides = [1, 1]} : vector<16x64xf32> to vector<8x16xf32>
    %325 = arith.truncf %324 : vector<8x16xf32> to vector<8x16xbf16>
    %326 = vector.extract_strided_slice %99 {offsets = [8, 48], sizes = [8, 16], strides = [1, 1]} : vector<16x64xf32> to vector<8x16xf32>
    %327 = arith.truncf %326 : vector<8x16xf32> to vector<8x16xbf16>
    %328 = vector.extract_strided_slice %102 {offsets = [8, 48], sizes = [8, 16], strides = [1, 1]} : vector<16x64xf32> to vector<8x16xf32>
    %329 = arith.truncf %328 : vector<8x16xf32> to vector<8x16xbf16>
    %cst_113 = arith.constant dense<0.000000e+00> : vector<8x8xf32>
    %330 = tpu.matmul %325, %327, %cst_113 {dimension_numbers = #tpu.dot_dimension_numbers<[1], [1], [0], [0], [0, 0, 1, 0], [], []>} : vector<8x16xbf16>, vector<8x16xbf16>, vector<8x8xf32> -> vector<8x8xf32>
    %cst_114 = arith.constant 2.500000e-01 : f32
    %331 = vector.broadcast %cst_114 : f32 to vector<8x8xf32>
    %332 = arith.mulf %330, %331 : vector<8x8xf32>
    %cst_115 = arith.constant 0.000000e+00 : f32
    %333 = vector.broadcast %cst_115 : f32 to vector<1x8xf32>
    %334 = arith.cmpf oeq, %229, %333 : vector<1x8xf32>
    %cst_116 = arith.constant -3.40282347E+38 : f32
    %335 = vector.shape_cast %334 : vector<1x8xi1> to vector<1x8xi1>
    %336 = vector.broadcast %335 : vector<1x8xi1> to vector<8x8xi1>
    %337 = vector.broadcast %cst_116 : f32 to vector<8x8xf32>
    %338 = arith.select %336, %337, %332 : vector<8x8xi1>, vector<8x8xf32>
    %cst_117 = arith.constant dense<0xFF800000> : vector<8xf32>
    %339 = vector.multi_reduction <maximumf>, %338, %cst_117 [1] : vector<8x8xf32> to vector<8xf32>
    %340 = vector.shape_cast %339 : vector<8xf32> to vector<8x1xf32>
    %341 = vector.broadcast %340 : vector<8x1xf32> to vector<8x8xf32>
    %342 = arith.subf %338, %341 : vector<8x8xf32>
    %343 = math.exp %342 : vector<8x8xf32>
    %cst_118 = arith.constant dense<0.000000e+00> : vector<8xf32>
    %344 = vector.multi_reduction <add>, %343, %cst_118 [1] : vector<8x8xf32> to vector<8xf32>
    %345 = vector.shape_cast %344 : vector<8xf32> to vector<8x1xf32>
    %346 = tpu.reciprocal %345 {approx = true} : vector<8x1xf32> -> vector<8x1xf32>
    %347 = vector.broadcast %346 : vector<8x1xf32> to vector<8x8xf32>
    %348 = arith.mulf %343, %347 : vector<8x8xf32>
    %349 = arith.truncf %348 : vector<8x8xf32> to vector<8x8xbf16>
    %cst_119 = arith.constant dense<0.000000e+00> : vector<8x16xf32>
    %350 = tpu.matmul %349, %329, %cst_119 {dimension_numbers = #tpu.dot_dimension_numbers<[1], [0], [0], [1], [0, 0, 1, 1], [], []>} : vector<8x8xbf16>, vector<8x16xbf16>, vector<8x16xf32> -> vector<8x16xf32>
    %351 = arith.truncf %350 : vector<8x16xf32> to vector<8x16xbf16>
    %352 = vector.extract_strided_slice %84 {offsets = [48, 0], sizes = [16, 64], strides = [1, 1]} : vector<64x64xbf16> to vector<16x64xbf16>
    %cst_120 = arith.constant dense<0.000000e+00> : vector<8x64xf32>
    %353 = tpu.matmul %351, %352, %cst_120 {dimension_numbers = #tpu.dot_dimension_numbers<[1], [0], [0], [1], [0, 0, 1, 1], [], []>} : vector<8x16xbf16>, vector<16x64xbf16>, vector<8x64xf32> -> vector<8x64xf32>
    %354 = arith.addf %323, %353 : vector<8x64xf32>
    %355 = tpu.concatenate %228, %354 in 0 : vector<8x64xf32>, vector<8x64xf32> -> vector<16x64xf32>
    %356 = vector.broadcast %92 : vector<1x64xf32> to vector<16x64xf32>
    %357 = arith.addf %355, %356 : vector<16x64xf32>
    %358 = arith.addf %75, %357 : vector<16x64xf32>
    %c0_121 = arith.constant 0 : index
    %c0_122 = arith.constant 0 : index
    %c0_123 = arith.constant 0 : index
    %359 = vector.load %arg14[%c0_121, %c0_122, %c0_123] : memref<2x1x64xf32, #tpu.memory_space<vmem>>, vector<1x1x64xf32>
    %360 = vector.shape_cast %359 : vector<1x1x64xf32> to vector<1x64xf32>
    %c0_124 = arith.constant 0 : index
    %c0_125 = arith.constant 0 : index
    %c0_126 = arith.constant 0 : index
    %361 = vector.load %arg15[%c0_124, %c0_125, %c0_126] : memref<2x1x64xf32, #tpu.memory_space<vmem>>, vector<1x1x64xf32>
    %362 = vector.shape_cast %361 : vector<1x1x64xf32> to vector<1x64xf32>
    %cst_127 = arith.constant dense<0.000000e+00> : vector<16xf32>
    %363 = vector.multi_reduction <add>, %358, %cst_127 [1] : vector<16x64xf32> to vector<16xf32>
    %364 = vector.shape_cast %363 : vector<16xf32> to vector<16x1xf32>
    %cst_128 = arith.constant 6.400000e+01 : f32
    %365 = vector.broadcast %cst_128 : f32 to vector<16x1xf32>
    %366 = arith.divf %364, %365 : vector<16x1xf32>
    %367 = vector.broadcast %366 : vector<16x1xf32> to vector<16x64xf32>
    %368 = arith.subf %358, %367 : vector<16x64xf32>
    %369 = arith.mulf %368, %368 : vector<16x64xf32>
    %cst_129 = arith.constant dense<0.000000e+00> : vector<16xf32>
    %370 = vector.multi_reduction <add>, %369, %cst_129 [1] : vector<16x64xf32> to vector<16xf32>
    %371 = vector.shape_cast %370 : vector<16xf32> to vector<16x1xf32>
    %cst_130 = arith.constant 6.400000e+01 : f32
    %372 = vector.broadcast %cst_130 : f32 to vector<16x1xf32>
    %373 = arith.divf %371, %372 : vector<16x1xf32>
    %374 = vector.broadcast %366 : vector<16x1xf32> to vector<16x64xf32>
    %375 = arith.subf %358, %374 : vector<16x64xf32>
    %cst_131 = arith.constant 9.99999996E-13 : f32
    %376 = vector.broadcast %cst_131 : f32 to vector<16x1xf32>
    %377 = arith.addf %373, %376 : vector<16x1xf32>
    %378 = math.rsqrt %377 : vector<16x1xf32>
    %379 = vector.broadcast %378 : vector<16x1xf32> to vector<16x64xf32>
    %380 = arith.mulf %375, %379 : vector<16x64xf32>
    %381 = vector.broadcast %360 : vector<1x64xf32> to vector<16x64xf32>
    %382 = arith.mulf %380, %381 : vector<16x64xf32>
    %383 = vector.broadcast %362 : vector<1x64xf32> to vector<16x64xf32>
    %384 = arith.addf %382, %383 : vector<16x64xf32>
    %385 = arith.truncf %384 : vector<16x64xf32> to vector<16x64xbf16>
    %c0_132 = arith.constant 0 : index
    %c0_133 = arith.constant 0 : index
    %c0_134 = arith.constant 0 : index
    %386 = vector.load %arg16[%c0_132, %c0_133, %c0_134] : memref<2x64x128xbf16, #tpu.memory_space<vmem>>, vector<1x64x128xbf16>
    %387 = vector.shape_cast %386 : vector<1x64x128xbf16> to vector<64x128xbf16>
    %cst_135 = arith.constant dense<0.000000e+00> : vector<16x128xf32>
    %388 = tpu.matmul %385, %387, %cst_135 {dimension_numbers = #tpu.dot_dimension_numbers<[1], [0], [0], [1], [0, 0, 1, 1], [], []>} : vector<16x64xbf16>, vector<64x128xbf16>, vector<16x128xf32> -> vector<16x128xf32>
    %c0_136 = arith.constant 0 : index
    %c0_137 = arith.constant 0 : index
    %c0_138 = arith.constant 0 : index
    %389 = vector.load %arg17[%c0_136, %c0_137, %c0_138] : memref<2x1x128xf32, #tpu.memory_space<vmem>>, vector<1x1x128xf32>
    %390 = vector.shape_cast %389 : vector<1x1x128xf32> to vector<1x128xf32>
    %391 = vector.broadcast %390 : vector<1x128xf32> to vector<16x128xf32>
    %392 = arith.addf %388, %391 : vector<16x128xf32>
    %cst_139 = arith.constant 5.000000e-01 : f32
    %393 = vector.broadcast %cst_139 : f32 to vector<16x128xf32>
    %394 = arith.mulf %393, %392 : vector<16x128xf32>
    %cst_140 = arith.constant 0.707106769 : f32
    %395 = vector.broadcast %cst_140 : f32 to vector<16x128xf32>
    %396 = arith.mulf %392, %395 : vector<16x128xf32>
    %397 = math.erf %396 : vector<16x128xf32>
    %cst_141 = arith.constant 1.000000e+00 : f32
    %398 = vector.broadcast %cst_141 : f32 to vector<16x128xf32>
    %399 = arith.addf %398, %397 : vector<16x128xf32>
    %400 = arith.mulf %394, %399 : vector<16x128xf32>
    %401 = arith.truncf %400 : vector<16x128xf32> to vector<16x128xbf16>
    %c0_142 = arith.constant 0 : index
    %c0_143 = arith.constant 0 : index
    %c0_144 = arith.constant 0 : index
    %402 = vector.load %arg18[%c0_142, %c0_143, %c0_144] : memref<2x128x64xbf16, #tpu.memory_space<vmem>>, vector<1x128x64xbf16>
    %403 = vector.shape_cast %402 : vector<1x128x64xbf16> to vector<128x64xbf16>
    %cst_145 = arith.constant dense<0.000000e+00> : vector<16x64xf32>
    %404 = tpu.matmul %401, %403, %cst_145 {dimension_numbers = #tpu.dot_dimension_numbers<[1], [0], [0], [1], [0, 0, 1, 1], [], []>} : vector<16x128xbf16>, vector<128x64xbf16>, vector<16x64xf32> -> vector<16x64xf32>
    %c0_146 = arith.constant 0 : index
    %c0_147 = arith.constant 0 : index
    %c0_148 = arith.constant 0 : index
    %405 = vector.load %arg19[%c0_146, %c0_147, %c0_148] : memref<2x1x64xf32, #tpu.memory_space<vmem>>, vector<1x1x64xf32>
    %406 = vector.shape_cast %405 : vector<1x1x64xf32> to vector<1x64xf32>
    %407 = vector.broadcast %406 : vector<1x64xf32> to vector<16x64xf32>
    %408 = arith.addf %404, %407 : vector<16x64xf32>
    %409 = arith.addf %384, %408 : vector<16x64xf32>
    %c0_149 = arith.constant 0 : index
    %c0_150 = arith.constant 0 : index
    %c0_151 = arith.constant 0 : index
    %410 = vector.load %arg20[%c0_149, %c0_150, %c0_151] : memref<2x1x64xf32, #tpu.memory_space<vmem>>, vector<1x1x64xf32>
    %411 = vector.shape_cast %410 : vector<1x1x64xf32> to vector<1x64xf32>
    %c0_152 = arith.constant 0 : index
    %c0_153 = arith.constant 0 : index
    %c0_154 = arith.constant 0 : index
    %412 = vector.load %arg21[%c0_152, %c0_153, %c0_154] : memref<2x1x64xf32, #tpu.memory_space<vmem>>, vector<1x1x64xf32>
    %413 = vector.shape_cast %412 : vector<1x1x64xf32> to vector<1x64xf32>
    %cst_155 = arith.constant dense<0.000000e+00> : vector<16xf32>
    %414 = vector.multi_reduction <add>, %409, %cst_155 [1] : vector<16x64xf32> to vector<16xf32>
    %415 = vector.shape_cast %414 : vector<16xf32> to vector<16x1xf32>
    %cst_156 = arith.constant 6.400000e+01 : f32
    %416 = vector.broadcast %cst_156 : f32 to vector<16x1xf32>
    %417 = arith.divf %415, %416 : vector<16x1xf32>
    %418 = vector.broadcast %417 : vector<16x1xf32> to vector<16x64xf32>
    %419 = arith.subf %409, %418 : vector<16x64xf32>
    %420 = arith.mulf %419, %419 : vector<16x64xf32>
    %cst_157 = arith.constant dense<0.000000e+00> : vector<16xf32>
    %421 = vector.multi_reduction <add>, %420, %cst_157 [1] : vector<16x64xf32> to vector<16xf32>
    %422 = vector.shape_cast %421 : vector<16xf32> to vector<16x1xf32>
    %cst_158 = arith.constant 6.400000e+01 : f32
    %423 = vector.broadcast %cst_158 : f32 to vector<16x1xf32>
    %424 = arith.divf %422, %423 : vector<16x1xf32>
    %425 = vector.broadcast %417 : vector<16x1xf32> to vector<16x64xf32>
    %426 = arith.subf %409, %425 : vector<16x64xf32>
    %cst_159 = arith.constant 9.99999996E-13 : f32
    %427 = vector.broadcast %cst_159 : f32 to vector<16x1xf32>
    %428 = arith.addf %424, %427 : vector<16x1xf32>
    %429 = math.rsqrt %428 : vector<16x1xf32>
    %430 = vector.broadcast %429 : vector<16x1xf32> to vector<16x64xf32>
    %431 = arith.mulf %426, %430 : vector<16x64xf32>
    %432 = vector.broadcast %411 : vector<1x64xf32> to vector<16x64xf32>
    %433 = arith.mulf %431, %432 : vector<16x64xf32>
    %434 = vector.broadcast %413 : vector<1x64xf32> to vector<16x64xf32>
    %435 = arith.addf %433, %434 : vector<16x64xf32>
    %c1_160 = arith.constant 1 : index
    %c0_161 = arith.constant 0 : index
    %c0_162 = arith.constant 0 : index
    %436 = vector.load %arg6[%c1_160, %c0_161, %c0_162] : memref<2x64x64xbf16, #tpu.memory_space<vmem>>, vector<1x64x64xbf16>
    %437 = vector.shape_cast %436 : vector<1x64x64xbf16> to vector<64x64xbf16>
    %c1_163 = arith.constant 1 : index
    %c0_164 = arith.constant 0 : index
    %c0_165 = arith.constant 0 : index
    %438 = vector.load %arg8[%c1_163, %c0_164, %c0_165] : memref<2x64x64xbf16, #tpu.memory_space<vmem>>, vector<1x64x64xbf16>
    %439 = vector.shape_cast %438 : vector<1x64x64xbf16> to vector<64x64xbf16>
    %c1_166 = arith.constant 1 : index
    %c0_167 = arith.constant 0 : index
    %c0_168 = arith.constant 0 : index
    %440 = vector.load %arg10[%c1_166, %c0_167, %c0_168] : memref<2x64x64xbf16, #tpu.memory_space<vmem>>, vector<1x64x64xbf16>
    %441 = vector.shape_cast %440 : vector<1x64x64xbf16> to vector<64x64xbf16>
    %c1_169 = arith.constant 1 : index
    %c0_170 = arith.constant 0 : index
    %c0_171 = arith.constant 0 : index
    %442 = vector.load %arg12[%c1_169, %c0_170, %c0_171] : memref<2x64x64xbf16, #tpu.memory_space<vmem>>, vector<1x64x64xbf16>
    %443 = vector.shape_cast %442 : vector<1x64x64xbf16> to vector<64x64xbf16>
    %c1_172 = arith.constant 1 : index
    %c0_173 = arith.constant 0 : index
    %c0_174 = arith.constant 0 : index
    %444 = vector.load %arg7[%c1_172, %c0_173, %c0_174] : memref<2x1x64xf32, #tpu.memory_space<vmem>>, vector<1x1x64xf32>
    %445 = vector.shape_cast %444 : vector<1x1x64xf32> to vector<1x64xf32>
    %c1_175 = arith.constant 1 : index
    %c0_176 = arith.constant 0 : index
    %c0_177 = arith.constant 0 : index
    %446 = vector.load %arg9[%c1_175, %c0_176, %c0_177] : memref<2x1x64xf32, #tpu.memory_space<vmem>>, vector<1x1x64xf32>
    %447 = vector.shape_cast %446 : vector<1x1x64xf32> to vector<1x64xf32>
    %c1_178 = arith.constant 1 : index
    %c0_179 = arith.constant 0 : index
    %c0_180 = arith.constant 0 : index
    %448 = vector.load %arg11[%c1_178, %c0_179, %c0_180] : memref<2x1x64xf32, #tpu.memory_space<vmem>>, vector<1x1x64xf32>
    %449 = vector.shape_cast %448 : vector<1x1x64xf32> to vector<1x64xf32>
    %c1_181 = arith.constant 1 : index
    %c0_182 = arith.constant 0 : index
    %c0_183 = arith.constant 0 : index
    %450 = vector.load %arg13[%c1_181, %c0_182, %c0_183] : memref<2x1x64xf32, #tpu.memory_space<vmem>>, vector<1x1x64xf32>
    %451 = vector.shape_cast %450 : vector<1x1x64xf32> to vector<1x64xf32>
    %452 = arith.truncf %435 : vector<16x64xf32> to vector<16x64xbf16>
    %cst_184 = arith.constant dense<0.000000e+00> : vector<16x64xf32>
    %453 = tpu.matmul %452, %437, %cst_184 {dimension_numbers = #tpu.dot_dimension_numbers<[1], [0], [0], [1], [0, 0, 1, 1], [], []>} : vector<16x64xbf16>, vector<64x64xbf16>, vector<16x64xf32> -> vector<16x64xf32>
    %454 = vector.broadcast %445 : vector<1x64xf32> to vector<16x64xf32>
    %455 = arith.addf %453, %454 : vector<16x64xf32>
    %cst_185 = arith.constant dense<0.000000e+00> : vector<16x64xf32>
    %456 = tpu.matmul %452, %439, %cst_185 {dimension_numbers = #tpu.dot_dimension_numbers<[1], [0], [0], [1], [0, 0, 1, 1], [], []>} : vector<16x64xbf16>, vector<64x64xbf16>, vector<16x64xf32> -> vector<16x64xf32>
    %457 = vector.broadcast %447 : vector<1x64xf32> to vector<16x64xf32>
    %458 = arith.addf %456, %457 : vector<16x64xf32>
    %cst_186 = arith.constant dense<0.000000e+00> : vector<16x64xf32>
    %459 = tpu.matmul %452, %441, %cst_186 {dimension_numbers = #tpu.dot_dimension_numbers<[1], [0], [0], [1], [0, 0, 1, 1], [], []>} : vector<16x64xbf16>, vector<64x64xbf16>, vector<16x64xf32> -> vector<16x64xf32>
    %460 = vector.broadcast %449 : vector<1x64xf32> to vector<16x64xf32>
    %461 = arith.addf %459, %460 : vector<16x64xf32>
    %462 = vector.extract_strided_slice %76 {offsets = [0, 0], sizes = [1, 8], strides = [1, 1]} : vector<2x8xf32> to vector<1x8xf32>
    %cst_187 = arith.constant 0.000000e+00 : f32
    %463 = vector.broadcast %cst_187 : f32 to vector<8x64xf32>
    %464 = vector.extract_strided_slice %455 {offsets = [0, 0], sizes = [8, 16], strides = [1, 1]} : vector<16x64xf32> to vector<8x16xf32>
    %465 = arith.truncf %464 : vector<8x16xf32> to vector<8x16xbf16>
    %466 = vector.extract_strided_slice %458 {offsets = [0, 0], sizes = [8, 16], strides = [1, 1]} : vector<16x64xf32> to vector<8x16xf32>
    %467 = arith.truncf %466 : vector<8x16xf32> to vector<8x16xbf16>
    %468 = vector.extract_strided_slice %461 {offsets = [0, 0], sizes = [8, 16], strides = [1, 1]} : vector<16x64xf32> to vector<8x16xf32>
    %469 = arith.truncf %468 : vector<8x16xf32> to vector<8x16xbf16>
    %cst_188 = arith.constant dense<0.000000e+00> : vector<8x8xf32>
    %470 = tpu.matmul %465, %467, %cst_188 {dimension_numbers = #tpu.dot_dimension_numbers<[1], [1], [0], [0], [0, 0, 1, 0], [], []>} : vector<8x16xbf16>, vector<8x16xbf16>, vector<8x8xf32> -> vector<8x8xf32>
    %cst_189 = arith.constant 2.500000e-01 : f32
    %471 = vector.broadcast %cst_189 : f32 to vector<8x8xf32>
    %472 = arith.mulf %470, %471 : vector<8x8xf32>
    %cst_190 = arith.constant 0.000000e+00 : f32
    %473 = vector.broadcast %cst_190 : f32 to vector<1x8xf32>
    %474 = arith.cmpf oeq, %462, %473 : vector<1x8xf32>
    %cst_191 = arith.constant -3.40282347E+38 : f32
    %475 = vector.shape_cast %474 : vector<1x8xi1> to vector<1x8xi1>
    %476 = vector.broadcast %475 : vector<1x8xi1> to vector<8x8xi1>
    %477 = vector.broadcast %cst_191 : f32 to vector<8x8xf32>
    %478 = arith.select %476, %477, %472 : vector<8x8xi1>, vector<8x8xf32>
    %cst_192 = arith.constant dense<0xFF800000> : vector<8xf32>
    %479 = vector.multi_reduction <maximumf>, %478, %cst_192 [1] : vector<8x8xf32> to vector<8xf32>
    %480 = vector.shape_cast %479 : vector<8xf32> to vector<8x1xf32>
    %481 = vector.broadcast %480 : vector<8x1xf32> to vector<8x8xf32>
    %482 = arith.subf %478, %481 : vector<8x8xf32>
    %483 = math.exp %482 : vector<8x8xf32>
    %cst_193 = arith.constant dense<0.000000e+00> : vector<8xf32>
    %484 = vector.multi_reduction <add>, %483, %cst_193 [1] : vector<8x8xf32> to vector<8xf32>
    %485 = vector.shape_cast %484 : vector<8xf32> to vector<8x1xf32>
    %486 = tpu.reciprocal %485 {approx = true} : vector<8x1xf32> -> vector<8x1xf32>
    %487 = vector.broadcast %486 : vector<8x1xf32> to vector<8x8xf32>
    %488 = arith.mulf %483, %487 : vector<8x8xf32>
    %489 = arith.truncf %488 : vector<8x8xf32> to vector<8x8xbf16>
    %cst_194 = arith.constant dense<0.000000e+00> : vector<8x16xf32>
    %490 = tpu.matmul %489, %469, %cst_194 {dimension_numbers = #tpu.dot_dimension_numbers<[1], [0], [0], [1], [0, 0, 1, 1], [], []>} : vector<8x8xbf16>, vector<8x16xbf16>, vector<8x16xf32> -> vector<8x16xf32>
    %491 = arith.truncf %490 : vector<8x16xf32> to vector<8x16xbf16>
    %492 = vector.extract_strided_slice %443 {offsets = [0, 0], sizes = [16, 64], strides = [1, 1]} : vector<64x64xbf16> to vector<16x64xbf16>
    %cst_195 = arith.constant dense<0.000000e+00> : vector<8x64xf32>
    %493 = tpu.matmul %491, %492, %cst_195 {dimension_numbers = #tpu.dot_dimension_numbers<[1], [0], [0], [1], [0, 0, 1, 1], [], []>} : vector<8x16xbf16>, vector<16x64xbf16>, vector<8x64xf32> -> vector<8x64xf32>
    %494 = arith.addf %463, %493 : vector<8x64xf32>
    %495 = vector.extract_strided_slice %455 {offsets = [0, 16], sizes = [8, 16], strides = [1, 1]} : vector<16x64xf32> to vector<8x16xf32>
    %496 = arith.truncf %495 : vector<8x16xf32> to vector<8x16xbf16>
    %497 = vector.extract_strided_slice %458 {offsets = [0, 16], sizes = [8, 16], strides = [1, 1]} : vector<16x64xf32> to vector<8x16xf32>
    %498 = arith.truncf %497 : vector<8x16xf32> to vector<8x16xbf16>
    %499 = vector.extract_strided_slice %461 {offsets = [0, 16], sizes = [8, 16], strides = [1, 1]} : vector<16x64xf32> to vector<8x16xf32>
    %500 = arith.truncf %499 : vector<8x16xf32> to vector<8x16xbf16>
    %cst_196 = arith.constant dense<0.000000e+00> : vector<8x8xf32>
    %501 = tpu.matmul %496, %498, %cst_196 {dimension_numbers = #tpu.dot_dimension_numbers<[1], [1], [0], [0], [0, 0, 1, 0], [], []>} : vector<8x16xbf16>, vector<8x16xbf16>, vector<8x8xf32> -> vector<8x8xf32>
    %cst_197 = arith.constant 2.500000e-01 : f32
    %502 = vector.broadcast %cst_197 : f32 to vector<8x8xf32>
    %503 = arith.mulf %501, %502 : vector<8x8xf32>
    %cst_198 = arith.constant 0.000000e+00 : f32
    %504 = vector.broadcast %cst_198 : f32 to vector<1x8xf32>
    %505 = arith.cmpf oeq, %462, %504 : vector<1x8xf32>
    %cst_199 = arith.constant -3.40282347E+38 : f32
    %506 = vector.shape_cast %505 : vector<1x8xi1> to vector<1x8xi1>
    %507 = vector.broadcast %506 : vector<1x8xi1> to vector<8x8xi1>
    %508 = vector.broadcast %cst_199 : f32 to vector<8x8xf32>
    %509 = arith.select %507, %508, %503 : vector<8x8xi1>, vector<8x8xf32>
    %cst_200 = arith.constant dense<0xFF800000> : vector<8xf32>
    %510 = vector.multi_reduction <maximumf>, %509, %cst_200 [1] : vector<8x8xf32> to vector<8xf32>
    %511 = vector.shape_cast %510 : vector<8xf32> to vector<8x1xf32>
    %512 = vector.broadcast %511 : vector<8x1xf32> to vector<8x8xf32>
    %513 = arith.subf %509, %512 : vector<8x8xf32>
    %514 = math.exp %513 : vector<8x8xf32>
    %cst_201 = arith.constant dense<0.000000e+00> : vector<8xf32>
    %515 = vector.multi_reduction <add>, %514, %cst_201 [1] : vector<8x8xf32> to vector<8xf32>
    %516 = vector.shape_cast %515 : vector<8xf32> to vector<8x1xf32>
    %517 = tpu.reciprocal %516 {approx = true} : vector<8x1xf32> -> vector<8x1xf32>
    %518 = vector.broadcast %517 : vector<8x1xf32> to vector<8x8xf32>
    %519 = arith.mulf %514, %518 : vector<8x8xf32>
    %520 = arith.truncf %519 : vector<8x8xf32> to vector<8x8xbf16>
    %cst_202 = arith.constant dense<0.000000e+00> : vector<8x16xf32>
    %521 = tpu.matmul %520, %500, %cst_202 {dimension_numbers = #tpu.dot_dimension_numbers<[1], [0], [0], [1], [0, 0, 1, 1], [], []>} : vector<8x8xbf16>, vector<8x16xbf16>, vector<8x16xf32> -> vector<8x16xf32>
    %522 = arith.truncf %521 : vector<8x16xf32> to vector<8x16xbf16>
    %523 = vector.extract_strided_slice %443 {offsets = [16, 0], sizes = [16, 64], strides = [1, 1]} : vector<64x64xbf16> to vector<16x64xbf16>
    %cst_203 = arith.constant dense<0.000000e+00> : vector<8x64xf32>
    %524 = tpu.matmul %522, %523, %cst_203 {dimension_numbers = #tpu.dot_dimension_numbers<[1], [0], [0], [1], [0, 0, 1, 1], [], []>} : vector<8x16xbf16>, vector<16x64xbf16>, vector<8x64xf32> -> vector<8x64xf32>
    %525 = arith.addf %494, %524 : vector<8x64xf32>
    %526 = vector.extract_strided_slice %455 {offsets = [0, 32], sizes = [8, 16], strides = [1, 1]} : vector<16x64xf32> to vector<8x16xf32>
    %527 = arith.truncf %526 : vector<8x16xf32> to vector<8x16xbf16>
    %528 = vector.extract_strided_slice %458 {offsets = [0, 32], sizes = [8, 16], strides = [1, 1]} : vector<16x64xf32> to vector<8x16xf32>
    %529 = arith.truncf %528 : vector<8x16xf32> to vector<8x16xbf16>
    %530 = vector.extract_strided_slice %461 {offsets = [0, 32], sizes = [8, 16], strides = [1, 1]} : vector<16x64xf32> to vector<8x16xf32>
    %531 = arith.truncf %530 : vector<8x16xf32> to vector<8x16xbf16>
    %cst_204 = arith.constant dense<0.000000e+00> : vector<8x8xf32>
    %532 = tpu.matmul %527, %529, %cst_204 {dimension_numbers = #tpu.dot_dimension_numbers<[1], [1], [0], [0], [0, 0, 1, 0], [], []>} : vector<8x16xbf16>, vector<8x16xbf16>, vector<8x8xf32> -> vector<8x8xf32>
    %cst_205 = arith.constant 2.500000e-01 : f32
    %533 = vector.broadcast %cst_205 : f32 to vector<8x8xf32>
    %534 = arith.mulf %532, %533 : vector<8x8xf32>
    %cst_206 = arith.constant 0.000000e+00 : f32
    %535 = vector.broadcast %cst_206 : f32 to vector<1x8xf32>
    %536 = arith.cmpf oeq, %462, %535 : vector<1x8xf32>
    %cst_207 = arith.constant -3.40282347E+38 : f32
    %537 = vector.shape_cast %536 : vector<1x8xi1> to vector<1x8xi1>
    %538 = vector.broadcast %537 : vector<1x8xi1> to vector<8x8xi1>
    %539 = vector.broadcast %cst_207 : f32 to vector<8x8xf32>
    %540 = arith.select %538, %539, %534 : vector<8x8xi1>, vector<8x8xf32>
    %cst_208 = arith.constant dense<0xFF800000> : vector<8xf32>
    %541 = vector.multi_reduction <maximumf>, %540, %cst_208 [1] : vector<8x8xf32> to vector<8xf32>
    %542 = vector.shape_cast %541 : vector<8xf32> to vector<8x1xf32>
    %543 = vector.broadcast %542 : vector<8x1xf32> to vector<8x8xf32>
    %544 = arith.subf %540, %543 : vector<8x8xf32>
    %545 = math.exp %544 : vector<8x8xf32>
    %cst_209 = arith.constant dense<0.000000e+00> : vector<8xf32>
    %546 = vector.multi_reduction <add>, %545, %cst_209 [1] : vector<8x8xf32> to vector<8xf32>
    %547 = vector.shape_cast %546 : vector<8xf32> to vector<8x1xf32>
    %548 = tpu.reciprocal %547 {approx = true} : vector<8x1xf32> -> vector<8x1xf32>
    %549 = vector.broadcast %548 : vector<8x1xf32> to vector<8x8xf32>
    %550 = arith.mulf %545, %549 : vector<8x8xf32>
    %551 = arith.truncf %550 : vector<8x8xf32> to vector<8x8xbf16>
    %cst_210 = arith.constant dense<0.000000e+00> : vector<8x16xf32>
    %552 = tpu.matmul %551, %531, %cst_210 {dimension_numbers = #tpu.dot_dimension_numbers<[1], [0], [0], [1], [0, 0, 1, 1], [], []>} : vector<8x8xbf16>, vector<8x16xbf16>, vector<8x16xf32> -> vector<8x16xf32>
    %553 = arith.truncf %552 : vector<8x16xf32> to vector<8x16xbf16>
    %554 = vector.extract_strided_slice %443 {offsets = [32, 0], sizes = [16, 64], strides = [1, 1]} : vector<64x64xbf16> to vector<16x64xbf16>
    %cst_211 = arith.constant dense<0.000000e+00> : vector<8x64xf32>
    %555 = tpu.matmul %553, %554, %cst_211 {dimension_numbers = #tpu.dot_dimension_numbers<[1], [0], [0], [1], [0, 0, 1, 1], [], []>} : vector<8x16xbf16>, vector<16x64xbf16>, vector<8x64xf32> -> vector<8x64xf32>
    %556 = arith.addf %525, %555 : vector<8x64xf32>
    %557 = vector.extract_strided_slice %455 {offsets = [0, 48], sizes = [8, 16], strides = [1, 1]} : vector<16x64xf32> to vector<8x16xf32>
    %558 = arith.truncf %557 : vector<8x16xf32> to vector<8x16xbf16>
    %559 = vector.extract_strided_slice %458 {offsets = [0, 48], sizes = [8, 16], strides = [1, 1]} : vector<16x64xf32> to vector<8x16xf32>
    %560 = arith.truncf %559 : vector<8x16xf32> to vector<8x16xbf16>
    %561 = vector.extract_strided_slice %461 {offsets = [0, 48], sizes = [8, 16], strides = [1, 1]} : vector<16x64xf32> to vector<8x16xf32>
    %562 = arith.truncf %561 : vector<8x16xf32> to vector<8x16xbf16>
    %cst_212 = arith.constant dense<0.000000e+00> : vector<8x8xf32>
    %563 = tpu.matmul %558, %560, %cst_212 {dimension_numbers = #tpu.dot_dimension_numbers<[1], [1], [0], [0], [0, 0, 1, 0], [], []>} : vector<8x16xbf16>, vector<8x16xbf16>, vector<8x8xf32> -> vector<8x8xf32>
    %cst_213 = arith.constant 2.500000e-01 : f32
    %564 = vector.broadcast %cst_213 : f32 to vector<8x8xf32>
    %565 = arith.mulf %563, %564 : vector<8x8xf32>
    %cst_214 = arith.constant 0.000000e+00 : f32
    %566 = vector.broadcast %cst_214 : f32 to vector<1x8xf32>
    %567 = arith.cmpf oeq, %462, %566 : vector<1x8xf32>
    %cst_215 = arith.constant -3.40282347E+38 : f32
    %568 = vector.shape_cast %567 : vector<1x8xi1> to vector<1x8xi1>
    %569 = vector.broadcast %568 : vector<1x8xi1> to vector<8x8xi1>
    %570 = vector.broadcast %cst_215 : f32 to vector<8x8xf32>
    %571 = arith.select %569, %570, %565 : vector<8x8xi1>, vector<8x8xf32>
    %cst_216 = arith.constant dense<0xFF800000> : vector<8xf32>
    %572 = vector.multi_reduction <maximumf>, %571, %cst_216 [1] : vector<8x8xf32> to vector<8xf32>
    %573 = vector.shape_cast %572 : vector<8xf32> to vector<8x1xf32>
    %574 = vector.broadcast %573 : vector<8x1xf32> to vector<8x8xf32>
    %575 = arith.subf %571, %574 : vector<8x8xf32>
    %576 = math.exp %575 : vector<8x8xf32>
    %cst_217 = arith.constant dense<0.000000e+00> : vector<8xf32>
    %577 = vector.multi_reduction <add>, %576, %cst_217 [1] : vector<8x8xf32> to vector<8xf32>
    %578 = vector.shape_cast %577 : vector<8xf32> to vector<8x1xf32>
    %579 = tpu.reciprocal %578 {approx = true} : vector<8x1xf32> -> vector<8x1xf32>
    %580 = vector.broadcast %579 : vector<8x1xf32> to vector<8x8xf32>
    %581 = arith.mulf %576, %580 : vector<8x8xf32>
    %582 = arith.truncf %581 : vector<8x8xf32> to vector<8x8xbf16>
    %cst_218 = arith.constant dense<0.000000e+00> : vector<8x16xf32>
    %583 = tpu.matmul %582, %562, %cst_218 {dimension_numbers = #tpu.dot_dimension_numbers<[1], [0], [0], [1], [0, 0, 1, 1], [], []>} : vector<8x8xbf16>, vector<8x16xbf16>, vector<8x16xf32> -> vector<8x16xf32>
    %584 = arith.truncf %583 : vector<8x16xf32> to vector<8x16xbf16>
    %585 = vector.extract_strided_slice %443 {offsets = [48, 0], sizes = [16, 64], strides = [1, 1]} : vector<64x64xbf16> to vector<16x64xbf16>
    %cst_219 = arith.constant dense<0.000000e+00> : vector<8x64xf32>
    %586 = tpu.matmul %584, %585, %cst_219 {dimension_numbers = #tpu.dot_dimension_numbers<[1], [0], [0], [1], [0, 0, 1, 1], [], []>} : vector<8x16xbf16>, vector<16x64xbf16>, vector<8x64xf32> -> vector<8x64xf32>
    %587 = arith.addf %556, %586 : vector<8x64xf32>
    %588 = vector.extract_strided_slice %76 {offsets = [1, 0], sizes = [1, 8], strides = [1, 1]} : vector<2x8xf32> to vector<1x8xf32>
    %cst_220 = arith.constant 0.000000e+00 : f32
    %589 = vector.broadcast %cst_220 : f32 to vector<8x64xf32>
    %590 = vector.extract_strided_slice %455 {offsets = [8, 0], sizes = [8, 16], strides = [1, 1]} : vector<16x64xf32> to vector<8x16xf32>
    %591 = arith.truncf %590 : vector<8x16xf32> to vector<8x16xbf16>
    %592 = vector.extract_strided_slice %458 {offsets = [8, 0], sizes = [8, 16], strides = [1, 1]} : vector<16x64xf32> to vector<8x16xf32>
    %593 = arith.truncf %592 : vector<8x16xf32> to vector<8x16xbf16>
    %594 = vector.extract_strided_slice %461 {offsets = [8, 0], sizes = [8, 16], strides = [1, 1]} : vector<16x64xf32> to vector<8x16xf32>
    %595 = arith.truncf %594 : vector<8x16xf32> to vector<8x16xbf16>
    %cst_221 = arith.constant dense<0.000000e+00> : vector<8x8xf32>
    %596 = tpu.matmul %591, %593, %cst_221 {dimension_numbers = #tpu.dot_dimension_numbers<[1], [1], [0], [0], [0, 0, 1, 0], [], []>} : vector<8x16xbf16>, vector<8x16xbf16>, vector<8x8xf32> -> vector<8x8xf32>
    %cst_222 = arith.constant 2.500000e-01 : f32
    %597 = vector.broadcast %cst_222 : f32 to vector<8x8xf32>
    %598 = arith.mulf %596, %597 : vector<8x8xf32>
    %cst_223 = arith.constant 0.000000e+00 : f32
    %599 = vector.broadcast %cst_223 : f32 to vector<1x8xf32>
    %600 = arith.cmpf oeq, %588, %599 : vector<1x8xf32>
    %cst_224 = arith.constant -3.40282347E+38 : f32
    %601 = vector.shape_cast %600 : vector<1x8xi1> to vector<1x8xi1>
    %602 = vector.broadcast %601 : vector<1x8xi1> to vector<8x8xi1>
    %603 = vector.broadcast %cst_224 : f32 to vector<8x8xf32>
    %604 = arith.select %602, %603, %598 : vector<8x8xi1>, vector<8x8xf32>
    %cst_225 = arith.constant dense<0xFF800000> : vector<8xf32>
    %605 = vector.multi_reduction <maximumf>, %604, %cst_225 [1] : vector<8x8xf32> to vector<8xf32>
    %606 = vector.shape_cast %605 : vector<8xf32> to vector<8x1xf32>
    %607 = vector.broadcast %606 : vector<8x1xf32> to vector<8x8xf32>
    %608 = arith.subf %604, %607 : vector<8x8xf32>
    %609 = math.exp %608 : vector<8x8xf32>
    %cst_226 = arith.constant dense<0.000000e+00> : vector<8xf32>
    %610 = vector.multi_reduction <add>, %609, %cst_226 [1] : vector<8x8xf32> to vector<8xf32>
    %611 = vector.shape_cast %610 : vector<8xf32> to vector<8x1xf32>
    %612 = tpu.reciprocal %611 {approx = true} : vector<8x1xf32> -> vector<8x1xf32>
    %613 = vector.broadcast %612 : vector<8x1xf32> to vector<8x8xf32>
    %614 = arith.mulf %609, %613 : vector<8x8xf32>
    %615 = arith.truncf %614 : vector<8x8xf32> to vector<8x8xbf16>
    %cst_227 = arith.constant dense<0.000000e+00> : vector<8x16xf32>
    %616 = tpu.matmul %615, %595, %cst_227 {dimension_numbers = #tpu.dot_dimension_numbers<[1], [0], [0], [1], [0, 0, 1, 1], [], []>} : vector<8x8xbf16>, vector<8x16xbf16>, vector<8x16xf32> -> vector<8x16xf32>
    %617 = arith.truncf %616 : vector<8x16xf32> to vector<8x16xbf16>
    %618 = vector.extract_strided_slice %443 {offsets = [0, 0], sizes = [16, 64], strides = [1, 1]} : vector<64x64xbf16> to vector<16x64xbf16>
    %cst_228 = arith.constant dense<0.000000e+00> : vector<8x64xf32>
    %619 = tpu.matmul %617, %618, %cst_228 {dimension_numbers = #tpu.dot_dimension_numbers<[1], [0], [0], [1], [0, 0, 1, 1], [], []>} : vector<8x16xbf16>, vector<16x64xbf16>, vector<8x64xf32> -> vector<8x64xf32>
    %620 = arith.addf %589, %619 : vector<8x64xf32>
    %621 = vector.extract_strided_slice %455 {offsets = [8, 16], sizes = [8, 16], strides = [1, 1]} : vector<16x64xf32> to vector<8x16xf32>
    %622 = arith.truncf %621 : vector<8x16xf32> to vector<8x16xbf16>
    %623 = vector.extract_strided_slice %458 {offsets = [8, 16], sizes = [8, 16], strides = [1, 1]} : vector<16x64xf32> to vector<8x16xf32>
    %624 = arith.truncf %623 : vector<8x16xf32> to vector<8x16xbf16>
    %625 = vector.extract_strided_slice %461 {offsets = [8, 16], sizes = [8, 16], strides = [1, 1]} : vector<16x64xf32> to vector<8x16xf32>
    %626 = arith.truncf %625 : vector<8x16xf32> to vector<8x16xbf16>
    %cst_229 = arith.constant dense<0.000000e+00> : vector<8x8xf32>
    %627 = tpu.matmul %622, %624, %cst_229 {dimension_numbers = #tpu.dot_dimension_numbers<[1], [1], [0], [0], [0, 0, 1, 0], [], []>} : vector<8x16xbf16>, vector<8x16xbf16>, vector<8x8xf32> -> vector<8x8xf32>
    %cst_230 = arith.constant 2.500000e-01 : f32
    %628 = vector.broadcast %cst_230 : f32 to vector<8x8xf32>
    %629 = arith.mulf %627, %628 : vector<8x8xf32>
    %cst_231 = arith.constant 0.000000e+00 : f32
    %630 = vector.broadcast %cst_231 : f32 to vector<1x8xf32>
    %631 = arith.cmpf oeq, %588, %630 : vector<1x8xf32>
    %cst_232 = arith.constant -3.40282347E+38 : f32
    %632 = vector.shape_cast %631 : vector<1x8xi1> to vector<1x8xi1>
    %633 = vector.broadcast %632 : vector<1x8xi1> to vector<8x8xi1>
    %634 = vector.broadcast %cst_232 : f32 to vector<8x8xf32>
    %635 = arith.select %633, %634, %629 : vector<8x8xi1>, vector<8x8xf32>
    %cst_233 = arith.constant dense<0xFF800000> : vector<8xf32>
    %636 = vector.multi_reduction <maximumf>, %635, %cst_233 [1] : vector<8x8xf32> to vector<8xf32>
    %637 = vector.shape_cast %636 : vector<8xf32> to vector<8x1xf32>
    %638 = vector.broadcast %637 : vector<8x1xf32> to vector<8x8xf32>
    %639 = arith.subf %635, %638 : vector<8x8xf32>
    %640 = math.exp %639 : vector<8x8xf32>
    %cst_234 = arith.constant dense<0.000000e+00> : vector<8xf32>
    %641 = vector.multi_reduction <add>, %640, %cst_234 [1] : vector<8x8xf32> to vector<8xf32>
    %642 = vector.shape_cast %641 : vector<8xf32> to vector<8x1xf32>
    %643 = tpu.reciprocal %642 {approx = true} : vector<8x1xf32> -> vector<8x1xf32>
    %644 = vector.broadcast %643 : vector<8x1xf32> to vector<8x8xf32>
    %645 = arith.mulf %640, %644 : vector<8x8xf32>
    %646 = arith.truncf %645 : vector<8x8xf32> to vector<8x8xbf16>
    %cst_235 = arith.constant dense<0.000000e+00> : vector<8x16xf32>
    %647 = tpu.matmul %646, %626, %cst_235 {dimension_numbers = #tpu.dot_dimension_numbers<[1], [0], [0], [1], [0, 0, 1, 1], [], []>} : vector<8x8xbf16>, vector<8x16xbf16>, vector<8x16xf32> -> vector<8x16xf32>
    %648 = arith.truncf %647 : vector<8x16xf32> to vector<8x16xbf16>
    %649 = vector.extract_strided_slice %443 {offsets = [16, 0], sizes = [16, 64], strides = [1, 1]} : vector<64x64xbf16> to vector<16x64xbf16>
    %cst_236 = arith.constant dense<0.000000e+00> : vector<8x64xf32>
    %650 = tpu.matmul %648, %649, %cst_236 {dimension_numbers = #tpu.dot_dimension_numbers<[1], [0], [0], [1], [0, 0, 1, 1], [], []>} : vector<8x16xbf16>, vector<16x64xbf16>, vector<8x64xf32> -> vector<8x64xf32>
    %651 = arith.addf %620, %650 : vector<8x64xf32>
    %652 = vector.extract_strided_slice %455 {offsets = [8, 32], sizes = [8, 16], strides = [1, 1]} : vector<16x64xf32> to vector<8x16xf32>
    %653 = arith.truncf %652 : vector<8x16xf32> to vector<8x16xbf16>
    %654 = vector.extract_strided_slice %458 {offsets = [8, 32], sizes = [8, 16], strides = [1, 1]} : vector<16x64xf32> to vector<8x16xf32>
    %655 = arith.truncf %654 : vector<8x16xf32> to vector<8x16xbf16>
    %656 = vector.extract_strided_slice %461 {offsets = [8, 32], sizes = [8, 16], strides = [1, 1]} : vector<16x64xf32> to vector<8x16xf32>
    %657 = arith.truncf %656 : vector<8x16xf32> to vector<8x16xbf16>
    %cst_237 = arith.constant dense<0.000000e+00> : vector<8x8xf32>
    %658 = tpu.matmul %653, %655, %cst_237 {dimension_numbers = #tpu.dot_dimension_numbers<[1], [1], [0], [0], [0, 0, 1, 0], [], []>} : vector<8x16xbf16>, vector<8x16xbf16>, vector<8x8xf32> -> vector<8x8xf32>
    %cst_238 = arith.constant 2.500000e-01 : f32
    %659 = vector.broadcast %cst_238 : f32 to vector<8x8xf32>
    %660 = arith.mulf %658, %659 : vector<8x8xf32>
    %cst_239 = arith.constant 0.000000e+00 : f32
    %661 = vector.broadcast %cst_239 : f32 to vector<1x8xf32>
    %662 = arith.cmpf oeq, %588, %661 : vector<1x8xf32>
    %cst_240 = arith.constant -3.40282347E+38 : f32
    %663 = vector.shape_cast %662 : vector<1x8xi1> to vector<1x8xi1>
    %664 = vector.broadcast %663 : vector<1x8xi1> to vector<8x8xi1>
    %665 = vector.broadcast %cst_240 : f32 to vector<8x8xf32>
    %666 = arith.select %664, %665, %660 : vector<8x8xi1>, vector<8x8xf32>
    %cst_241 = arith.constant dense<0xFF800000> : vector<8xf32>
    %667 = vector.multi_reduction <maximumf>, %666, %cst_241 [1] : vector<8x8xf32> to vector<8xf32>
    %668 = vector.shape_cast %667 : vector<8xf32> to vector<8x1xf32>
    %669 = vector.broadcast %668 : vector<8x1xf32> to vector<8x8xf32>
    %670 = arith.subf %666, %669 : vector<8x8xf32>
    %671 = math.exp %670 : vector<8x8xf32>
    %cst_242 = arith.constant dense<0.000000e+00> : vector<8xf32>
    %672 = vector.multi_reduction <add>, %671, %cst_242 [1] : vector<8x8xf32> to vector<8xf32>
    %673 = vector.shape_cast %672 : vector<8xf32> to vector<8x1xf32>
    %674 = tpu.reciprocal %673 {approx = true} : vector<8x1xf32> -> vector<8x1xf32>
    %675 = vector.broadcast %674 : vector<8x1xf32> to vector<8x8xf32>
    %676 = arith.mulf %671, %675 : vector<8x8xf32>
    %677 = arith.truncf %676 : vector<8x8xf32> to vector<8x8xbf16>
    %cst_243 = arith.constant dense<0.000000e+00> : vector<8x16xf32>
    %678 = tpu.matmul %677, %657, %cst_243 {dimension_numbers = #tpu.dot_dimension_numbers<[1], [0], [0], [1], [0, 0, 1, 1], [], []>} : vector<8x8xbf16>, vector<8x16xbf16>, vector<8x16xf32> -> vector<8x16xf32>
    %679 = arith.truncf %678 : vector<8x16xf32> to vector<8x16xbf16>
    %680 = vector.extract_strided_slice %443 {offsets = [32, 0], sizes = [16, 64], strides = [1, 1]} : vector<64x64xbf16> to vector<16x64xbf16>
    %cst_244 = arith.constant dense<0.000000e+00> : vector<8x64xf32>
    %681 = tpu.matmul %679, %680, %cst_244 {dimension_numbers = #tpu.dot_dimension_numbers<[1], [0], [0], [1], [0, 0, 1, 1], [], []>} : vector<8x16xbf16>, vector<16x64xbf16>, vector<8x64xf32> -> vector<8x64xf32>
    %682 = arith.addf %651, %681 : vector<8x64xf32>
    %683 = vector.extract_strided_slice %455 {offsets = [8, 48], sizes = [8, 16], strides = [1, 1]} : vector<16x64xf32> to vector<8x16xf32>
    %684 = arith.truncf %683 : vector<8x16xf32> to vector<8x16xbf16>
    %685 = vector.extract_strided_slice %458 {offsets = [8, 48], sizes = [8, 16], strides = [1, 1]} : vector<16x64xf32> to vector<8x16xf32>
    %686 = arith.truncf %685 : vector<8x16xf32> to vector<8x16xbf16>
    %687 = vector.extract_strided_slice %461 {offsets = [8, 48], sizes = [8, 16], strides = [1, 1]} : vector<16x64xf32> to vector<8x16xf32>
    %688 = arith.truncf %687 : vector<8x16xf32> to vector<8x16xbf16>
    %cst_245 = arith.constant dense<0.000000e+00> : vector<8x8xf32>
    %689 = tpu.matmul %684, %686, %cst_245 {dimension_numbers = #tpu.dot_dimension_numbers<[1], [1], [0], [0], [0, 0, 1, 0], [], []>} : vector<8x16xbf16>, vector<8x16xbf16>, vector<8x8xf32> -> vector<8x8xf32>
    %cst_246 = arith.constant 2.500000e-01 : f32
    %690 = vector.broadcast %cst_246 : f32 to vector<8x8xf32>
    %691 = arith.mulf %689, %690 : vector<8x8xf32>
    %cst_247 = arith.constant 0.000000e+00 : f32
    %692 = vector.broadcast %cst_247 : f32 to vector<1x8xf32>
    %693 = arith.cmpf oeq, %588, %692 : vector<1x8xf32>
    %cst_248 = arith.constant -3.40282347E+38 : f32
    %694 = vector.shape_cast %693 : vector<1x8xi1> to vector<1x8xi1>
    %695 = vector.broadcast %694 : vector<1x8xi1> to vector<8x8xi1>
    %696 = vector.broadcast %cst_248 : f32 to vector<8x8xf32>
    %697 = arith.select %695, %696, %691 : vector<8x8xi1>, vector<8x8xf32>
    %cst_249 = arith.constant dense<0xFF800000> : vector<8xf32>
    %698 = vector.multi_reduction <maximumf>, %697, %cst_249 [1] : vector<8x8xf32> to vector<8xf32>
    %699 = vector.shape_cast %698 : vector<8xf32> to vector<8x1xf32>
    %700 = vector.broadcast %699 : vector<8x1xf32> to vector<8x8xf32>
    %701 = arith.subf %697, %700 : vector<8x8xf32>
    %702 = math.exp %701 : vector<8x8xf32>
    %cst_250 = arith.constant dense<0.000000e+00> : vector<8xf32>
    %703 = vector.multi_reduction <add>, %702, %cst_250 [1] : vector<8x8xf32> to vector<8xf32>
    %704 = vector.shape_cast %703 : vector<8xf32> to vector<8x1xf32>
    %705 = tpu.reciprocal %704 {approx = true} : vector<8x1xf32> -> vector<8x1xf32>
    %706 = vector.broadcast %705 : vector<8x1xf32> to vector<8x8xf32>
    %707 = arith.mulf %702, %706 : vector<8x8xf32>
    %708 = arith.truncf %707 : vector<8x8xf32> to vector<8x8xbf16>
    %cst_251 = arith.constant dense<0.000000e+00> : vector<8x16xf32>
    %709 = tpu.matmul %708, %688, %cst_251 {dimension_numbers = #tpu.dot_dimension_numbers<[1], [0], [0], [1], [0, 0, 1, 1], [], []>} : vector<8x8xbf16>, vector<8x16xbf16>, vector<8x16xf32> -> vector<8x16xf32>
    %710 = arith.truncf %709 : vector<8x16xf32> to vector<8x16xbf16>
    %711 = vector.extract_strided_slice %443 {offsets = [48, 0], sizes = [16, 64], strides = [1, 1]} : vector<64x64xbf16> to vector<16x64xbf16>
    %cst_252 = arith.constant dense<0.000000e+00> : vector<8x64xf32>
    %712 = tpu.matmul %710, %711, %cst_252 {dimension_numbers = #tpu.dot_dimension_numbers<[1], [0], [0], [1], [0, 0, 1, 1], [], []>} : vector<8x16xbf16>, vector<16x64xbf16>, vector<8x64xf32> -> vector<8x64xf32>
    %713 = arith.addf %682, %712 : vector<8x64xf32>
    %714 = tpu.concatenate %587, %713 in 0 : vector<8x64xf32>, vector<8x64xf32> -> vector<16x64xf32>
    %715 = vector.broadcast %451 : vector<1x64xf32> to vector<16x64xf32>
    %716 = arith.addf %714, %715 : vector<16x64xf32>
    %717 = arith.addf %435, %716 : vector<16x64xf32>
    %c1_253 = arith.constant 1 : index
    %c0_254 = arith.constant 0 : index
    %c0_255 = arith.constant 0 : index
    %718 = vector.load %arg14[%c1_253, %c0_254, %c0_255] : memref<2x1x64xf32, #tpu.memory_space<vmem>>, vector<1x1x64xf32>
    %719 = vector.shape_cast %718 : vector<1x1x64xf32> to vector<1x64xf32>
    %c1_256 = arith.constant 1 : index
    %c0_257 = arith.constant 0 : index
    %c0_258 = arith.constant 0 : index
    %720 = vector.load %arg15[%c1_256, %c0_257, %c0_258] : memref<2x1x64xf32, #tpu.memory_space<vmem>>, vector<1x1x64xf32>
    %721 = vector.shape_cast %720 : vector<1x1x64xf32> to vector<1x64xf32>
    %cst_259 = arith.constant dense<0.000000e+00> : vector<16xf32>
    %722 = vector.multi_reduction <add>, %717, %cst_259 [1] : vector<16x64xf32> to vector<16xf32>
    %723 = vector.shape_cast %722 : vector<16xf32> to vector<16x1xf32>
    %cst_260 = arith.constant 6.400000e+01 : f32
    %724 = vector.broadcast %cst_260 : f32 to vector<16x1xf32>
    %725 = arith.divf %723, %724 : vector<16x1xf32>
    %726 = vector.broadcast %725 : vector<16x1xf32> to vector<16x64xf32>
    %727 = arith.subf %717, %726 : vector<16x64xf32>
    %728 = arith.mulf %727, %727 : vector<16x64xf32>
    %cst_261 = arith.constant dense<0.000000e+00> : vector<16xf32>
    %729 = vector.multi_reduction <add>, %728, %cst_261 [1] : vector<16x64xf32> to vector<16xf32>
    %730 = vector.shape_cast %729 : vector<16xf32> to vector<16x1xf32>
    %cst_262 = arith.constant 6.400000e+01 : f32
    %731 = vector.broadcast %cst_262 : f32 to vector<16x1xf32>
    %732 = arith.divf %730, %731 : vector<16x1xf32>
    %733 = vector.broadcast %725 : vector<16x1xf32> to vector<16x64xf32>
    %734 = arith.subf %717, %733 : vector<16x64xf32>
    %cst_263 = arith.constant 9.99999996E-13 : f32
    %735 = vector.broadcast %cst_263 : f32 to vector<16x1xf32>
    %736 = arith.addf %732, %735 : vector<16x1xf32>
    %737 = math.rsqrt %736 : vector<16x1xf32>
    %738 = vector.broadcast %737 : vector<16x1xf32> to vector<16x64xf32>
    %739 = arith.mulf %734, %738 : vector<16x64xf32>
    %740 = vector.broadcast %719 : vector<1x64xf32> to vector<16x64xf32>
    %741 = arith.mulf %739, %740 : vector<16x64xf32>
    %742 = vector.broadcast %721 : vector<1x64xf32> to vector<16x64xf32>
    %743 = arith.addf %741, %742 : vector<16x64xf32>
    %744 = arith.truncf %743 : vector<16x64xf32> to vector<16x64xbf16>
    %c1_264 = arith.constant 1 : index
    %c0_265 = arith.constant 0 : index
    %c0_266 = arith.constant 0 : index
    %745 = vector.load %arg16[%c1_264, %c0_265, %c0_266] : memref<2x64x128xbf16, #tpu.memory_space<vmem>>, vector<1x64x128xbf16>
    %746 = vector.shape_cast %745 : vector<1x64x128xbf16> to vector<64x128xbf16>
    %cst_267 = arith.constant dense<0.000000e+00> : vector<16x128xf32>
    %747 = tpu.matmul %744, %746, %cst_267 {dimension_numbers = #tpu.dot_dimension_numbers<[1], [0], [0], [1], [0, 0, 1, 1], [], []>} : vector<16x64xbf16>, vector<64x128xbf16>, vector<16x128xf32> -> vector<16x128xf32>
    %c1_268 = arith.constant 1 : index
    %c0_269 = arith.constant 0 : index
    %c0_270 = arith.constant 0 : index
    %748 = vector.load %arg17[%c1_268, %c0_269, %c0_270] : memref<2x1x128xf32, #tpu.memory_space<vmem>>, vector<1x1x128xf32>
    %749 = vector.shape_cast %748 : vector<1x1x128xf32> to vector<1x128xf32>
    %750 = vector.broadcast %749 : vector<1x128xf32> to vector<16x128xf32>
    %751 = arith.addf %747, %750 : vector<16x128xf32>
    %cst_271 = arith.constant 5.000000e-01 : f32
    %752 = vector.broadcast %cst_271 : f32 to vector<16x128xf32>
    %753 = arith.mulf %752, %751 : vector<16x128xf32>
    %cst_272 = arith.constant 0.707106769 : f32
    %754 = vector.broadcast %cst_272 : f32 to vector<16x128xf32>
    %755 = arith.mulf %751, %754 : vector<16x128xf32>
    %756 = math.erf %755 : vector<16x128xf32>
    %cst_273 = arith.constant 1.000000e+00 : f32
    %757 = vector.broadcast %cst_273 : f32 to vector<16x128xf32>
    %758 = arith.addf %757, %756 : vector<16x128xf32>
    %759 = arith.mulf %753, %758 : vector<16x128xf32>
    %760 = arith.truncf %759 : vector<16x128xf32> to vector<16x128xbf16>
    %c1_274 = arith.constant 1 : index
    %c0_275 = arith.constant 0 : index
    %c0_276 = arith.constant 0 : index
    %761 = vector.load %arg18[%c1_274, %c0_275, %c0_276] : memref<2x128x64xbf16, #tpu.memory_space<vmem>>, vector<1x128x64xbf16>
    %762 = vector.shape_cast %761 : vector<1x128x64xbf16> to vector<128x64xbf16>
    %cst_277 = arith.constant dense<0.000000e+00> : vector<16x64xf32>
    %763 = tpu.matmul %760, %762, %cst_277 {dimension_numbers = #tpu.dot_dimension_numbers<[1], [0], [0], [1], [0, 0, 1, 1], [], []>} : vector<16x128xbf16>, vector<128x64xbf16>, vector<16x64xf32> -> vector<16x64xf32>
    %c1_278 = arith.constant 1 : index
    %c0_279 = arith.constant 0 : index
    %c0_280 = arith.constant 0 : index
    %764 = vector.load %arg19[%c1_278, %c0_279, %c0_280] : memref<2x1x64xf32, #tpu.memory_space<vmem>>, vector<1x1x64xf32>
    %765 = vector.shape_cast %764 : vector<1x1x64xf32> to vector<1x64xf32>
    %766 = vector.broadcast %765 : vector<1x64xf32> to vector<16x64xf32>
    %767 = arith.addf %763, %766 : vector<16x64xf32>
    %768 = arith.addf %743, %767 : vector<16x64xf32>
    %c1_281 = arith.constant 1 : index
    %c0_282 = arith.constant 0 : index
    %c0_283 = arith.constant 0 : index
    %769 = vector.load %arg20[%c1_281, %c0_282, %c0_283] : memref<2x1x64xf32, #tpu.memory_space<vmem>>, vector<1x1x64xf32>
    %770 = vector.shape_cast %769 : vector<1x1x64xf32> to vector<1x64xf32>
    %c1_284 = arith.constant 1 : index
    %c0_285 = arith.constant 0 : index
    %c0_286 = arith.constant 0 : index
    %771 = vector.load %arg21[%c1_284, %c0_285, %c0_286] : memref<2x1x64xf32, #tpu.memory_space<vmem>>, vector<1x1x64xf32>
    %772 = vector.shape_cast %771 : vector<1x1x64xf32> to vector<1x64xf32>
    %cst_287 = arith.constant dense<0.000000e+00> : vector<16xf32>
    %773 = vector.multi_reduction <add>, %768, %cst_287 [1] : vector<16x64xf32> to vector<16xf32>
    %774 = vector.shape_cast %773 : vector<16xf32> to vector<16x1xf32>
    %cst_288 = arith.constant 6.400000e+01 : f32
    %775 = vector.broadcast %cst_288 : f32 to vector<16x1xf32>
    %776 = arith.divf %774, %775 : vector<16x1xf32>
    %777 = vector.broadcast %776 : vector<16x1xf32> to vector<16x64xf32>
    %778 = arith.subf %768, %777 : vector<16x64xf32>
    %779 = arith.mulf %778, %778 : vector<16x64xf32>
    %cst_289 = arith.constant dense<0.000000e+00> : vector<16xf32>
    %780 = vector.multi_reduction <add>, %779, %cst_289 [1] : vector<16x64xf32> to vector<16xf32>
    %781 = vector.shape_cast %780 : vector<16xf32> to vector<16x1xf32>
    %cst_290 = arith.constant 6.400000e+01 : f32
    %782 = vector.broadcast %cst_290 : f32 to vector<16x1xf32>
    %783 = arith.divf %781, %782 : vector<16x1xf32>
    %784 = vector.broadcast %776 : vector<16x1xf32> to vector<16x64xf32>
    %785 = arith.subf %768, %784 : vector<16x64xf32>
    %cst_291 = arith.constant 9.99999996E-13 : f32
    %786 = vector.broadcast %cst_291 : f32 to vector<16x1xf32>
    %787 = arith.addf %783, %786 : vector<16x1xf32>
    %788 = math.rsqrt %787 : vector<16x1xf32>
    %789 = vector.broadcast %788 : vector<16x1xf32> to vector<16x64xf32>
    %790 = arith.mulf %785, %789 : vector<16x64xf32>
    %791 = vector.broadcast %770 : vector<1x64xf32> to vector<16x64xf32>
    %792 = arith.mulf %790, %791 : vector<16x64xf32>
    %793 = vector.broadcast %772 : vector<1x64xf32> to vector<16x64xf32>
    %794 = arith.addf %792, %793 : vector<16x64xf32>
    %795 = vector.extract_strided_slice %794 {offsets = [0, 0], sizes = [1, 64], strides = [1, 1]} : vector<16x64xf32> to vector<1x64xf32>
    %796 = vector.extract_strided_slice %794 {offsets = [8, 0], sizes = [1, 64], strides = [1, 1]} : vector<16x64xf32> to vector<1x64xf32>
    %797 = tpu.concatenate %795, %796 in 0 : vector<1x64xf32>, vector<1x64xf32> -> vector<2x64xf32>
    %798 = arith.truncf %797 : vector<2x64xf32> to vector<2x64xbf16>
    %c0_292 = arith.constant 0 : index
    %c0_293 = arith.constant 0 : index
    %799 = vector.load %arg22[%c0_292, %c0_293] : memref<64x32xbf16, #tpu.memory_space<vmem>>, vector<64x32xbf16>
    %cst_294 = arith.constant dense<0.000000e+00> : vector<2x32xf32>
    %800 = tpu.matmul %798, %799, %cst_294 {dimension_numbers = #tpu.dot_dimension_numbers<[1], [0], [0], [1], [0, 0, 1, 1], [], []>} : vector<2x64xbf16>, vector<64x32xbf16>, vector<2x32xf32> -> vector<2x32xf32>
    %cst_295 = arith.constant 5.000000e-01 : f32
    %801 = vector.broadcast %cst_295 : f32 to vector<2x32xf32>
    %802 = arith.mulf %801, %800 : vector<2x32xf32>
    %cst_296 = arith.constant 0.707106769 : f32
    %803 = vector.broadcast %cst_296 : f32 to vector<2x32xf32>
    %804 = arith.mulf %800, %803 : vector<2x32xf32>
    %805 = math.erf %804 : vector<2x32xf32>
    %cst_297 = arith.constant 1.000000e+00 : f32
    %806 = vector.broadcast %cst_297 : f32 to vector<2x32xf32>
    %807 = arith.addf %806, %805 : vector<2x32xf32>
    %808 = arith.mulf %802, %807 : vector<2x32xf32>
    %809 = arith.truncf %808 : vector<2x32xf32> to vector<2x32xbf16>
    %c0_298 = arith.constant 0 : index
    %c0_299 = arith.constant 0 : index
    %810 = vector.load %arg23[%c0_298, %c0_299] : memref<32x32xbf16, #tpu.memory_space<vmem>>, vector<32x32xbf16>
    %cst_300 = arith.constant dense<0.000000e+00> : vector<2x32xf32>
    %811 = tpu.matmul %809, %810, %cst_300 {dimension_numbers = #tpu.dot_dimension_numbers<[1], [0], [0], [1], [0, 0, 1, 1], [], []>} : vector<2x32xbf16>, vector<32x32xbf16>, vector<2x32xf32> -> vector<2x32xf32>
    %812 = arith.addf %800, %811 : vector<2x32xf32>
    %c0_301 = arith.constant 0 : index
    %c0_302 = arith.constant 0 : index
    %813 = vector.load %arg24[%c0_301, %c0_302] : memref<1x32xf32, #tpu.memory_space<vmem>>, vector<1x32xf32>
    %c0_303 = arith.constant 0 : index
    %c0_304 = arith.constant 0 : index
    %814 = vector.load %arg25[%c0_303, %c0_304] : memref<1x32xf32, #tpu.memory_space<vmem>>, vector<1x32xf32>
    %cst_305 = arith.constant dense<0.000000e+00> : vector<2xf32>
    %815 = vector.multi_reduction <add>, %812, %cst_305 [1] : vector<2x32xf32> to vector<2xf32>
    %816 = vector.shape_cast %815 : vector<2xf32> to vector<2x1xf32>
    %cst_306 = arith.constant 3.200000e+01 : f32
    %817 = vector.broadcast %cst_306 : f32 to vector<2x1xf32>
    %818 = arith.divf %816, %817 : vector<2x1xf32>
    %819 = vector.broadcast %818 : vector<2x1xf32> to vector<2x32xf32>
    %820 = arith.subf %812, %819 : vector<2x32xf32>
    %821 = arith.mulf %820, %820 : vector<2x32xf32>
    %cst_307 = arith.constant dense<0.000000e+00> : vector<2xf32>
    %822 = vector.multi_reduction <add>, %821, %cst_307 [1] : vector<2x32xf32> to vector<2xf32>
    %823 = vector.shape_cast %822 : vector<2xf32> to vector<2x1xf32>
    %cst_308 = arith.constant 3.200000e+01 : f32
    %824 = vector.broadcast %cst_308 : f32 to vector<2x1xf32>
    %825 = arith.divf %823, %824 : vector<2x1xf32>
    %826 = vector.broadcast %818 : vector<2x1xf32> to vector<2x32xf32>
    %827 = arith.subf %812, %826 : vector<2x32xf32>
    %cst_309 = arith.constant 9.99999974E-6 : f32
    %828 = vector.broadcast %cst_309 : f32 to vector<2x1xf32>
    %829 = arith.addf %825, %828 : vector<2x1xf32>
    %830 = math.rsqrt %829 : vector<2x1xf32>
    %831 = vector.broadcast %830 : vector<2x1xf32> to vector<2x32xf32>
    %832 = arith.mulf %827, %831 : vector<2x32xf32>
    %833 = vector.broadcast %813 : vector<1x32xf32> to vector<2x32xf32>
    %834 = arith.mulf %832, %833 : vector<2x32xf32>
    %835 = vector.broadcast %814 : vector<1x32xf32> to vector<2x32xf32>
    %836 = arith.addf %834, %835 : vector<2x32xf32>
    %837 = arith.mulf %836, %836 : vector<2x32xf32>
    %cst_310 = arith.constant dense<0.000000e+00> : vector<2xf32>
    %838 = vector.multi_reduction <add>, %837, %cst_310 [1] : vector<2x32xf32> to vector<2xf32>
    %839 = vector.shape_cast %838 : vector<2xf32> to vector<2x1xf32>
    %cst_311 = arith.constant 9.99999996E-13 : f32
    %840 = vector.broadcast %cst_311 : f32 to vector<2x1xf32>
    %841 = arith.addf %839, %840 : vector<2x1xf32>
    %842 = math.rsqrt %841 : vector<2x1xf32>
    %843 = vector.broadcast %842 : vector<2x1xf32> to vector<2x32xf32>
    %844 = arith.mulf %836, %843 : vector<2x32xf32>
    %cst_312 = arith.constant 0.000000e+00 : f32
    %845 = vector.broadcast %cst_312 : f32 to vector<2x96xf32>
    %846 = tpu.concatenate %844, %845 in 1 : vector<2x32xf32>, vector<2x96xf32> -> vector<2x128xf32>
    %c0_313 = arith.constant 0 : index
    %c0_314 = arith.constant 0 : index
    %847 = vector.load %arg26[%c0_313, %c0_314] : memref<2x128xf32, #tpu.memory_space<vmem>>, vector<2x128xf32>
    tpu.vector_store %arg26[%c0_313, %c0_314], %846 {strides = array<i32>} : memref<2x128xf32, #tpu.memory_space<vmem>>, vector<2x128xf32>,
    return
  }
}

</mosaic_0001>

<bundles_post_ra>
// kernel: text_encoder_bert.1
= control target key start
LH: loop header
LB: loop body
LE: loop exit
PB: predicated region body
PF: predicated region fallthrough
CT: control target
= control target key end

     0   :  { %s6331_s0 = inlined_call_operand.vmem [shape: s32[16], index: 0, kind: input, shape index: {}]   ;;  %s6332_s1 = inlined_call_operand.vmem [shape: f32[2,8], index: 1, kind: input, shape index: {}]   ;;  %s6333_s2 = inlined_call_operand.vmem [shape: f32[128,64], index: 2, kind: input, shape index: {}]   ;;  %s6334_s3 = inlined_call_operand.vmem [shape: f32[8,64], index: 3, kind: input, shape index: {}]   ;;  %s6335_s4 = inlined_call_operand.vmem [shape: f32[1,64], index: 4, kind: input, shape index: {}]   ;;  %s6336_s5 = inlined_call_operand.vmem [shape: f32[1,64], index: 5, kind: input, shape index: {}]   ;;  %s6337_s6 = inlined_call_operand.vmem [shape: bf16[2,64,64], index: 6, kind: input, shape index: {}]   ;;  %s6338_s7 = inlined_call_operand.vmem [shape: f32[2,1,64], index: 7, kind: input, shape index: {}]   ;;  %s6339_s8 = inlined_call_operand.vmem [shape: bf16[2,64,64], index: 8, kind: input, shape index: {}]   ;;  %s6340_s9 = inlined_call_operand.vmem [shape: f32[2,1,64], index: 9, kind: input, shape index: {}]   ;;  %s6341_s10 = inlined_call_operand.vmem [shape: bf16[2,64,64], index: 10, kind: input, shape index: {}]   ;;  %s6342_s11 = inlined_call_operand.vmem [shape: f32[2,1,64], index: 11, kind: input, shape index: {}]   ;;  %s6343_s12 = inlined_call_operand.vmem [shape: bf16[2,64,64], index: 12, kind: input, shape index: {}]   ;;  %s6344_s13 = inlined_call_operand.vmem [shape: f32[2,1,64], index: 13, kind: input, shape index: {}]   ;;  %s6345_s14 = inlined_call_operand.vmem [shape: f32[2,1,64], index: 14, kind: input, shape index: {}]   ;;  %s6346_s15 = inlined_call_operand.vmem [shape: f32[2,1,64], index: 15, kind: input, shape index: {}]   ;;  %s6347_s16 = inlined_call_operand.vmem [shape: bf16[2,64,128], index: 16, kind: input, shape index: {}]   ;;  %s6348_s17 = inlined_call_operand.vmem [shape: f32[2,1,128], index: 17, kind: input, shape index: {}]   ;;  %s6349_s18 = inlined_call_operand.vmem [shape: bf16[2,128,64], index: 18, kind: input, shape index: {}]   ;;  %s6350_s19 = inlined_call_operand.vmem [shape: f32[2,1,64], index: 19, kind: input, shape index: {}]   ;;  %s6351_s20 = inlined_call_operand.vmem [shape: f32[2,1,64], index: 20, kind: input, shape index: {}]   ;;  %s6352_s21 = inlined_call_operand.vmem [shape: f32[2,1,64], index: 21, kind: input, shape index: {}]   ;;  %s6353_s22 = inlined_call_operand.vmem [shape: bf16[64,32], index: 22, kind: input, shape index: {}]   ;;  %s6354_s23 = inlined_call_operand.vmem [shape: bf16[32,32], index: 23, kind: input, shape index: {}]   ;;  %s6355_s24 = inlined_call_operand.vmem [shape: f32[1,32], index: 24, kind: input, shape index: {}]   ;;  %s6356_s25 = inlined_call_operand.vmem [shape: f32[1,32], index: 25, kind: input, shape index: {}]   ;;  %s6357_s26 = inlined_call_operand.hbm [shape: f32[2,128], index: 26, kind: output, shape index: {}]  }
   0x1   :  { %6374 = sst [smem:[#allocation8_spill]] %s6331_s0 }
   0x2   :  { %6375 = sst [smem:[#allocation9_spill]] %s6332_s1 }
   0x3   :  { %6376 = sst [smem:[#allocation10_spill]] %s6333_s2 }
   0x4   :  { %6377 = sst [smem:[#allocation11_spill]] %s6334_s3 }
   0x5   :  { %6378 = sst [smem:[#allocation12_spill]] %s6335_s4 }
   0x6   :  { %6379 = sst [smem:[#allocation13_spill]] %s6336_s5 }
   0x7   :  { %6380 = sst [smem:[#allocation14_spill]] %s6337_s6 }
   0x8   :  { %6381 = sst [smem:[#allocation15_spill]] %s6338_s7 }
   0x9   :  { %6382 = sst [smem:[#allocation16_spill]] %s6339_s8 }
   0xa   :  { %6383 = sst [smem:[#allocation17_spill]] %s6340_s9 }
   0xb   :  { %6384 = sst [smem:[#allocation18_spill]] %s6341_s10 }
   0xc   :  { %6385 = sst [smem:[#allocation19_spill]] %s6345_s14 }
   0xd   :  { %6386 = sst [smem:[#allocation20_spill]] %s6346_s15 }
   0xe   :  { %6387 = sst [smem:[#allocation21_spill]] %s6348_s17 }
   0xf   :  { %6388 = sst [smem:[#allocation22_spill]] %s6349_s18 }
  0x10   :  { %6389 = sst [smem:[#allocation23_spill]] %s6350_s19 }
  0x11   :  { %6390 = sst [smem:[#allocation24_spill]] %s6351_s20 }
  0x12   :  { %6391 = sst [smem:[#allocation25_spill]] %s6352_s21 }
  0x13   :  { %6392 = sst [smem:[#allocation26_spill]] %s6353_s22 }
  0x14   :  { %6393 = sst [smem:[#allocation27_spill]] %s6354_s23 }
  0x15   :  { %6394 = sst [smem:[#allocation28_spill]] %s6355_s24 }
  0x16   :  { %6395 = sst [smem:[#allocation29_spill]] %s6356_s25 }
  0x17   :  { %6396 = sst [smem:[#allocation30_spill]] %s6357_s26 }
  0x18   :  { %31 = vsyncpa [#allocation4], 0 }
  0x19   :  { %32 = vsyncpa [#allocation3], 0  ;;  %s6397_s7 = sld [smem:[#allocation8_spill]] }
  0x1f   :  { %s39_s28 = sshll.u32 %s6397_s7, 4  ;;  %s40_s28 = int_to_ptr.vmem [resolvable:$true] %s39_s28 }
  0x20   :  { %s5178_s8 = scalar_lea.vmem %s40_s28, 16  ;;  %p5183_p1 = scmp.lt.s32.totalorder %s40_s28, %s40_s28 }
  0x21   :  { %p5179_p0 = scmp.ne.s32.totalorder %s40_s28, %s5178_s8  ;;  %p5184_p2 = scmp.lt.s32.totalorder %s5178_s8, %s5178_s8 }
  0x23   :  { %p5185_p3 = por %p5184_p2, %p5183_p1 }
  0x25   :  { %p5186_p4 = pnand %p5185_p3, %p5179_p0 }
  0x27   :  { %5189 = shalt.err (!%p5186_p4)
}
  0x28   :  { %s5216_s4 = smov [#allocation2]  }
  0x29   :  { %42 = dma.vmem_to_smem %s40_s28, 16, %s5216_s4, [#allocation4]  }
  0x2a   :  { %5212 = dma.done.wait [#allocation4], 16  }
  0x2b   :  { %5213 = vsyncadd [#allocation4], 4294967280 }
  0x2c   :  { %96 = sfence }
  0x2d   :  { %s98_s29 = sld [smem:[#allocation2]]  ;;  %s4179_s0 = sld [smem:[#allocation2 + $0x1]]  ;;  %vm188_vm0 = vcmask 1040384   ;;  %vm190_vm1 = vcmask 1041408   ;;  %vm192_vm2 = vcmask 1042432   ;;  %vm194_vm3 = vcmask 1043456  }
  0x2e   :  { %s4180_s9 = sld [smem:[#allocation2 + $0x2]]  ;;  %s4181_s30 = sld [smem:[#allocation2 + $0x3]]  ;;  %vm196_vm4 = vcmask 1044480   ;;  %vm198_vm5 = vcmask 1045504   ;;  %vm200_vm6 = vcmask 1046528   ;;  %vm214_vm7 = vcmask 523264  }
  0x2f   :  { %s4182_s2 = sld [smem:[#allocation2 + $0x4]]  ;;  %s4183_s5 = sld [smem:[#allocation2 + $0x5]]  ;;  %v5217_v60 = vmov 0.0   ;;  %vm5218_vm8 = vmmov 0   ;;  %vm515_vm9 = vcmask 130048   ;;  %vm571_vm12 = vcmask 64512  }
  0x30   :  { %s4184_s10 = sld [smem:[#allocation2 + $0x6]]  ;;  %s4185_s6 = sld [smem:[#allocation2 + $0x7]]  ;;  %4566 = vmatprep.subr.bf16.mxu0 %v5217_v60  ;;  %4578 = vmatprep.subr.bf16.mxu1 %v5217_v60  ;;  %vm4063_vm14 = vcmask 261120   ;;  %vm4110_vm15 = vcmask 254976  }
  0x31   :  { %s5362_s1 = sld [smem:[#allocation2 + $0x8]]  ;;  %s5364_s27 = sld [smem:[#allocation2 + $0x9]]  ;;  %4574 = vmatprep.mubr.msk.bf16.mxu0 %vm5218_vm8, %v5217_v60  ;;  %4586 = vmatprep.mubr.msk.bf16.mxu1 %vm5218_vm8, %v5217_v60 }
  0x32   :  { %s5366_s3 = sld [smem:[#allocation2 + $0xa]]  ;;  %s5368_s7 = sld [smem:[#allocation2 + $0xb]] }
  0x33   :  { %s6398_s4 = sld [smem:[#allocation10_spill]]  ;;  %s6399_s28 = sld [smem:[#allocation11_spill]] }
  0x34   :  { %s4191_s24 = sld [smem:[#allocation2 + $0xd]]  ;;  %s6407_s19 = sld [smem:[#allocation9_spill]] }
  0x35   :  { %s6408_s18 = sld [smem:[#allocation22_spill]] }
  0x39   :  { %s99_s26 = scalar_lea.vmem %s6398_s4, %s98_s29  ;;  %s102_s23 = scalar_lea.vmem %s6398_s4, %s4179_s0  ;;  %v209_v20 = vld [vmem:[%s6399_s28] sm:$0xff] }
  0x3a   :  { %v100_v0 = vld [vmem:[%s99_s26] sm:$0x1]  ;;  %s105_s20 = scalar_lea.vmem %s6398_s4, %s4180_s9  ;;  %s108_s15 = scalar_lea.vmem %s6398_s4, %s4181_s30 }
  0x3b   :  { %v103_v1 = vld [vmem:[%s102_s23] sm:$0x1]  ;;  %s111_s29 = scalar_lea.vmem %s6398_s4, %s4182_s2  ;;  %s114_s23 = scalar_lea.vmem %s6398_s4, %s4183_s5 }
  0x3c   :  { %v106_v2 = vld [vmem:[%s105_s20] sm:$0x1]  ;;  %v147_v4 = vrot.slane %v103_v1, 7  ;;  %s117_s17 = scalar_lea.vmem %s6398_s4, %s4184_s10  ;;  %s120_s14 = scalar_lea.vmem %s6398_s4, %s4185_s6 }
  0x3d   :  { %v109_v3 = vld [vmem:[%s108_s15] sm:$0x1]  ;;  %v150_v7 = vrot.slane %v106_v2, 6  ;;  %s123_s25 = scalar_lea.vmem %s6398_s4, %s5362_s1  ;;  %s126_s9 = scalar_lea.vmem %s6398_s4, %s5364_s27 }
  0x3e   :  { %v112_v5 = vld [vmem:[%s111_s29] sm:$0x1]  ;;  %v153_v8 = vrot.slane %v109_v3, 5  ;;  %v189_v13 = vsel %vm188_vm0, %v100_v0, %v147_v4  ;;  %s129_s5 = scalar_lea.vmem %s6398_s4, %s5366_s3  ;;  %s132_s8 = scalar_lea.vmem %s6398_s4, %s5368_s7 }
  0x3f   :  { %v115_v6 = vld [vmem:[%s114_s23] sm:$0x1]  ;;  %v156_v11 = vrot.slane %v112_v5, 4  ;;  %v191_v16 = vsel %vm190_vm1, %v189_v13, %v150_v7  ;;  %s4190_s27 = sld [smem:[#allocation2 + $0xc]]  ;;  %s4192_s23 = sld [smem:[#allocation2 + $0xe]] }
  0x40   :  { %v118_v9 = vld [vmem:[%s117_s17] sm:$0x1]  ;;  %v159_v12 = vrot.slane %v115_v6, 3  ;;  %v193_v19 = vsel %vm192_vm2, %v191_v16, %v153_v8  ;;  %s4193_s3 = sld [smem:[#allocation2 + $0xf]]  ;;  %s138_s15 = scalar_lea.vmem %s6398_s4, %s4191_s24 }
  0x41   :  { %v121_v10 = vld [vmem:[%s120_s14] sm:$0x1]  ;;  %v162_v14 = vrot.slane %v118_v9, 2  ;;  %v195_v23 = vsel %vm194_vm3, %v193_v19, %v156_v11  ;;  %s6400_s30 = sld [smem:[#allocation14_spill]]  ;;  %s6401_s10 = sld [smem:[#allocation16_spill]] }
  0x42   :  { %v165_v15 = vrot.slane %v121_v10, 1  ;;  %v124_v17 = vld [vmem:[%s123_s25] sm:$0x1]  ;;  %v197_v26 = vsel %vm196_vm4, %v195_v23, %v159_v12  ;;  %s6405_s28 = sld [smem:[#allocation15_spill]]  ;;  %s5222_s26 = smov 80  }
  0x43   :  { %v127_v18 = vld [vmem:[%s126_s9] sm:$0x1]  ;;  %v199_v28 = vsel %vm198_vm5, %v197_v26, %v162_v14  ;;  %s6409_s2 = sld [smem:[#allocation19_spill]]  ;;  %s6412_s29 = sld [smem:[#allocation23_spill]] }
  0x44   :  { %v130_v21 = vld [vmem:[%s129_s5] sm:$0x1]  ;;  %v168_v24 = vrot.slane %v127_v18, 7  ;;  %v201_v30 = vsel %vm200_vm6, %v199_v28, %v165_v15  ;;  %s6411_s5 = sld [smem:[#allocation21_spill]]  ;;  %s6413_s7 = sld [smem:[#allocation24_spill]] }
  0x45   :  { %v133_v22 = vld [vmem:[%s132_s8] sm:$0x1]  ;;  %v171_v25 = vrot.slane %v130_v21, 6  ;;  %v210_v32 = vadd.f32 %v209_v20, %v201_v30  ;;  %s135_s22 = scalar_lea.vmem %s6398_s4, %s4190_s27  ;;  %s141_s20 = scalar_lea.vmem %s6398_s4, %s4192_s23 }
  0x46   :  { %v174_v27 = vrot.slane %v133_v22, 5  ;;  %v202_v29 = vsel %vm188_vm0, %v124_v17, %v168_v24  ;;  %v136_v34 = vld [vmem:[%s135_s22] sm:$0x1]  ;;  %s144_s0 = scalar_lea.vmem %s6398_s4, %s4193_s3  ;;  %s6406_s23 = sld [smem:[#allocation17_spill]] }
  0x47   :  { %v203_v31 = vsel %vm190_vm1, %v202_v29, %v171_v25  ;;  %v215_v33 = vsel %vm214_vm7, %v210_v32, 0.0  ;;  %v139_v36 = vld [vmem:[%s138_s15] sm:$0x1]  ;;  %v177_v38 = vrot.slane %v136_v34, 4  ;;  %v5020_v62 = vld [vmem:[%s6400_s30 + $0x8] sm:$0xff]   ;;  %v5022_v0 = vld [vmem:[%s6400_s30 + $0x10] sm:$0xff]  }
  0x48   :  { %v204_v35 = vsel %vm192_vm2, %v203_v31, %v174_v27  ;;  %216 = vadd.xlane.f32.xlu0 %v215_v33  ;;  %v142_v37 = vld [vmem:[%s141_s20] sm:$0x1]  ;;  %v180_v40 = vrot.slane %v139_v36, 3  ;;  %v5021_v63 = vld [vmem:[%s6401_s10 + $0x8] sm:$0xff]   ;;  %v5023_v1 = vld [vmem:[%s6401_s10 + $0x10] sm:$0xff]   ;;  %s6402_s15 = sld [smem:[#allocation12_spill]] }
  0x49   :  { %v145_v39 = vld [vmem:[%s144_s0] sm:$0x1]  ;;  %v183_v41 = vrot.slane %v142_v37, 2  ;;  %v205_v43 = vsel %vm194_vm3, %v204_v35, %v177_v38  ;;  %v5024_v2 = vld [vmem:[%s6400_s30 + $0x18] sm:$0xff]   ;;  %s6403_s20 = sld [smem:[#allocation13_spill]]  ;;  %s6404_s0 = sld [smem:[#allocation18_spill]] }
  0x4a   :  { %v186_v42 = vrot.slane %v145_v39, 1  ;;  %v206_v44 = vsel %vm196_vm4, %v205_v43, %v180_v40  ;;  %v5018_v59 = vld [vmem:[%s6400_s30] sm:$0xff]   ;;  %v5025_v3 = vld [vmem:[%s6401_s10 + $0x18] sm:$0xff]   ;;  %s5219_s3 = smov 112   ;;  %s6410_s8 = sld [smem:[#allocation20_spill]] }
  0x4b   :  { %v207_v45 = vsel %vm198_vm5, %v206_v44, %v183_v41  ;;  %v5019_v61 = vld [vmem:[%s6401_s10] sm:$0xff]   ;;  %4567 = vmatpush3.bf16.msra.mxu0 %v5018_v59  ;;  %s6414_s17 = sld [smem:[#allocation25_spill]]  ;;  %s6415_s6 = sld [smem:[#allocation26_spill]] }
  0x4c   :  { %v208_v46 = vsel %vm200_vm6, %v207_v45, %v186_v42  ;;  %4579 = vmatpush3.bf16.msra.mxu1 %v5019_v61  ;;  %4568 = vmatprep.subr.bf16.mxu0 %v5217_v60  ;;  %v4196_v25 = vld [vmem:[%s6405_s28] ss:$0 sm:$0xff]  ;;  %s6416_s22 = sld [smem:[#allocation27_spill]]  ;;  %s6417_s14 = sld [smem:[#allocation28_spill]] }
  0x4d   :  { %v211_v47 = vadd.f32 %v209_v20, %v208_v46  ;;  %4580 = vmatprep.subr.bf16.mxu1 %v5217_v60  ;;  %v4202_v26 = vld [vmem:[%s6406_s23] ss:$0 sm:$0xff] }
  0x4e   :  { %v4194_v12 = vld [vmem:[%s6402_s15] ss:$0 sm:$0xff]  ;;  %s5221_s15 = smov 96  }
  0x4f   :  { %v218_v48 = vsel %vm214_vm7, %v211_v47, 0.0  ;;  %4569 = vmatpush3.bf16.msra.mxu0 %v5020_v62  ;;  %v4195_v16 = vld [vmem:[%s6403_s20] ss:$0 sm:$0xff]  ;;  %v5027_v22 = vld [vmem:[%s6404_s0 + $0x8] sm:$0xff]   ;;  %v5028_v23 = vld [vmem:[%s6404_s0 + $0x10] sm:$0xff]  }
  0x50   :  { %219 = vadd.xlane.f32.xlu0 %v218_v48  ;;  %4581 = vmatpush3.bf16.msra.mxu1 %v5021_v63  ;;  %v5026_v20 = vld [vmem:[%s6404_s0] sm:$0xff]   ;;  %v5029_v24 = vld [vmem:[%s6404_s0 + $0x18] sm:$0xff]  }
  0x51   :  { %4570 = vmatprep.subr.bf16.mxu0 %v5217_v60  ;;  %4582 = vmatprep.subr.bf16.mxu1 %v5217_v60  ;;  %v4208_v42 = vld [vmem:[%s6342_s11] ss:$0 sm:$0xff] }
  0x53   :  { %4571 = vmatpush3.bf16.msra.mxu0 %v5022_v0 }
  0x54   :  { %4583 = vmatpush3.bf16.msra.mxu1 %v5023_v1  ;;  %4572 = vmatprep.subr.bf16.mxu0 %v5217_v60 }
  0x55   :  { %4584 = vmatprep.subr.bf16.mxu1 %v5217_v60 }
  0x57   :  { %4573 = vmatpush3.bf16.msra.mxu0 %v5024_v2 }
  0x58   :  { %4585 = vmatpush3.bf16.msra.mxu1 %v5025_v3  ;;  %4590 = vmatprep.subr.bf16.mxu0 %v5217_v60 }
  0x59   :  { %4602 = vmatprep.subr.bf16.mxu1 %v5217_v60 }
  0xd5   :  { %v217_v49 = vpop.xlane.xlu0 %216 }
  0xd6   :  { %v222_v50 = vmul.f32 0.015625, %v217_v49 }
  0xd8   :  { %v224_v51 = vsub.f32 %v210_v32, %v222_v50 }
  0xda   :  { %v226_v52 = vmul.f32 %v224_v51, %v224_v51 }
  0xdc   :  { %v228_v53 = vsel %vm214_vm7, %v226_v52, 0.0 }
  0xdd   :  { %229 = vadd.xlane.f32.xlu1 %v228_v53  ;;  %v220_v54 = vpop.xlane.xlu0 %219 }
  0xde   :  { %v223_v55 = vmul.f32 0.015625, %v220_v54  ;;  %v565_v54 = vlaneseq }
  0xe0   :  { %v225_v56 = vsub.f32 %v211_v47, %v223_v55  ;;  %v258_v55 = vld [vmem:[%s6407_s19] sm:$0x3] }
  0xe1   :  { %vm563_vm10 = vcmp.eq.f32.partialorder %v258_v55, 0.0 }
  0xe2   :  { %v227_v57 = vmul.f32 %v225_v56, %v225_v56 }
  0xe4   :  { %v231_v58 = vsel %vm214_vm7, %v227_v57, 0.0 }
  0xe5   :  { %232 = vadd.xlane.f32.xlu1 %v231_v58  ;;  %v5220_v58 = vmov 0  }
  0xe6   :  { %v5564_v59 = vsel %vm563_vm10, 1, %v5220_v58 }
 0x16a   :  { %v230_v4 = vpop.xlane.xlu1 %229 }
 0x16b   :  { %v234_v5 = vmul.f32 0.015625, %v230_v4 }
 0x16d   :  { %v236_v6 = vadd.f32 1e-12, %v234_v5 }
 0x16f   :  { %5080 = vrsqrt.f32 %v236_v6 }
 0x172   :  { %v233_v7 = vpop.xlane.xlu1 %232 }
 0x173   :  { %v235_v8 = vmul.f32 0.015625, %v233_v7 }
 0x175   :  { %v237_v9 = vadd.f32 1e-12, %v235_v8 }
 0x177   :  { %5082 = vrsqrt.f32 %v237_v9 }
 0x179   :  { %v5081_v10 = vpop.eup %5080 }
 0x17a   :  { %v240_v11 = vmul.f32 %v5081_v10, %v224_v51 }
 0x17c   :  { %v248_v15 = vmul.f32 %v4194_v12, %v240_v11 }
 0x17e   :  { %v5487_v18 = vadd.f32 %v4195_v16, %v248_v15 }
 0x181   :  { %v5083_v13 = vpop.eup %5082 }
 0x182   :  { %v241_v14 = vmul.f32 %v5083_v13, %v225_v56  ;;  %v5561_v56 = vshrl.u32 %v565_v54, 7 }
 0x184   :  { %v249_v17 = vmul.f32 %v4194_v12, %v241_v14  ;;  %v567_v57 = vsub.s32 0, %v5561_v56 }
 0x186   :  { %v5489_v19 = vadd.f32 %v4195_v16, %v249_v17  ;;  %v5567_v61 = vrot.slane %v5564_v59, %v567_v57 }
 0x188   :  { %v295_v21 = vpack.c.bf16 %v5489_v19, %v5487_v18  ;;  %vm569_vm11 = vcmp.eq.s32.totalorder %v5567_v61, 1 }
 0x18a   :  { %4575 = vmatmul.mubr.msk.bf16.vlgmr.msra.gmra.mrb[0].mxu0 %vm214_vm7, %v295_v21  ;;  %4587 = vmatmul.mubr.msk.bf16.vlgmr.msra.gmra.mrb[0].mxu1 %vm214_vm7, %v295_v21 }
 0x18b   :  { %4591 = vmatpush3.bf16.msra.mxu0 %v5026_v20  ;;  %4598 = vmatprep.mubr.msk.bf16.mxu0 %vm5218_vm8, %v5217_v60 }
 0x18c   :  { %4592 = vmatprep.subr.bf16.mxu0 %v5217_v60  ;;  %4604 = vmatprep.mubr.msk.bf16.mxu1 %vm5218_vm8, %v5217_v60 }
 0x18f   :  { %4593 = vmatpush3.bf16.msra.mxu0 %v5027_v22 }
 0x190   :  { %4594 = vmatprep.subr.bf16.mxu0 %v5217_v60 }
 0x193   :  { %4595 = vmatpush3.bf16.msra.mxu0 %v5028_v23 }
 0x194   :  { %4596 = vmatprep.subr.bf16.mxu0 %v5217_v60 }
 0x197   :  { %4597 = vmatpush3.bf16.msra.mxu0 %v5029_v24 }
 0x198   :  { %4614 = vmatprep.subr.bf16.mxu0 %v5217_v60 }
 0x19a   :  { %4599 = vmatmul.mubr.msk.bf16.vlgmr.msra.gmra.mrb[4].mxu0 %vm214_vm7, %v295_v21 }
 0x19b   :  { %4616 = vmatprep.mubr.msk.bf16.mxu0 %vm5218_vm8, %v5217_v60 }
 0x25d   :  { %v363_v27 = vpop.f32.mrb[0].mxu0  ;;  %v434_v28 = vpop.f32.mrb[0].mxu1 }
 0x25e   :  { %v364_v29 = vadd.f32 %v4196_v25, %v363_v27  ;;  %v435_v30 = vadd.f32 %v4202_v26, %v434_v28  ;;  %v4576_v31 = vpop.f32.mrb[1].mxu0  ;;  %v4588_v32 = vpop.f32.mrb[1].mxu1 }
 0x25f   :  { %v366_v33 = vpop.f32.mrb[2].mxu0  ;;  %v437_v34 = vpop.f32.mrb[2].mxu1 }
 0x260   :  { %v5524_v35 = vpack.c.bf16 %v364_v29, %v364_v29  ;;  %v5526_v36 = vpack.c.bf16 %v435_v30, %v435_v30  ;;  %v5528_v37 = vadd.f32 %v4196_v25, %v366_v33  ;;  %v5530_v38 = vadd.f32 %v4202_v26, %v437_v34  ;;  %v4577_v39 = vpop.f32.mrb[3].mxu0  ;;  %v4589_v40 = vpop.f32.mrb[3].mxu1  ;;  %v5592_v30 = vld [vmem:[%s6343_s12 + $0x8] sm:$0xff]   ;;  %v5599_v34 = vld [vmem:[%s6343_s12] sm:$0xff]  }
 0x262   :  { %635 = vrot.lane.b32.xlu0 %v5526_v36, %s5219_s3  ;;  %632 = vrot.lane.b32.xlu1 %v5524_v35, %s5219_s3  ;;  %v520_v41 = vsel %vm515_vm9, %v5526_v36, 0 }
 0x263   :  { %4603 = vmatpush3.bf16.xpose.msra.mxu1 %v520_v41 }
 0x264   :  { %4608 = vmatprep.subr.bf16.mxu1 %v5217_v60 }
 0x26a   :  { %4605 = vmatmul.mubr.msk.bf16.vlgmr.msra.gmra.mrb[4].mxu1 %vm515_vm9, %v5524_v35 }
 0x26b   :  { %4610 = vmatprep.mubr.msk.bf16.mxu1 %vm5218_vm8, %v5217_v60 }
 0x26d   :  { %v505_v43 = vpop.f32.mrb[4].mxu0 }
 0x26e   :  { %v506_v44 = vadd.f32 %v4208_v42, %v505_v43  ;;  %v4600_v45 = vpop.f32.mrb[5].mxu0 }
 0x26f   :  { %v508_v46 = vpop.f32.mrb[6].mxu0 }
 0x270   :  { %v5546_v47 = vpack.c.bf16 %v506_v44, %v506_v44  ;;  %v5548_v48 = vadd.f32 %v4208_v42, %v508_v46  ;;  %v4601_v49 = vpop.f32.mrb[7].mxu0 }
 0x272   :  { %v588_v50 = vsel %vm194_vm3, %v5546_v47, 0 }
 0x273   :  { %4609 = vmatpush3.bf16.msra.mxu1 %v588_v50 }
 0x274   :  { %4620 = vmatprep.subr.bf16.mxu1 %v5217_v60 }
 0x2d4   :  { %v636_v51 = vpop.permute.xlu0 %635  ;;  %v633_v53 = vpop.permute.xlu1 %632 }
 0x2d5   :  { %v641_v52 = vsel %vm515_vm9, %v636_v51, 0 }
 0x2d6   :  { %4615 = vmatpush3.bf16.xpose.msra.mxu0 %v641_v52 }
 0x2d7   :  { %4626 = vmatprep.subr.bf16.mxu0 %v5217_v60 }
 0x2dd   :  { %4617 = vmatmul.mubr.msk.bf16.vlgmr.msra.gmra.mrb[8].mxu0 %vm515_vm9, %v633_v53 }
 0x2de   :  { %4628 = vmatprep.mubr.msk.bf16.mxu0 %vm5218_vm8, %v5217_v60  ;;  %4627 = vmatpush3.bf16.msra.mxu0 %v5592_v30 }
 0x2df   :  { %4638 = vmatprep.subr.bf16.mxu0 %v5217_v60 }
 0x33d   :  { %v556_v62 = vpop.f32.mrb[4].mxu1 }
 0x33e   :  { %v562_v63 = vmul.f32 0.25, %v556_v62  ;;  %v4606_v0 = vpop.f32.mrb[5].mxu1 }
 0x33f   :  { %v559_v1 = vpop.f32.mrb[6].mxu1 }
 0x340   :  { %v4607_v2 = vpop.f32.mrb[7].mxu1  ;;  %v570_v3 = vsel %vm569_vm11, -3.4028235e+38, %v562_v63 }
 0x341   :  { %v572_v4 = vsel %vm571_vm12, %v570_v3, -inf }
 0x342   :  { %573 = vmax.xlane.f32.xlu1 %v572_v4 }
 0x3b0   :  { %v677_v5 = vpop.f32.mrb[8].mxu0 }
 0x3b1   :  { %v683_v6 = vmul.f32 0.25, %v677_v5  ;;  %v4618_v7 = vpop.f32.mrb[9].mxu0 }
 0x3b2   :  { %v680_v8 = vpop.f32.mrb[10].mxu0 }
 0x3b3   :  { %v4619_v9 = vpop.f32.mrb[11].mxu0  ;;  %v684_v10 = vsel %vm569_vm11, -3.4028235e+38, %v683_v6 }
 0x3b4   :  { %v685_v11 = vsel %vm571_vm12, %v684_v10, -inf }
 0x3b5   :  { %686 = vmax.xlane.f32.xlu0 %v685_v11 }
 0x3cf   :  { %v574_v12 = vpop.xlane.xlu1 %573 }
 0x3d0   :  { %v575_v13 = vsub.f32 %v570_v3, %v574_v12 }
 0x3d2   :  { %v576_v14 = vmul.f32 1.442695, %v575_v13 }
 0x3d4   :  { %5084 = vpow2.f32 %v576_v14 }
 0x3de   :  { %v5085_v15 = vpop.eup %5084 }
 0x3df   :  { %v578_v16 = vsel %vm571_vm12, %v5085_v15, 0.0 }
 0x3e0   :  { %579 = vadd.xlane.f32.xlu0 %v578_v16 }
 0x3f6   :  { %698 = vrot.lane.b32.xlu0 %v5546_v47, %s5219_s3 }
 0x442   :  { %v687_v17 = vpop.xlane.xlu0 %686 }
 0x443   :  { %v688_v20 = vsub.f32 %v684_v10, %v687_v17 }
 0x445   :  { %v689_v21 = vmul.f32 1.442695, %v688_v20 }
 0x447   :  { %5086 = vpow2.f32 %v689_v21 }
 0x451   :  { %v5087_v22 = vpop.eup %5086 }
 0x452   :  { %v691_v23 = vsel %vm571_vm12, %v5087_v22, 0.0 }
 0x453   :  { %692 = vadd.xlane.f32.xlu1 %v691_v23 }
 0x464   :  { %847 = vrot.lane.b32.xlu1 %v5526_v36, %s5221_s15 }
 0x468   :  { %845 = vrot.lane.b32.xlu1 %v5524_v35, %s5221_s15 }
 0x46d   :  { %v580_v24 = vpop.xlane.xlu0 %579 }
 0x46e   :  { %5088 = vrcp.f32 %v580_v24 }
 0x471   :  { %v699_v27 = vpop.permute.xlu0 %698 }
 0x472   :  { %v704_v29 = vsel %vm194_vm3, %v699_v27, 0 }
 0x478   :  { %v5089_v25 = vpop.eup %5088 }
 0x479   :  { %v582_v26 = vmul.f32 %v5089_v25, %v5085_v15  ;;  %v5642_v25 = vld [vmem:[%s6343_s12 + $0x10] sm:$0xff]  }
 0x47b   :  { %v583_v28 = vpack.c.bf16 %v582_v26, %v582_v26 }
 0x47d   :  { %4611 = vmatmul.mubr.msk.bf16.vlgmr.msra.gmra.mrb[8].mxu1 %vm571_vm12, %v583_v28 }
 0x47e   :  { %4621 = vmatpush3.bf16.msra.mxu1 %v704_v29  ;;  %4622 = vmatprep.mubr.msk.bf16.mxu1 %vm5218_vm8, %v5217_v60 }
 0x47f   :  { %4632 = vmatprep.subr.bf16.mxu1 %v5217_v60 }
 0x4e0   :  { %v693_v31 = vpop.xlane.xlu1 %692 }
 0x4e1   :  { %5090 = vrcp.f32 %v693_v31 }
 0x4e4   :  { %v848_v45 = vpop.permute.xlu1 %847 }
 0x4e5   :  { %v853_v52 = vsel %vm515_vm9, %v848_v45, 0 }
 0x4e8   :  { %v846_v54 = vpop.permute.xlu1 %845 }
 0x4eb   :  { %v5091_v32 = vpop.eup %5090 }
 0x4ec   :  { %v695_v33 = vmul.f32 %v5091_v32, %v5087_v22 }
 0x4ee   :  { %v696_v39 = vpack.c.bf16 %v695_v33, %v695_v33 }
 0x4f0   :  { %4623 = vmatmul.mubr.msk.bf16.vlgmr.msra.gmra.mrb[12].mxu1 %vm571_vm12, %v696_v39 }
 0x4f1   :  { %4633 = vmatpush3.bf16.msra.mxu1 %v5599_v34  ;;  %4634 = vmatprep.mubr.msk.bf16.mxu1 %vm5218_vm8, %v5217_v60 }
 0x4f2   :  { %4644 = vmatprep.subr.bf16.mxu1 %v5217_v60 }
 0x550   :  { %v624_v40 = vpop.f32.mrb[8].mxu1 }
 0x551   :  { %v630_v41 = vpack.c.bf16 %v624_v40, %v624_v40  ;;  %v4612_v42 = vpop.f32.mrb[9].mxu1 }
 0x552   :  { %v627_v43 = vpop.f32.mrb[10].mxu1 }
 0x553   :  { %v4613_v44 = vpop.f32.mrb[11].mxu1  ;;  %4635 = vmatmul.mubr.msk.bf16.vlgmr.msra.gmra.mrb[16].mxu1 %vm515_vm9, %v630_v41 }
 0x554   :  { %4646 = vmatprep.mubr.msk.bf16.mxu1 %vm5218_vm8, %v5217_v60  ;;  %v5656_v44 = vpack.c.bf16 %v5528_v37, %v5528_v37  ;;  %v5665_v37 = vpack.c.bf16 %v5530_v38, %v5530_v38 }
 0x5c3   :  { %v740_v46 = vpop.f32.mrb[12].mxu1 }
 0x5c4   :  { %v746_v49 = vpack.c.bf16 %v740_v46, %v740_v46  ;;  %v4624_v50 = vpop.f32.mrb[13].mxu1 }
 0x5c5   :  { %v743_v51 = vpop.f32.mrb[14].mxu1 }
 0x5c6   :  { %v4625_v53 = vpop.f32.mrb[15].mxu1  ;;  %4629 = vmatmul.mubr.msk.bf16.vlgmr.msra.gmra.mrb[12].mxu0 %vm515_vm9, %v746_v49 }
 0x5c7   :  { %4639 = vmatpush3.bf16.xpose.msra.mxu0 %v853_v52  ;;  %4640 = vmatprep.mubr.msk.bf16.mxu0 %vm5218_vm8, %v5217_v60 }
 0x5c8   :  { %4650 = vmatprep.subr.bf16.mxu0 %v5217_v60 }
 0x5ce   :  { %4641 = vmatmul.mubr.msk.bf16.vlgmr.msra.gmra.mrb[16].mxu0 %vm515_vm9, %v846_v54 }
 0x5cf   :  { %4652 = vmatprep.mubr.msk.bf16.mxu0 %vm5218_vm8, %v5217_v60  ;;  %4651 = vmatpush3.bf16.msra.mxu0 %v5642_v25 }
 0x5d0   :  { %4662 = vmatprep.subr.bf16.mxu0 %v5217_v60 }
 0x626   :  { %v839_v55 = vpop.f32.mrb[16].mxu1 }
 0x627   :  { %v4636_v57 = vpop.f32.mrb[17].mxu1 }
 0x628   :  { %v842_v58 = vpop.f32.mrb[18].mxu1 }
 0x629   :  { %v4637_v62 = vpop.f32.mrb[19].mxu1  ;;  %v5675_v58 = vld [vmem:[%s6343_s12 + $0x18] sm:$0xff]  }
 0x699   :  { %v790_v63 = vpop.f32.mrb[12].mxu0 }
 0x69a   :  { %v5617_v0 = vadd.f32 %v839_v55, %v790_v63  ;;  %v4630_v1 = vpop.f32.mrb[13].mxu0 }
 0x69b   :  { %v793_v2 = vpop.f32.mrb[14].mxu0 }
 0x69c   :  { %v4631_v3 = vpop.f32.mrb[15].mxu0 }
 0x6a1   :  { %v889_v4 = vpop.f32.mrb[16].mxu0 }
 0x6a2   :  { %v895_v5 = vmul.f32 0.25, %v889_v4  ;;  %v4642_v6 = vpop.f32.mrb[17].mxu0 }
 0x6a3   :  { %v892_v7 = vpop.f32.mrb[18].mxu0  ;;  %v5698_v6 = vpack.c.bf16 %v5548_v48, %v5548_v48 }
 0x6a4   :  { %v4643_v8 = vpop.f32.mrb[19].mxu0  ;;  %v896_v9 = vsel %vm569_vm11, -3.4028235e+38, %v895_v5 }
 0x6a5   :  { %v897_v10 = vsel %vm571_vm12, %v896_v9, -inf  ;;  %v1223_v8 = vsub.s32 1, %v5561_v56 }
 0x6a6   :  { %898 = vmax.xlane.f32.xlu1 %v897_v10 }
 0x6b7   :  { %1010 = vrot.lane.b32.xlu1 %v5526_v36, %s5222_s26 }
 0x6bb   :  { %1008 = vrot.lane.b32.xlu1 %v5524_v35, %s5222_s26 }
 0x733   :  { %v899_v11 = vpop.xlane.xlu1 %898 }
 0x734   :  { %v900_v12 = vsub.f32 %v896_v9, %v899_v11 }
 0x736   :  { %v901_v13 = vmul.f32 1.442695, %v900_v12 }
 0x737   :  { %v1011_v21 = vpop.permute.xlu1 %1010 }
 0x738   :  { %5092 = vpow2.f32 %v901_v13  ;;  %v1016_v23 = vsel %vm515_vm9, %v1011_v21, 0  ;;  %v5705_v13 = vrot.slane %v5564_v59, %v1223_v8 }
 0x73a   :  { %vm1225_vm13 = vcmp.eq.s32.totalorder %v5705_v13, 1 }
 0x73b   :  { %v1009_v24 = vpop.permute.xlu1 %1008 }
 0x742   :  { %v5093_v14 = vpop.eup %5092 }
 0x743   :  { %v903_v15 = vsel %vm571_vm12, %v5093_v14, 0.0 }
 0x744   :  { %904 = vadd.xlane.f32.xlu0 %v903_v15 }
 0x75a   :  { %909 = vrot.lane.b32.xlu0 %v5546_v47, %s5221_s15 }
 0x7d1   :  { %v905_v16 = vpop.xlane.xlu0 %904 }
 0x7d2   :  { %5094 = vrcp.f32 %v905_v16 }
 0x7d5   :  { %v910_v17 = vpop.permute.xlu0 %909 }
 0x7d6   :  { %v915_v20 = vsel %vm194_vm3, %v910_v17, 0 }
 0x7d7   :  { %4645 = vmatpush3.bf16.msra.mxu1 %v915_v20 }
 0x7d8   :  { %4656 = vmatprep.subr.bf16.mxu1 %v5217_v60 }
 0x7dc   :  { %v5095_v35 = vpop.eup %5094 }
 0x7dd   :  { %v907_v36 = vmul.f32 %v5095_v35, %v5093_v14 }
 0x7df   :  { %v908_v22 = vpack.c.bf16 %v907_v36, %v907_v36 }
 0x7e1   :  { %4647 = vmatmul.mubr.msk.bf16.vlgmr.msra.gmra.mrb[20].mxu1 %vm571_vm12, %v908_v22 }
 0x7e2   :  { %4657 = vmatpush3.bf16.xpose.msra.mxu1 %v1016_v23  ;;  %4658 = vmatprep.mubr.msk.bf16.mxu1 %vm5218_vm8, %v5217_v60 }
 0x7e3   :  { %4668 = vmatprep.subr.bf16.mxu1 %v5217_v60 }
 0x7e9   :  { %4659 = vmatmul.mubr.msk.bf16.vlgmr.msra.gmra.mrb[24].mxu1 %vm515_vm9, %v1009_v24 }
 0x7ea   :  { %4670 = vmatprep.mubr.msk.bf16.mxu1 %vm5218_vm8, %v5217_v60  ;;  %4669 = vmatpush3.bf16.msra.mxu1 %v5675_v58 }
 0x7eb   :  { %4680 = vmatprep.subr.bf16.mxu1 %v5217_v60 }
 0x8b4   :  { %v951_v26 = vpop.f32.mrb[20].mxu1 }
 0x8b5   :  { %v957_v27 = vpack.c.bf16 %v951_v26, %v951_v26  ;;  %v4648_v28 = vpop.f32.mrb[21].mxu1 }
 0x8b6   :  { %v954_v29 = vpop.f32.mrb[22].mxu1 }
 0x8b7   :  { %v4649_v31 = vpop.f32.mrb[23].mxu1  ;;  %4653 = vmatmul.mubr.msk.bf16.vlgmr.msra.gmra.mrb[20].mxu0 %vm515_vm9, %v957_v27 }
 0x8b8   :  { %4664 = vmatprep.mubr.msk.bf16.mxu0 %vm5218_vm8, %v5217_v60 }
 0x8bc   :  { %v1052_v32 = vpop.f32.mrb[24].mxu1 }
 0x8bd   :  { %v1058_v33 = vmul.f32 0.25, %v1052_v32  ;;  %v4660_v39 = vpop.f32.mrb[25].mxu1 }
 0x8be   :  { %v1055_v40 = vpop.f32.mrb[26].mxu1 }
 0x8bf   :  { %v4661_v41 = vpop.f32.mrb[27].mxu1  ;;  %v1059_v42 = vsel %vm569_vm11, -3.4028235e+38, %v1058_v33 }
 0x8c0   :  { %v1060_v43 = vsel %vm571_vm12, %v1059_v42, -inf }
 0x8c1   :  { %1061 = vmax.xlane.f32.xlu0 %v1060_v43 }
 0x8d7   :  { %1072 = vrot.lane.b32.xlu0 %v5546_v47, %s5222_s26 }
 0x8db   :  { %1287 = vrot.lane.b32.xlu0 %v5656_v44, %s5219_s3 }
 0x94e   :  { %v1062_v45 = vpop.xlane.xlu0 %1061 }
 0x94f   :  { %v1063_v46 = vsub.f32 %v1059_v42, %v1062_v45 }
 0x951   :  { %v1064_v49 = vmul.f32 1.442695, %v1063_v46 }
 0x952   :  { %v1073_v50 = vpop.permute.xlu0 %1072 }
 0x953   :  { %5096 = vpow2.f32 %v1064_v49  ;;  %v1078_v51 = vsel %vm194_vm3, %v1073_v50, 0 }
 0x954   :  { %4663 = vmatpush3.bf16.msra.mxu0 %v1078_v51 }
 0x955   :  { %4674 = vmatprep.subr.bf16.mxu0 %v5217_v60 }
 0x956   :  { %v1288_v5 = vpop.permute.xlu0 %1287 }
 0x95d   :  { %v5097_v52 = vpop.eup %5096 }
 0x95e   :  { %v1066_v47 = vsel %vm571_vm12, %v5097_v52, 0.0 }
 0x95f   :  { %1067 = vadd.xlane.f32.xlu1 %v1066_v47 }
 0x970   :  { %1290 = vrot.lane.b32.xlu1 %v5665_v37, %s5219_s3 }
 0x98a   :  { %v1001_v53 = vpop.f32.mrb[20].mxu0 }
 0x98b   :  { %v5670_v54 = vadd.f32 %v1001_v53, %v5617_v0  ;;  %v4654_v55 = vpop.f32.mrb[21].mxu0  ;;  %v1178_v0 = vsel %vm515_vm9, %v5665_v37, 0 }
 0x98c   :  { %v1004_v57 = vpop.f32.mrb[22].mxu0 }
 0x98d   :  { %v4655_v62 = vpop.f32.mrb[23].mxu0 }
 0x9ec   :  { %v1068_v38 = vpop.xlane.xlu1 %1067 }
 0x9ed   :  { %5098 = vrcp.f32 %v1068_v38 }
 0x9f0   :  { %v1291_v3 = vpop.permute.xlu1 %1290 }
 0x9f1   :  { %v1296_v4 = vsel %vm515_vm9, %v1291_v3, 0 }
 0x9f7   :  { %v5099_v63 = vpop.eup %5098 }
 0x9f8   :  { %v1070_v1 = vmul.f32 %v5099_v63, %v5097_v52 }
 0x9fa   :  { %v1071_v2 = vpack.c.bf16 %v1070_v1, %v1070_v1 }
 0x9fc   :  { %4665 = vmatmul.mubr.msk.bf16.vlgmr.msra.gmra.mrb[24].mxu0 %vm571_vm12, %v1071_v2 }
 0x9fd   :  { %4675 = vmatpush3.bf16.xpose.msra.mxu0 %v1178_v0  ;;  %4676 = vmatprep.mubr.msk.bf16.mxu0 %vm5218_vm8, %v5217_v60 }
 0x9fe   :  { %4686 = vmatprep.subr.bf16.mxu0 %v5217_v60 }
 0xa04   :  { %4677 = vmatmul.mubr.msk.bf16.vlgmr.msra.gmra.mrb[28].mxu0 %vm515_vm9, %v5656_v44 }
 0xa05   :  { %4687 = vmatpush3.bf16.xpose.msra.mxu0 %v1296_v4  ;;  %4688 = vmatprep.mubr.msk.bf16.mxu0 %vm5218_vm8, %v5217_v60 }
 0xa06   :  { %4698 = vmatprep.subr.bf16.mxu0 %v5217_v60 }
 0xa0c   :  { %4689 = vmatmul.mubr.msk.bf16.vlgmr.msra.gmra.mrb[32].mxu0 %vm515_vm9, %v1288_v5 }
 0xa0d   :  { %4699 = vmatpush3.bf16.msra.mxu0 %v5592_v30  ;;  %4700 = vmatprep.mubr.msk.bf16.mxu0 %vm5218_vm8, %v5217_v60  ;;  %v1243_v30 = vsel %vm194_vm3, %v5698_v6, 0 }
 0xa0e   :  { %4710 = vmatprep.subr.bf16.mxu0 %v5217_v60 }
 0xacf   :  { %v1114_v7 = vpop.f32.mrb[24].mxu0 }
 0xad0   :  { %v1120_v9 = vpack.c.bf16 %v1114_v7, %v1114_v7  ;;  %v4666_v10 = vpop.f32.mrb[25].mxu0 }
 0xad1   :  { %v1117_v11 = vpop.f32.mrb[26].mxu0 }
 0xad2   :  { %v4667_v12 = vpop.f32.mrb[27].mxu0  ;;  %4671 = vmatmul.mubr.msk.bf16.vlgmr.msra.gmra.mrb[28].mxu1 %vm515_vm9, %v1120_v9 }
 0xad3   :  { %4681 = vmatpush3.bf16.msra.mxu1 %v1243_v30  ;;  %4682 = vmatprep.mubr.msk.bf16.mxu1 %vm5218_vm8, %v5217_v60 }
 0xad4   :  { %4692 = vmatprep.subr.bf16.mxu1 %v5217_v60 }
 0xad7   :  { %v1214_v48 = vpop.f32.mrb[28].mxu0 }
 0xad8   :  { %v1220_v56 = vmul.f32 0.25, %v1214_v48  ;;  %v4678_v14 = vpop.f32.mrb[29].mxu0 }
 0xad9   :  { %v1217_v15 = vpop.f32.mrb[30].mxu0 }
 0xada   :  { %v4679_v16 = vpop.f32.mrb[31].mxu0  ;;  %v1226_v17 = vsel %vm1225_vm13, -3.4028235e+38, %v1220_v56 }
 0xadb   :  { %v1227_v20 = vsel %vm571_vm12, %v1226_v17, -inf }
 0xadc   :  { %1228 = vmax.xlane.f32.xlu1 %v1227_v20 }
 0xadf   :  { %v1332_v59 = vpop.f32.mrb[32].mxu0 }
 0xae0   :  { %v1338_v35 = vmul.f32 0.25, %v1332_v59  ;;  %v4690_v36 = vpop.f32.mrb[33].mxu0 }
 0xae1   :  { %v1335_v21 = vpop.f32.mrb[34].mxu0 }
 0xae2   :  { %v4691_v22 = vpop.f32.mrb[35].mxu0  ;;  %v1339_v23 = vsel %vm1225_vm13, -3.4028235e+38, %v1338_v35 }
 0xae3   :  { %v1340_v24 = vsel %vm571_vm12, %v1339_v23, -inf }
 0xae4   :  { %1341 = vmax.xlane.f32.xlu0 %v1340_v24 }
 0xaed   :  { %1353 = vrot.lane.b32.xlu1 %v5698_v6, %s5219_s3 }
 0xaf1   :  { %1488 = vrot.lane.b32.xlu1 %v5656_v44, %s5221_s15 }
 0xb69   :  { %v1229_v26 = vpop.xlane.xlu1 %1228 }
 0xb6a   :  { %v1230_v27 = vsub.f32 %v1226_v17, %v1229_v26 }
 0xb6c   :  { %v1231_v28 = vmul.f32 1.442695, %v1230_v27 }
 0xb6d   :  { %v1354_v53 = vpop.permute.xlu1 %1353 }
 0xb6e   :  { %5100 = vpow2.f32 %v1231_v28  ;;  %v1359_v57 = vsel %vm194_vm3, %v1354_v53, 0 }
 0xb71   :  { %v1342_v29 = vpop.xlane.xlu0 %1341  ;;  %v1489_v11 = vpop.permute.xlu1 %1488 }
 0xb72   :  { %v1343_v31 = vsub.f32 %v1339_v23, %v1342_v29 }
 0xb74   :  { %v1344_v32 = vmul.f32 1.442695, %v1343_v31 }
 0xb76   :  { %5102 = vpow2.f32 %v1344_v32 }
 0xb78   :  { %v5101_v33 = vpop.eup %5100 }
 0xb79   :  { %v1233_v39 = vsel %vm571_vm12, %v5101_v33, 0.0 }
 0xb7a   :  { %1234 = vadd.xlane.f32.xlu0 %v1233_v39 }
 0xb80   :  { %v5103_v40 = vpop.eup %5102 }
 0xb81   :  { %v1346_v41 = vsel %vm571_vm12, %v5103_v40, 0.0 }
 0xb82   :  { %1347 = vadd.xlane.f32.xlu0 %v1346_v41 }
 0xb98   :  { %1490 = vrot.lane.b32.xlu0 %v5665_v37, %s5221_s15 }
 0xba5   :  { %v1164_v42 = vpop.f32.mrb[28].mxu1 }
 0xba6   :  { %v5726_v43 = vadd.f32 %v1164_v42, %v5670_v54  ;;  %v4672_v45 = vpop.f32.mrb[29].mxu1 }
 0xba7   :  { %v1167_v46 = vpop.f32.mrb[30].mxu1 }
 0xba8   :  { %v4673_v49 = vpop.f32.mrb[31].mxu1 }
 0xc07   :  { %v1235_v50 = vpop.xlane.xlu0 %1234 }
 0xc08   :  { %5104 = vrcp.f32 %v1235_v50 }
 0xc0f   :  { %v1348_v51 = vpop.xlane.xlu0 %1347 }
 0xc10   :  { %5106 = vrcp.f32 %v1348_v51 }
 0xc12   :  { %v5105_v52 = vpop.eup %5104 }
 0xc13   :  { %v1237_v47 = vmul.f32 %v5105_v52, %v5101_v33  ;;  %v1491_v4 = vpop.permute.xlu0 %1490  ;;  %v4242_v52 = vld [vmem:[%s6344_s13] ss:$0 sm:$0xff] }
 0xc14   :  { %v1496_v9 = vsel %vm515_vm9, %v1491_v4, 0 }
 0xc15   :  { %v1238_v55 = vpack.c.bf16 %v1237_v47, %v1237_v47 }
 0xc17   :  { %4683 = vmatmul.mubr.msk.bf16.vlgmr.msra.gmra.mrb[32].mxu1 %vm571_vm12, %v1238_v55 }
 0xc18   :  { %4693 = vmatpush3.bf16.msra.mxu1 %v1359_v57  ;;  %4694 = vmatprep.mubr.msk.bf16.mxu1 %vm5218_vm8, %v5217_v60 }
 0xc19   :  { %4704 = vmatprep.subr.bf16.mxu1 %v5217_v60 }
 0xc1a   :  { %v5107_v54 = vpop.eup %5106 }
 0xc1b   :  { %v1350_v62 = vmul.f32 %v5107_v54, %v5103_v40 }
 0xc1d   :  { %v1351_v38 = vpack.c.bf16 %v1350_v62, %v1350_v62 }
 0xc1f   :  { %4695 = vmatmul.mubr.msk.bf16.vlgmr.msra.gmra.mrb[36].mxu1 %vm571_vm12, %v1351_v38 }
 0xc20   :  { %4705 = vmatpush3.bf16.msra.mxu1 %v5599_v34  ;;  %4706 = vmatprep.mubr.msk.bf16.mxu1 %vm5218_vm8, %v5217_v60 }
 0xc21   :  { %4716 = vmatprep.subr.bf16.mxu1 %v5217_v60 }
 0xcea   :  { %v1279_v63 = vpop.f32.mrb[32].mxu1 }
 0xceb   :  { %v1285_v1 = vpack.c.bf16 %v1279_v63, %v1279_v63  ;;  %v4684_v2 = vpop.f32.mrb[33].mxu1 }
 0xcec   :  { %v1282_v0 = vpop.f32.mrb[34].mxu1 }
 0xced   :  { %v4685_v3 = vpop.f32.mrb[35].mxu1  ;;  %4707 = vmatmul.mubr.msk.bf16.vlgmr.msra.gmra.mrb[40].mxu1 %vm515_vm9, %v1285_v1 }
 0xcee   :  { %4718 = vmatprep.mubr.msk.bf16.mxu1 %vm5218_vm8, %v5217_v60 }
 0xcf2   :  { %v1395_v5 = vpop.f32.mrb[36].mxu1 }
 0xcf3   :  { %v1401_v7 = vpack.c.bf16 %v1395_v5, %v1395_v5  ;;  %v4696_v8 = vpop.f32.mrb[37].mxu1 }
 0xcf4   :  { %v1398_v34 = vpop.f32.mrb[38].mxu1 }
 0xcf5   :  { %v4697_v10 = vpop.f32.mrb[39].mxu1  ;;  %4701 = vmatmul.mubr.msk.bf16.vlgmr.msra.gmra.mrb[36].mxu0 %vm515_vm9, %v1401_v7 }
 0xcf6   :  { %4711 = vmatpush3.bf16.xpose.msra.mxu0 %v1496_v9  ;;  %4712 = vmatprep.mubr.msk.bf16.mxu0 %vm5218_vm8, %v5217_v60 }
 0xcf7   :  { %4722 = vmatprep.subr.bf16.mxu0 %v5217_v60 }
 0xcfd   :  { %4713 = vmatmul.mubr.msk.bf16.vlgmr.msra.gmra.mrb[40].mxu0 %vm515_vm9, %v1489_v11 }
 0xcfe   :  { %4723 = vmatpush3.bf16.msra.mxu0 %v5642_v25  ;;  %4724 = vmatprep.mubr.msk.bf16.mxu0 %vm5218_vm8, %v5217_v60 }
 0xcff   :  { %4734 = vmatprep.subr.bf16.mxu0 %v5217_v60 }
 0xdc0   :  { %v1482_v12 = vpop.f32.mrb[40].mxu1 }
 0xdc1   :  { %v4708_v30 = vpop.f32.mrb[41].mxu1 }
 0xdc2   :  { %v1485_v48 = vpop.f32.mrb[42].mxu1 }
 0xdc3   :  { %v4709_v56 = vpop.f32.mrb[43].mxu1 }
 0xdc8   :  { %v1439_v14 = vpop.f32.mrb[36].mxu0 }
 0xdc9   :  { %v5751_v15 = vadd.f32 %v1482_v12, %v1439_v14  ;;  %v4702_v16 = vpop.f32.mrb[37].mxu0 }
 0xdca   :  { %v1442_v17 = vpop.f32.mrb[38].mxu0 }
 0xdcb   :  { %v4703_v20 = vpop.f32.mrb[39].mxu0 }
 0xdd0   :  { %v1532_v59 = vpop.f32.mrb[40].mxu0 }
 0xdd1   :  { %v1538_v35 = vmul.f32 0.25, %v1532_v59  ;;  %v4714_v36 = vpop.f32.mrb[41].mxu0 }
 0xdd2   :  { %v1535_v21 = vpop.f32.mrb[42].mxu0 }
 0xdd3   :  { %v4715_v25 = vpop.f32.mrb[43].mxu0  ;;  %v1539_v22 = vsel %vm1225_vm13, -3.4028235e+38, %v1538_v35 }
 0xdd4   :  { %v1540_v23 = vsel %vm571_vm12, %v1539_v22, -inf }
 0xdd5   :  { %1541 = vmax.xlane.f32.xlu1 %v1540_v23 }
 0xde6   :  { %1647 = vrot.lane.b32.xlu1 %v5665_v37, %s5222_s26 }
 0xdea   :  { %1645 = vrot.lane.b32.xlu1 %v5656_v44, %s5222_s26 }
 0xe62   :  { %v1542_v24 = vpop.xlane.xlu1 %1541 }
 0xe63   :  { %v1543_v26 = vsub.f32 %v1539_v22, %v1542_v24 }
 0xe65   :  { %v1544_v27 = vmul.f32 1.442695, %v1543_v26 }
 0xe66   :  { %v1648_v39 = vpop.permute.xlu1 %1647 }
 0xe67   :  { %5108 = vpow2.f32 %v1544_v27  ;;  %v1653_v41 = vsel %vm515_vm9, %v1648_v39, 0  ;;  %v5036_v39 = vld [vmem:[%s6347_s16 + $0x10] sm:$0xff]  }
 0xe6a   :  { %v1646_v42 = vpop.permute.xlu1 %1645 }
 0xe71   :  { %v5109_v28 = vpop.eup %5108 }
 0xe72   :  { %v1546_v29 = vsel %vm571_vm12, %v5109_v28, 0.0 }
 0xe73   :  { %1547 = vadd.xlane.f32.xlu0 %v1546_v29 }
 0xe89   :  { %1552 = vrot.lane.b32.xlu0 %v5698_v6, %s5221_s15 }
 0xf00   :  { %v1548_v31 = vpop.xlane.xlu0 %1547 }
 0xf01   :  { %5110 = vrcp.f32 %v1548_v31 }
 0xf04   :  { %v1553_v32 = vpop.permute.xlu0 %1552 }
 0xf05   :  { %v1558_v33 = vsel %vm194_vm3, %v1553_v32, 0 }
 0xf06   :  { %4717 = vmatpush3.bf16.msra.mxu1 %v1558_v33 }
 0xf07   :  { %4728 = vmatprep.subr.bf16.mxu1 %v5217_v60 }
 0xf0b   :  { %v5111_v44 = vpop.eup %5110 }
 0xf0c   :  { %v1550_v37 = vmul.f32 %v5111_v44, %v5109_v28 }
 0xf0e   :  { %v1551_v40 = vpack.c.bf16 %v1550_v37, %v1550_v37  ;;  %v5034_v37 = vld [vmem:[%s6347_s16] sm:$0xff]  }
 0xf10   :  { %4719 = vmatmul.mubr.msk.bf16.vlgmr.msra.gmra.mrb[44].mxu1 %vm571_vm12, %v1551_v40  ;;  %v5037_v40 = vld [vmem:[%s6347_s16 + $0x18] sm:$0xff]  }
 0xf11   :  { %4729 = vmatpush3.bf16.xpose.msra.mxu1 %v1653_v41  ;;  %4730 = vmatprep.mubr.msk.bf16.mxu1 %vm5218_vm8, %v5217_v60  ;;  %v5038_v41 = vld [vmem:[%s6408_s18] sm:$0xff]  }
 0xf12   :  { %4740 = vmatprep.subr.bf16.mxu1 %v5217_v60 }
 0xf18   :  { %4731 = vmatmul.mubr.msk.bf16.vlgmr.msra.gmra.mrb[48].mxu1 %vm515_vm9, %v1646_v42  ;;  %v5039_v42 = vld [vmem:[%s6408_s18 + $0x8] sm:$0xff]  }
 0xf19   :  { %4741 = vmatpush3.bf16.msra.mxu1 %v5675_v58  ;;  %4742 = vmatprep.mubr.msk.bf16.mxu1 %vm5218_vm8, %v5217_v60  ;;  %v1808_v58 = vadd.f32 %v4242_v52, %v5726_v43 }
 0xf1a   :  { %4758 = vmatprep.subr.bf16.mxu1 %v5217_v60 }
 0xf1b   :  { %v1810_v63 = vadd.f32 %v1808_v58, %v5487_v18 }
 0xf1d   :  { %v1814_v1 = vsel %vm214_vm7, %v1810_v63, 0.0 }
 0xfe3   :  { %v1594_v45 = vpop.f32.mrb[44].mxu1 }
 0xfe4   :  { %v1600_v46 = vpack.c.bf16 %v1594_v45, %v1594_v45  ;;  %v4720_v49 = vpop.f32.mrb[45].mxu1 }
 0xfe5   :  { %v1597_v50 = vpop.f32.mrb[46].mxu1 }
 0xfe6   :  { %v4721_v51 = vpop.f32.mrb[47].mxu1  ;;  %4725 = vmatmul.mubr.msk.bf16.vlgmr.msra.gmra.mrb[44].mxu0 %vm515_vm9, %v1600_v46 }
 0xfe7   :  { %4736 = vmatprep.mubr.msk.bf16.mxu0 %vm5218_vm8, %v5217_v60 }
 0xfeb   :  { %v1689_v47 = vpop.f32.mrb[48].mxu1 }
 0xfec   :  { %v1695_v53 = vmul.f32 0.25, %v1689_v47  ;;  %v4732_v55 = vpop.f32.mrb[49].mxu1 }
 0xfed   :  { %v1692_v57 = vpop.f32.mrb[50].mxu1 }
 0xfee   :  { %v4733_v54 = vpop.f32.mrb[51].mxu1  ;;  %v1696_v62 = vsel %vm1225_vm13, -3.4028235e+38, %v1695_v53  ;;  %v4243_v53 = vld [vmem:[%s6409_s2] ss:$0 sm:$0xff] }
 0xfef   :  { %v1697_v38 = vsel %vm571_vm12, %v1696_v62, -inf }
 0xff0   :  { %1698 = vmax.xlane.f32.xlu1 %v1697_v38 }
 0xff4   :  { %1815 = vadd.xlane.f32.xlu1 %v1814_v1 }
0x107d   :  { %v1699_v2 = vpop.xlane.xlu1 %1698 }
0x107e   :  { %v1700_v0 = vsub.f32 %v1696_v62, %v1699_v2  ;;  %v4244_v62 = vld [vmem:[%s6410_s8] ss:$0 sm:$0xff] }
0x1080   :  { %v1701_v3 = vmul.f32 1.442695, %v1700_v0  ;;  %v5040_v0 = vld [vmem:[%s6408_s18 + $0x10] sm:$0xff]  }
0x1081   :  { %v1816_v17 = vpop.xlane.xlu1 %1815 }
0x1082   :  { %5112 = vpow2.f32 %v1701_v3  ;;  %v1820_v20 = vmul.f32 0.015625, %v1816_v17  ;;  %v5041_v3 = vld [vmem:[%s6408_s18 + $0x18] sm:$0xff]  }
0x1084   :  { %v1822_v25 = vsub.f32 %v1810_v63, %v1820_v20 }
0x1086   :  { %v1824_v27 = vmul.f32 %v1822_v25, %v1822_v25 }
0x1088   :  { %v1826_v28 = vsel %vm214_vm7, %v1824_v27, 0.0 }
0x108c   :  { %v5113_v43 = vpop.eup %5112 }
0x108d   :  { %v1703_v4 = vsel %vm571_vm12, %v5113_v43, 0.0 }
0x108e   :  { %1704 = vadd.xlane.f32.xlu0 %v1703_v4  ;;  %v5043_v4 = vld [vmem:[%s6408_s18 + $0x28] sm:$0xff]  }
0x10a4   :  { %1709 = vrot.lane.b32.xlu0 %v5698_v6, %s5222_s26 }
0x10b9   :  { %v1638_v5 = vpop.f32.mrb[44].mxu0 }
0x10ba   :  { %v1644_v7 = vadd.f32 %v1638_v5, %v5751_v15  ;;  %v4726_v8 = vpop.f32.mrb[45].mxu0  ;;  %v5044_v5 = vld [vmem:[%s6408_s18 + $0x30] sm:$0xff]  }
0x10bb   :  { %v1641_v18 = vpop.f32.mrb[46].mxu0  ;;  %v4245_v8 = vld [vmem:[%s6411_s5] ss:$0 sm:$0xff] }
0x10bc   :  { %v4727_v34 = vpop.f32.mrb[47].mxu0 }
0x111b   :  { %v1705_v9 = vpop.xlane.xlu0 %1704 }
0x111c   :  { %5114 = vrcp.f32 %v1705_v9 }
0x111f   :  { %v1710_v10 = vpop.permute.xlu0 %1709 }
0x1120   :  { %v1715_v11 = vsel %vm194_vm3, %v1710_v10, 0 }
0x1121   :  { %4735 = vmatpush3.bf16.msra.mxu0 %v1715_v11 }
0x1122   :  { %4746 = vmatprep.subr.bf16.mxu0 %v5217_v60 }
0x1126   :  { %v5115_v12 = vpop.eup %5114 }
0x1127   :  { %v1707_v30 = vmul.f32 %v5115_v12, %v5113_v43  ;;  %v5042_v43 = vld [vmem:[%s6408_s18 + $0x20] sm:$0xff]  }
0x1129   :  { %v1708_v48 = vpack.c.bf16 %v1707_v30, %v1707_v30 }
0x112b   :  { %4737 = vmatmul.mubr.msk.bf16.vlgmr.msra.gmra.mrb[48].mxu0 %vm571_vm12, %v1708_v48 }
0x112c   :  { %4754 = vmatprep.mubr.msk.bf16.mxu0 %vm5218_vm8, %v5217_v60  ;;  %4747 = vmatpush3.bf16.msra.mxu0 %v5034_v37 }
0x112d   :  { %4748 = vmatprep.subr.bf16.mxu0 %v5217_v60 }
0x11fe   :  { %v1751_v6 = vpop.f32.mrb[48].mxu0 }
0x11ff   :  { %v1757_v56 = vpack.c.bf16 %v1751_v6, %v1751_v6  ;;  %v4738_v14 = vpop.f32.mrb[49].mxu0 }
0x1200   :  { %v1754_v15 = vpop.f32.mrb[50].mxu0 }
0x1201   :  { %v4739_v16 = vpop.f32.mrb[51].mxu0  ;;  %4743 = vmatmul.mubr.msk.bf16.vlgmr.msra.gmra.mrb[52].mxu1 %vm515_vm9, %v1757_v56 }
0x1202   :  { %4774 = vmatprep.mubr.msk.bf16.mxu1 %vm5218_vm8, %v5217_v60  ;;  %4759 = vmatpush3.bf16.msra.mxu1 %v5038_v41 }
0x1203   :  { %4760 = vmatprep.subr.bf16.mxu1 %v5217_v60 }
0x1206   :  { %4761 = vmatpush3.bf16.msra.mxu1 %v5039_v42 }
0x1207   :  { %4762 = vmatprep.subr.bf16.mxu1 %v5217_v60 }
0x120a   :  { %4763 = vmatpush3.bf16.msra.mxu1 %v5040_v0  ;;  %v4260_v0 = vld [vmem:[%s6413_s7] ss:$0 sm:$0xff] }
0x120b   :  { %4764 = vmatprep.subr.bf16.mxu1 %v5217_v60 }
0x120e   :  { %4765 = vmatpush3.bf16.msra.mxu1 %v5041_v3 }
0x120f   :  { %4766 = vmatprep.subr.bf16.mxu1 %v5217_v60 }
0x1212   :  { %4767 = vmatpush3.bf16.msra.mxu1 %v5042_v43 }
0x1213   :  { %4768 = vmatprep.subr.bf16.mxu1 %v5217_v60 }
0x1216   :  { %4769 = vmatpush3.bf16.msra.mxu1 %v5043_v4 }
0x1217   :  { %4770 = vmatprep.subr.bf16.mxu1 %v5217_v60 }
0x121a   :  { %4771 = vmatpush3.bf16.msra.mxu1 %v5044_v5  ;;  %v4261_v5 = vld [vmem:[%s6414_s17] ss:$0 sm:$0xff] }
0x121b   :  { %4772 = vmatprep.subr.bf16.mxu1 %v5217_v60 }
0x12d4   :  { %v1795_v59 = vpop.f32.mrb[52].mxu1 }
0x12d5   :  { %v1801_v35 = vadd.f32 %v1795_v59, %v1644_v7  ;;  %v4744_v36 = vpop.f32.mrb[53].mxu1  ;;  %v5045_v7 = vld [vmem:[%s6408_s18 + $0x38] sm:$0xff]  }
0x12d6   :  { %v1798_v21 = vpop.f32.mrb[54].mxu1  ;;  %4773 = vmatpush3.bf16.msra.mxu1 %v5045_v7  ;;  %v4251_v36 = vld [vmem:[%s6412_s29] ss:$0 sm:$0xff] }
0x12d7   :  { %v1809_v22 = vadd.f32 %v4242_v52, %v1801_v35  ;;  %v4745_v23 = vpop.f32.mrb[55].mxu1  ;;  %4802 = vmatprep.subr.bf16.mxu1 %v5217_v60 }
0x12d9   :  { %v1811_v24 = vadd.f32 %v1809_v22, %v5489_v19  ;;  %v5035_v19 = vld [vmem:[%s6347_s16 + $0x8] sm:$0xff]  }
0x12da   :  { %4749 = vmatpush3.bf16.msra.mxu0 %v5035_v19 }
0x12db   :  { %v1817_v26 = vsel %vm214_vm7, %v1811_v24, 0.0  ;;  %4750 = vmatprep.subr.bf16.mxu0 %v5217_v60 }
0x12dc   :  { %1818 = vadd.xlane.f32.xlu1 %v1817_v26 }
0x12de   :  { %4751 = vmatpush3.bf16.msra.mxu0 %v5036_v39 }
0x12df   :  { %4752 = vmatprep.subr.bf16.mxu0 %v5217_v60 }
0x12e0   :  { %1827 = vadd.xlane.f32.xlu1 %v1826_v28 }
0x12e2   :  { %4753 = vmatpush3.bf16.msra.mxu0 %v5037_v40 }
0x12e3   :  { %4778 = vmatprep.subr.bf16.mxu0 %v5217_v60 }
0x1369   :  { %v1819_v29 = vpop.xlane.xlu1 %1818 }
0x136a   :  { %v1821_v31 = vmul.f32 0.015625, %v1819_v29 }
0x136c   :  { %v1823_v32 = vsub.f32 %v1811_v24, %v1821_v31 }
0x136d   :  { %v1828_v45 = vpop.xlane.xlu1 %1827 }
0x136e   :  { %v1825_v33 = vmul.f32 %v1823_v32, %v1823_v32  ;;  %v1832_v46 = vmul.f32 0.015625, %v1828_v45 }
0x1370   :  { %v1829_v44 = vsel %vm214_vm7, %v1825_v33, 0.0  ;;  %v1834_v49 = vadd.f32 1e-12, %v1832_v46  ;;  %v5046_v46 = vld [vmem:[%s6400_s30 + $0x20] sm:$0xff]  }
0x1371   :  { %1830 = vadd.xlane.f32.xlu1 %v1829_v44 }
0x1372   :  { %5116 = vrsqrt.f32 %v1834_v49  ;;  %v5047_v49 = vld [vmem:[%s6404_s0 + $0x20] sm:$0xff]  }
0x137c   :  { %v5117_v58 = vpop.eup %5116 }
0x137d   :  { %v1838_v47 = vmul.f32 %v5117_v58, %v1822_v25  ;;  %v5051_v58 = vld [vmem:[%s6404_s0 + $0x30] sm:$0xff]  }
0x137f   :  { %v1846_v57 = vmul.f32 %v4243_v53, %v1838_v47  ;;  %v5052_v47 = vld [vmem:[%s6400_s30 + $0x38] sm:$0xff]  }
0x1381   :  { %v1854_v63 = vadd.f32 %v4244_v62, %v1846_v57 }
0x13fe   :  { %v1831_v50 = vpop.xlane.xlu1 %1830 }
0x13ff   :  { %v1833_v51 = vmul.f32 0.015625, %v1831_v50  ;;  %v5048_v50 = vld [vmem:[%s6400_s30 + $0x28] sm:$0xff]  }
0x1401   :  { %v1835_v52 = vadd.f32 1e-12, %v1833_v51  ;;  %v5049_v51 = vld [vmem:[%s6404_s0 + $0x28] sm:$0xff]  }
0x1403   :  { %5118 = vrsqrt.f32 %v1835_v52  ;;  %v5050_v52 = vld [vmem:[%s6400_s30 + $0x30] sm:$0xff]  }
0x140d   :  { %v5119_v55 = vpop.eup %5118 }
0x140e   :  { %v1839_v54 = vmul.f32 %v5119_v55, %v1823_v32 }
0x1410   :  { %v1847_v38 = vmul.f32 %v4243_v53, %v1839_v54  ;;  %v5053_v53 = vld [vmem:[%s6404_s0 + $0x38] sm:$0xff]  }
0x1412   :  { %v1855_v1 = vadd.f32 %v4244_v62, %v1847_v38 }
0x1414   :  { %v1856_v2 = vpack.c.bf16 %v1855_v1, %v1854_v63 }
0x1416   :  { %4755 = vmatmul.mubr.msk.bf16.vlgmr.msra.gmra.mrb[52].mxu0 %vm214_vm7, %v1856_v2 }
0x1417   :  { %4786 = vmatprep.mubr.msk.bf16.mxu0 %vm5218_vm8, %v5217_v60  ;;  %4779 = vmatpush3.bf16.msra.mxu0 %v5046_v46 }
0x1418   :  { %4780 = vmatprep.subr.bf16.mxu0 %v5217_v60 }
0x141b   :  { %4781 = vmatpush3.bf16.msra.mxu0 %v5048_v50 }
0x141c   :  { %4782 = vmatprep.subr.bf16.mxu0 %v5217_v60 }
0x141f   :  { %4783 = vmatpush3.bf16.msra.mxu0 %v5050_v52 }
0x1420   :  { %4784 = vmatprep.subr.bf16.mxu0 %v5217_v60 }
0x1423   :  { %4785 = vmatpush3.bf16.msra.mxu0 %v5052_v47 }
0x1424   :  { %4790 = vmatprep.subr.bf16.mxu0 %v5217_v60 }
0x14e9   :  { %v1933_v18 = vpop.f32.mrb[52].mxu0 }
0x14ea   :  { %v1934_v34 = vadd.f32 %v4245_v8, %v1933_v18  ;;  %v4756_v9 = vpop.f32.mrb[53].mxu0 }
0x14eb   :  { %v1936_v10 = vpop.f32.mrb[54].mxu0 }
0x14ec   :  { %v1942_v11 = vmul.f32 0.70710677, %v1934_v34  ;;  %v1937_v12 = vadd.f32 %v4245_v8, %v1936_v10  ;;  %v4757_v30 = vpop.f32.mrb[55].mxu0  ;;  %v1940_v15 = vmul.f32 0.5, %v1934_v34  ;;  %v5054_v34 = vld [vmem:[%s6401_s10 + $0x20] sm:$0xff]   ;;  %v5055_v10 = vld [vmem:[%s6401_s10 + $0x28] sm:$0xff]  }
0x14ed   :  { %v4310_v30 = vld [vmem:[%s6342_s11 + $0x1] ss:$0 sm:$0xff] }
0x14ee   :  { %5120 = verf.f32 %v1942_v11  ;;  %v1943_v48 = vmul.f32 0.70710677, %v1937_v12  ;;  %v1941_v16 = vmul.f32 0.5, %v1937_v12  ;;  %v5056_v11 = vld [vmem:[%s6401_s10 + $0x30] sm:$0xff]   ;;  %v5057_v12 = vld [vmem:[%s6401_s10 + $0x38] sm:$0xff]  }
0x14f0   :  { %5122 = verf.f32 %v1943_v48 }
0x14f8   :  { %v5121_v6 = vpop.eup %5120 }
0x14f9   :  { %v1946_v56 = vadd.f32 1.0, %v5121_v6 }
0x14fa   :  { %v5123_v14 = vpop.eup %5122 }
0x14fb   :  { %v1947_v17 = vadd.f32 1.0, %v5123_v14  ;;  %v1948_v20 = vmul.f32 %v1946_v56, %v1940_v15 }
0x14fd   :  { %v1949_v59 = vmul.f32 %v1947_v17, %v1941_v16  ;;  %v4298_v16 = vld [vmem:[%s6405_s28 + $0x1] ss:$0 sm:$0xff] }
0x14ff   :  { %v1950_v35 = vpack.c.bf16 %v1949_v59, %v1948_v20 }
0x1501   :  { %4775 = vmatmul.mubr.bf16.vlgmr.msra.gmra.mrb[56].mxu1 %v1950_v35 }
0x1502   :  { %4810 = vmatprep.mubr.msk.bf16.mxu1 %vm5218_vm8, %v5217_v60  ;;  %4803 = vmatpush3.bf16.msra.mxu1 %v5047_v49 }
0x1503   :  { %4804 = vmatprep.subr.bf16.mxu1 %v5217_v60 }
0x1506   :  { %4805 = vmatpush3.bf16.msra.mxu1 %v5049_v51 }
0x1507   :  { %4806 = vmatprep.subr.bf16.mxu1 %v5217_v60 }
0x150a   :  { %4807 = vmatpush3.bf16.msra.mxu1 %v5051_v58 }
0x150b   :  { %4808 = vmatprep.subr.bf16.mxu1 %v5217_v60 }
0x150e   :  { %4809 = vmatpush3.bf16.msra.mxu1 %v5053_v53 }
0x150f   :  { %4820 = vmatprep.subr.bf16.mxu1 %v5217_v60 }
0x15d4   :  { %v2056_v21 = vpop.f32.mrb[56].mxu1 }
0x15d5   :  { %v2057_v25 = vadd.f32 %v4251_v36, %v2056_v21  ;;  %v4776_v22 = vpop.f32.mrb[57].mxu1 }
0x15d6   :  { %v2059_v23 = vpop.f32.mrb[58].mxu1 }
0x15d7   :  { %v2060_v24 = vadd.f32 %v4251_v36, %v2059_v23  ;;  %v4777_v26 = vpop.f32.mrb[59].mxu1  ;;  %v2063_v27 = vadd.f32 %v2057_v25, %v1854_v63  ;;  %v4304_v23 = vld [vmem:[%s6406_s23 + $0x1] ss:$0 sm:$0xff] }
0x15d9   :  { %v2067_v28 = vsel %vm214_vm7, %v2063_v27, 0.0  ;;  %v2064_v29 = vadd.f32 %v2060_v24, %v1855_v1 }
0x15da   :  { %2068 = vadd.xlane.f32.xlu1 %v2067_v28 }
0x15db   :  { %v2070_v31 = vsel %vm214_vm7, %v2064_v29, 0.0 }
0x15dc   :  { %2071 = vadd.xlane.f32.xlu0 %v2070_v31 }
0x1667   :  { %v2069_v32 = vpop.xlane.xlu1 %2068 }
0x1668   :  { %v2073_v33 = vmul.f32 0.015625, %v2069_v32 }
0x1669   :  { %v2072_v44 = vpop.xlane.xlu0 %2071 }
0x166a   :  { %v2075_v37 = vsub.f32 %v2063_v27, %v2073_v33  ;;  %v2074_v19 = vmul.f32 0.015625, %v2072_v44 }
0x166c   :  { %v2076_v39 = vsub.f32 %v2064_v29, %v2074_v19  ;;  %v2077_v40 = vmul.f32 %v2075_v37, %v2075_v37 }
0x166e   :  { %v2079_v41 = vsel %vm214_vm7, %v2077_v40, 0.0  ;;  %v2078_v42 = vmul.f32 %v2076_v39, %v2076_v39 }
0x166f   :  { %2080 = vadd.xlane.f32.xlu1 %v2079_v41 }
0x1670   :  { %v2082_v45 = vsel %vm214_vm7, %v2078_v42, 0.0 }
0x1673   :  { %2083 = vadd.xlane.f32.xlu1 %v2082_v45 }
0x16fc   :  { %v2081_v55 = vpop.xlane.xlu1 %2080 }
0x16fd   :  { %v2085_v57 = vmul.f32 0.015625, %v2081_v55 }
0x16ff   :  { %v2087_v54 = vadd.f32 1e-12, %v2085_v57 }
0x1700   :  { %v2084_v62 = vpop.xlane.xlu1 %2083 }
0x1701   :  { %5124 = vrsqrt.f32 %v2087_v54  ;;  %v2086_v38 = vmul.f32 0.015625, %v2084_v62 }
0x1703   :  { %v2088_v63 = vadd.f32 1e-12, %v2086_v38 }
0x1705   :  { %5126 = vrsqrt.f32 %v2088_v63 }
0x170b   :  { %v5125_v1 = vpop.eup %5124 }
0x170c   :  { %v2091_v2 = vmul.f32 %v5125_v1, %v2075_v37 }
0x170e   :  { %v2099_v43 = vmul.f32 %v4260_v0, %v2091_v2 }
0x170f   :  { %v5127_v3 = vpop.eup %5126 }
0x1710   :  { %v2092_v4 = vmul.f32 %v5127_v3, %v2076_v39  ;;  %v5910_v8 = vadd.f32 %v4261_v5, %v2099_v43 }
0x1712   :  { %v2100_v7 = vmul.f32 %v4260_v0, %v2092_v4 }
0x1714   :  { %v5912_v18 = vadd.f32 %v4261_v5, %v2100_v7 }
0x1716   :  { %v2153_v9 = vpack.c.bf16 %v5912_v18, %v5910_v8 }
0x1718   :  { %4787 = vmatmul.mubr.msk.bf16.vlgmr.msra.gmra.mrb[56].mxu0 %vm214_vm7, %v2153_v9  ;;  %4811 = vmatmul.mubr.msk.bf16.vlgmr.msra.gmra.mrb[60].mxu1 %vm214_vm7, %v2153_v9 }
0x1719   :  { %4791 = vmatpush3.bf16.msra.mxu0 %v5054_v34  ;;  %4798 = vmatprep.mubr.msk.bf16.mxu0 %vm5218_vm8, %v5217_v60 }
0x171a   :  { %4792 = vmatprep.subr.bf16.mxu0 %v5217_v60  ;;  %4822 = vmatprep.mubr.msk.bf16.mxu1 %vm5218_vm8, %v5217_v60 }
0x171d   :  { %4793 = vmatpush3.bf16.msra.mxu0 %v5055_v10 }
0x171e   :  { %4794 = vmatprep.subr.bf16.mxu0 %v5217_v60 }
0x1721   :  { %4795 = vmatpush3.bf16.msra.mxu0 %v5056_v11  ;;  %v6001_v11 = vld [vmem:[%s6343_s12 + $0x28] sm:$0xff]  }
0x1722   :  { %4796 = vmatprep.subr.bf16.mxu0 %v5217_v60 }
0x1725   :  { %4797 = vmatpush3.bf16.msra.mxu0 %v5057_v12 }
0x1726   :  { %4814 = vmatprep.subr.bf16.mxu0 %v5217_v60 }
0x1728   :  { %4799 = vmatmul.mubr.msk.bf16.vlgmr.msra.gmra.mrb[60].mxu0 %vm214_vm7, %v2153_v9 }
0x1729   :  { %4816 = vmatprep.mubr.msk.bf16.mxu0 %vm5218_vm8, %v5217_v60 }
0x17eb   :  { %v2221_v48 = vpop.f32.mrb[56].mxu0  ;;  %v2363_v6 = vpop.f32.mrb[60].mxu1 }
0x17ec   :  { %v2364_v56 = vadd.f32 %v4310_v30, %v2363_v6  ;;  %v4788_v14 = vpop.f32.mrb[57].mxu0  ;;  %v4812_v15 = vpop.f32.mrb[61].mxu1  ;;  %v2222_v29 = vadd.f32 %v4298_v16, %v2221_v48 }
0x17ed   :  { %v2224_v17 = vpop.f32.mrb[58].mxu0  ;;  %v2366_v20 = vpop.f32.mrb[62].mxu1  ;;  %v6010_v14 = vld [vmem:[%s6343_s12 + $0x20] sm:$0xff]  }
0x17ee   :  { %v5947_v59 = vpack.c.bf16 %v2364_v56, %v2364_v56  ;;  %v5949_v35 = vadd.f32 %v4298_v16, %v2224_v17  ;;  %v5951_v36 = vadd.f32 %v4310_v30, %v2366_v20  ;;  %v4789_v21 = vpop.f32.mrb[59].mxu0  ;;  %v4813_v25 = vpop.f32.mrb[63].mxu1  ;;  %v5967_v37 = vpack.c.bf16 %v2222_v29, %v2222_v29 }
0x17f0   :  { %v2437_v22 = vsel %vm194_vm3, %v5947_v59, 0 }
0x17f1   :  { %4821 = vmatpush3.bf16.msra.mxu1 %v2437_v22 }
0x17f2   :  { %4832 = vmatprep.subr.bf16.mxu1 %v5217_v60 }
0x17fb   :  { %v2292_v24 = vpop.f32.mrb[60].mxu0 }
0x17fc   :  { %v2293_v26 = vadd.f32 %v4304_v23, %v2292_v24  ;;  %v4800_v27 = vpop.f32.mrb[61].mxu0 }
0x17fd   :  { %v2295_v28 = vpop.f32.mrb[62].mxu0 }
0x17fe   :  { %v5959_v31 = vpack.c.bf16 %v2293_v26, %v2293_v26  ;;  %v5961_v32 = vadd.f32 %v4304_v23, %v2295_v28  ;;  %v4801_v33 = vpop.f32.mrb[63].mxu0 }
0x1800   :  { %2484 = vrot.lane.b32.xlu1 %v5959_v31, %s5219_s3  ;;  %v2377_v44 = vsel %vm515_vm9, %v5959_v31, 0 }
0x1801   :  { %4815 = vmatpush3.bf16.xpose.msra.mxu0 %v2377_v44 }
0x1802   :  { %4826 = vmatprep.subr.bf16.mxu0 %v5217_v60 }
0x1804   :  { %2481 = vrot.lane.b32.xlu1 %v5967_v37, %s5219_s3 }
0x1808   :  { %4817 = vmatmul.mubr.msk.bf16.vlgmr.msra.gmra.mrb[64].mxu0 %vm515_vm9, %v5967_v37 }
0x1809   :  { %4828 = vmatprep.mubr.msk.bf16.mxu0 %vm5218_vm8, %v5217_v60 }
0x1872   :  { %v2485_v19 = vpop.permute.xlu1 %2484 }
0x1873   :  { %v2490_v39 = vsel %vm515_vm9, %v2485_v19, 0 }
0x1874   :  { %4827 = vmatpush3.bf16.xpose.msra.mxu0 %v2490_v39 }
0x1875   :  { %4838 = vmatprep.subr.bf16.mxu0 %v5217_v60 }
0x1876   :  { %v2482_v40 = vpop.permute.xlu1 %2481 }
0x187b   :  { %4829 = vmatmul.mubr.msk.bf16.vlgmr.msra.gmra.mrb[68].mxu0 %vm515_vm9, %v2482_v40 }
0x187c   :  { %4840 = vmatprep.mubr.msk.bf16.mxu0 %vm5218_vm8, %v5217_v60  ;;  %4839 = vmatpush3.bf16.msra.mxu0 %v6001_v11 }
0x187d   :  { %4850 = vmatprep.subr.bf16.mxu0 %v5217_v60 }
0x18db   :  { %v2413_v41 = vpop.f32.mrb[64].mxu0 }
0x18dc   :  { %v2419_v42 = vmul.f32 0.25, %v2413_v41  ;;  %v4818_v45 = vpop.f32.mrb[65].mxu0 }
0x18dd   :  { %v2416_v46 = vpop.f32.mrb[66].mxu0 }
0x18de   :  { %v4819_v49 = vpop.f32.mrb[67].mxu0  ;;  %v2420_v50 = vsel %vm569_vm11, -3.4028235e+38, %v2419_v42 }
0x18df   :  { %v2421_v51 = vsel %vm571_vm12, %v2420_v50, -inf }
0x18e0   :  { %2422 = vmax.xlane.f32.xlu0 %v2421_v51 }
0x194e   :  { %v2526_v52 = vpop.f32.mrb[68].mxu0 }
0x194f   :  { %v2532_v58 = vmul.f32 0.25, %v2526_v52  ;;  %v4830_v47 = vpop.f32.mrb[69].mxu0 }
0x1950   :  { %v2529_v53 = vpop.f32.mrb[70].mxu0 }
0x1951   :  { %v4831_v55 = vpop.f32.mrb[71].mxu0  ;;  %v2533_v57 = vsel %vm569_vm11, -3.4028235e+38, %v2532_v58 }
0x1952   :  { %v2534_v54 = vsel %vm571_vm12, %v2533_v57, -inf }
0x1953   :  { %2535 = vmax.xlane.f32.xlu1 %v2534_v54 }
0x1964   :  { %2694 = vrot.lane.b32.xlu1 %v5967_v37, %s5221_s15 }
0x196d   :  { %v2423_v62 = vpop.xlane.xlu0 %2422 }
0x196e   :  { %v2424_v38 = vsub.f32 %v2420_v50, %v2423_v62 }
0x1970   :  { %v2425_v63 = vmul.f32 1.442695, %v2424_v38 }
0x1972   :  { %5128 = vpow2.f32 %v2425_v63 }
0x197c   :  { %v5129_v1 = vpop.eup %5128 }
0x197d   :  { %v2427_v2 = vsel %vm571_vm12, %v5129_v1, 0.0 }
0x197e   :  { %2428 = vadd.xlane.f32.xlu0 %v2427_v2 }
0x19e0   :  { %v2536_v0 = vpop.xlane.xlu1 %2535 }
0x19e1   :  { %v2537_v3 = vsub.f32 %v2533_v57, %v2536_v0 }
0x19e3   :  { %v2538_v43 = vmul.f32 1.442695, %v2537_v3 }
0x19e4   :  { %v2695_v33 = vpop.permute.xlu1 %2694 }
0x19e5   :  { %5130 = vpow2.f32 %v2538_v43 }
0x19ef   :  { %v5131_v4 = vpop.eup %5130 }
0x19f0   :  { %v2540_v5 = vsel %vm571_vm12, %v5131_v4, 0.0 }
0x19f1   :  { %2541 = vadd.xlane.f32.xlu0 %v2540_v5 }
0x1a07   :  { %2547 = vrot.lane.b32.xlu0 %v5947_v59, %s5219_s3 }
0x1a0b   :  { %v2429_v7 = vpop.xlane.xlu0 %2428  ;;  %2696 = vrot.lane.b32.xlu0 %v5959_v31, %s5221_s15 }
0x1a0c   :  { %5132 = vrcp.f32 %v2429_v7 }
0x1a16   :  { %v5133_v34 = vpop.eup %5132 }
0x1a17   :  { %v2431_v9 = vmul.f32 %v5133_v34, %v5129_v1 }
0x1a19   :  { %v2432_v10 = vpack.c.bf16 %v2431_v9, %v2431_v9 }
0x1a1b   :  { %4823 = vmatmul.mubr.msk.bf16.vlgmr.msra.gmra.mrb[64].mxu1 %vm571_vm12, %v2432_v10 }
0x1a1c   :  { %4834 = vmatprep.mubr.msk.bf16.mxu1 %vm5218_vm8, %v5217_v60 }
0x1a7e   :  { %v2542_v12 = vpop.xlane.xlu0 %2541 }
0x1a7f   :  { %5134 = vrcp.f32 %v2542_v12 }
0x1a82   :  { %v2548_v30 = vpop.permute.xlu0 %2547 }
0x1a83   :  { %v2553_v48 = vsel %vm194_vm3, %v2548_v30, 0 }
0x1a84   :  { %4833 = vmatpush3.bf16.msra.mxu1 %v2553_v48 }
0x1a85   :  { %4844 = vmatprep.subr.bf16.mxu1 %v5217_v60 }
0x1a86   :  { %v2697_v22 = vpop.permute.xlu0 %2696 }
0x1a87   :  { %v2702_v28 = vsel %vm515_vm9, %v2697_v22, 0 }
0x1a89   :  { %v5135_v6 = vpop.eup %5134 }
0x1a8a   :  { %v2544_v56 = vmul.f32 %v5135_v6, %v5131_v4 }
0x1a8c   :  { %v2545_v15 = vpack.c.bf16 %v2544_v56, %v2544_v56 }
0x1a8e   :  { %4835 = vmatmul.mubr.msk.bf16.vlgmr.msra.gmra.mrb[68].mxu1 %vm571_vm12, %v2545_v15 }
0x1a8f   :  { %4845 = vmatpush3.bf16.msra.mxu1 %v6010_v14  ;;  %4846 = vmatprep.mubr.msk.bf16.mxu1 %vm5218_vm8, %v5217_v60 }
0x1a90   :  { %4856 = vmatprep.subr.bf16.mxu1 %v5217_v60 }
0x1aee   :  { %v2473_v16 = vpop.f32.mrb[64].mxu1 }
0x1aef   :  { %v2479_v17 = vpack.c.bf16 %v2473_v16, %v2473_v16  ;;  %v4824_v20 = vpop.f32.mrb[65].mxu1 }
0x1af0   :  { %v2476_v21 = vpop.f32.mrb[66].mxu1 }
0x1af1   :  { %v4825_v25 = vpop.f32.mrb[67].mxu1  ;;  %4847 = vmatmul.mubr.msk.bf16.vlgmr.msra.gmra.mrb[72].mxu1 %vm515_vm9, %v2479_v17  ;;  %v6067_v21 = vpack.c.bf16 %v5949_v35, %v5949_v35  ;;  %v6076_v35 = vpack.c.bf16 %v5961_v32, %v5961_v32 }
0x1af2   :  { %4858 = vmatprep.mubr.msk.bf16.mxu1 %vm5218_vm8, %v5217_v60 }
0x1b61   :  { %v2589_v23 = vpop.f32.mrb[68].mxu1 }
0x1b62   :  { %v2595_v24 = vpack.c.bf16 %v2589_v23, %v2589_v23  ;;  %v4836_v26 = vpop.f32.mrb[69].mxu1 }
0x1b63   :  { %v2592_v27 = vpop.f32.mrb[70].mxu1 }
0x1b64   :  { %v4837_v29 = vpop.f32.mrb[71].mxu1  ;;  %4841 = vmatmul.mubr.msk.bf16.vlgmr.msra.gmra.mrb[72].mxu0 %vm515_vm9, %v2595_v24 }
0x1b65   :  { %4851 = vmatpush3.bf16.xpose.msra.mxu0 %v2702_v28  ;;  %4852 = vmatprep.mubr.msk.bf16.mxu0 %vm5218_vm8, %v5217_v60 }
0x1b66   :  { %4862 = vmatprep.subr.bf16.mxu0 %v5217_v60 }
0x1b6c   :  { %4853 = vmatmul.mubr.msk.bf16.vlgmr.msra.gmra.mrb[76].mxu0 %vm515_vm9, %v2695_v33 }
0x1b6d   :  { %4864 = vmatprep.mubr.msk.bf16.mxu0 %vm5218_vm8, %v5217_v60 }
0x1bc4   :  { %v2688_v44 = vpop.f32.mrb[72].mxu1 }
0x1bc5   :  { %v4848_v19 = vpop.f32.mrb[73].mxu1 }
0x1bc6   :  { %v2691_v39 = vpop.f32.mrb[74].mxu1 }
0x1bc7   :  { %v4849_v40 = vpop.f32.mrb[75].mxu1 }
0x1c37   :  { %v2639_v41 = vpop.f32.mrb[72].mxu0 }
0x1c38   :  { %v6028_v42 = vadd.f32 %v2688_v44, %v2639_v41  ;;  %v4842_v45 = vpop.f32.mrb[73].mxu0  ;;  %v6086_v44 = vld [vmem:[%s6343_s12 + $0x38] sm:$0xff]  }
0x1c39   :  { %v2642_v46 = vpop.f32.mrb[74].mxu0 }
0x1c3a   :  { %v4843_v49 = vpop.f32.mrb[75].mxu0 }
0x1c3f   :  { %v2738_v50 = vpop.f32.mrb[76].mxu0 }
0x1c40   :  { %v2744_v51 = vmul.f32 0.25, %v2738_v50  ;;  %v4854_v52 = vpop.f32.mrb[77].mxu0  ;;  %v6109_v50 = vpack.c.bf16 %v5951_v36, %v5951_v36 }
0x1c41   :  { %v2741_v58 = vpop.f32.mrb[78].mxu0 }
0x1c42   :  { %v4855_v47 = vpop.f32.mrb[79].mxu0  ;;  %v2745_v53 = vsel %vm569_vm11, -3.4028235e+38, %v2744_v51 }
0x1c43   :  { %v2746_v55 = vsel %vm571_vm12, %v2745_v53, -inf }
0x1c44   :  { %2747 = vmax.xlane.f32.xlu0 %v2746_v55  ;;  %v3087_v55 = vsel %vm194_vm3, %v6109_v50, 0 }
0x1c5a   :  { %2758 = vrot.lane.b32.xlu0 %v5947_v59, %s5221_s15 }
0x1c5e   :  { %2857 = vrot.lane.b32.xlu0 %v5967_v37, %s5222_s26 }
0x1cd1   :  { %v2748_v57 = vpop.xlane.xlu0 %2747 }
0x1cd2   :  { %v2749_v54 = vsub.f32 %v2745_v53, %v2748_v57 }
0x1cd4   :  { %v2750_v62 = vmul.f32 1.442695, %v2749_v54 }
0x1cd5   :  { %v2759_v38 = vpop.permute.xlu0 %2758 }
0x1cd6   :  { %5136 = vpow2.f32 %v2750_v62  ;;  %v2764_v63 = vsel %vm194_vm3, %v2759_v38, 0 }
0x1cd7   :  { %4857 = vmatpush3.bf16.msra.mxu1 %v2764_v63 }
0x1cd8   :  { %4868 = vmatprep.subr.bf16.mxu1 %v5217_v60 }
0x1cd9   :  { %v2858_v7 = vpop.permute.xlu0 %2857 }
0x1ce0   :  { %v5137_v1 = vpop.eup %5136 }
0x1ce1   :  { %v2752_v2 = vsel %vm571_vm12, %v5137_v1, 0.0 }
0x1ce2   :  { %2753 = vadd.xlane.f32.xlu1 %v2752_v2 }
0x1cf3   :  { %2859 = vrot.lane.b32.xlu1 %v5959_v31, %s5222_s26  ;;  %v6053_v31 = vld [vmem:[%s6343_s12 + $0x30] sm:$0xff]   ;;  %s6418_s12 = sld [smem:[#allocation29_spill]] }
0x1cf4   :  { %4863 = vmatpush3.bf16.msra.mxu0 %v6053_v31 }
0x1cf5   :  { %4874 = vmatprep.subr.bf16.mxu0 %v5217_v60 }
0x1d6f   :  { %v2754_v0 = vpop.xlane.xlu1 %2753 }
0x1d70   :  { %5138 = vrcp.f32 %v2754_v0 }
0x1d73   :  { %v2860_v43 = vpop.permute.xlu1 %2859 }
0x1d74   :  { %v2865_v5 = vsel %vm515_vm9, %v2860_v43, 0 }
0x1d7a   :  { %v5139_v37 = vpop.eup %5138 }
0x1d7b   :  { %v2756_v3 = vmul.f32 %v5139_v37, %v5137_v1 }
0x1d7d   :  { %v2757_v4 = vpack.c.bf16 %v2756_v3, %v2756_v3 }
0x1d7f   :  { %4859 = vmatmul.mubr.msk.bf16.vlgmr.msra.gmra.mrb[76].mxu1 %vm571_vm12, %v2757_v4 }
0x1d80   :  { %4869 = vmatpush3.bf16.xpose.msra.mxu1 %v2865_v5  ;;  %4870 = vmatprep.mubr.msk.bf16.mxu1 %vm5218_vm8, %v5217_v60 }
0x1d81   :  { %4880 = vmatprep.subr.bf16.mxu1 %v5217_v60 }
0x1d87   :  { %4871 = vmatmul.mubr.msk.bf16.vlgmr.msra.gmra.mrb[80].mxu1 %vm515_vm9, %v2858_v7 }
0x1d88   :  { %4882 = vmatprep.mubr.msk.bf16.mxu1 %vm5218_vm8, %v5217_v60  ;;  %4881 = vmatpush3.bf16.msra.mxu1 %v6086_v44 }
0x1d89   :  { %4892 = vmatprep.subr.bf16.mxu1 %v5217_v60 }
0x1e52   :  { %v2800_v34 = vpop.f32.mrb[76].mxu1 }
0x1e53   :  { %v2806_v9 = vpack.c.bf16 %v2800_v34, %v2800_v34  ;;  %v4860_v10 = vpop.f32.mrb[77].mxu1 }
0x1e54   :  { %v2803_v12 = vpop.f32.mrb[78].mxu1 }
0x1e55   :  { %v4861_v30 = vpop.f32.mrb[79].mxu1  ;;  %4865 = vmatmul.mubr.msk.bf16.vlgmr.msra.gmra.mrb[80].mxu0 %vm515_vm9, %v2806_v9 }
0x1e56   :  { %4876 = vmatprep.mubr.msk.bf16.mxu0 %vm5218_vm8, %v5217_v60 }
0x1e5a   :  { %v2901_v48 = vpop.f32.mrb[80].mxu1 }
0x1e5b   :  { %v2907_v6 = vmul.f32 0.25, %v2901_v48  ;;  %v4872_v56 = vpop.f32.mrb[81].mxu1 }
0x1e5c   :  { %v2904_v15 = vpop.f32.mrb[82].mxu1 }
0x1e5d   :  { %v4873_v16 = vpop.f32.mrb[83].mxu1  ;;  %v2908_v17 = vsel %vm569_vm11, -3.4028235e+38, %v2907_v6 }
0x1e5e   :  { %v2909_v20 = vsel %vm571_vm12, %v2908_v17, -inf }
0x1e5f   :  { %2910 = vmax.xlane.f32.xlu0 %v2909_v20 }
0x1e75   :  { %2921 = vrot.lane.b32.xlu0 %v5947_v59, %s5222_s26 }
0x1e79   :  { %3131 = vrot.lane.b32.xlu0 %v6067_v21, %s5219_s3 }
0x1eec   :  { %v2911_v25 = vpop.xlane.xlu0 %2910 }
0x1eed   :  { %v2912_v22 = vsub.f32 %v2908_v17, %v2911_v25 }
0x1eef   :  { %v2913_v23 = vmul.f32 1.442695, %v2912_v22 }
0x1ef0   :  { %v2922_v24 = vpop.permute.xlu0 %2921 }
0x1ef1   :  { %5140 = vpow2.f32 %v2913_v23  ;;  %v2927_v61 = vsel %vm194_vm3, %v2922_v24, 0 }
0x1ef2   :  { %4875 = vmatpush3.bf16.msra.mxu0 %v2927_v61 }
0x1ef3   :  { %4886 = vmatprep.subr.bf16.mxu0 %v5217_v60 }
0x1ef4   :  { %v3132_v49 = vpop.permute.xlu0 %3131 }
0x1efb   :  { %v5141_v26 = vpop.eup %5140 }
0x1efc   :  { %v2915_v59 = vsel %vm571_vm12, %v5141_v26, 0.0 }
0x1efd   :  { %2916 = vadd.xlane.f32.xlu1 %v2915_v59 }
0x1f0e   :  { %3134 = vrot.lane.b32.xlu1 %v6076_v35, %s5219_s3 }
0x1f28   :  { %v2850_v27 = vpop.f32.mrb[80].mxu0 }
0x1f29   :  { %v6081_v28 = vadd.f32 %v2850_v27, %v6028_v42  ;;  %v4866_v29 = vpop.f32.mrb[81].mxu0  ;;  %v3027_v42 = vsel %vm515_vm9, %v6076_v35, 0 }
0x1f2a   :  { %v2853_v33 = vpop.f32.mrb[82].mxu0 }
0x1f2b   :  { %v4867_v19 = vpop.f32.mrb[83].mxu0 }
0x1f8a   :  { %v2917_v32 = vpop.xlane.xlu1 %2916 }
0x1f8b   :  { %5142 = vrcp.f32 %v2917_v32 }
0x1f8e   :  { %v3135_v45 = vpop.permute.xlu1 %3134 }
0x1f8f   :  { %v3140_v46 = vsel %vm515_vm9, %v3135_v45, 0 }
0x1f95   :  { %v5143_v39 = vpop.eup %5142 }
0x1f96   :  { %v2919_v40 = vmul.f32 %v5143_v39, %v5141_v26 }
0x1f98   :  { %v2920_v41 = vpack.c.bf16 %v2919_v40, %v2919_v40 }
0x1f9a   :  { %4877 = vmatmul.mubr.msk.bf16.vlgmr.msra.gmra.mrb[84].mxu0 %vm571_vm12, %v2920_v41 }
0x1f9b   :  { %4887 = vmatpush3.bf16.xpose.msra.mxu0 %v3027_v42  ;;  %4888 = vmatprep.mubr.msk.bf16.mxu0 %vm5218_vm8, %v5217_v60 }
0x1f9c   :  { %4898 = vmatprep.subr.bf16.mxu0 %v5217_v60 }
0x1fa2   :  { %4889 = vmatmul.mubr.msk.bf16.vlgmr.msra.gmra.mrb[88].mxu0 %vm515_vm9, %v6067_v21 }
0x1fa3   :  { %4899 = vmatpush3.bf16.xpose.msra.mxu0 %v3140_v46  ;;  %4900 = vmatprep.mubr.msk.bf16.mxu0 %vm5218_vm8, %v5217_v60 }
0x1fa4   :  { %4910 = vmatprep.subr.bf16.mxu0 %v5217_v60 }
0x1faa   :  { %4901 = vmatmul.mubr.msk.bf16.vlgmr.msra.gmra.mrb[92].mxu0 %vm515_vm9, %v3132_v49 }
0x1fab   :  { %4911 = vmatpush3.bf16.msra.mxu0 %v6001_v11  ;;  %4912 = vmatprep.mubr.msk.bf16.mxu0 %vm5218_vm8, %v5217_v60 }
0x1fac   :  { %4922 = vmatprep.subr.bf16.mxu0 %v5217_v60 }
0x206d   :  { %v2963_v51 = vpop.f32.mrb[84].mxu0 }
0x206e   :  { %v2969_v52 = vpack.c.bf16 %v2963_v51, %v2963_v51  ;;  %v4878_v58 = vpop.f32.mrb[85].mxu0 }
0x206f   :  { %v2966_v47 = vpop.f32.mrb[86].mxu0 }
0x2070   :  { %v4879_v53 = vpop.f32.mrb[87].mxu0  ;;  %4883 = vmatmul.mubr.msk.bf16.vlgmr.msra.gmra.mrb[84].mxu1 %vm515_vm9, %v2969_v52 }
0x2071   :  { %4893 = vmatpush3.bf16.msra.mxu1 %v3087_v55  ;;  %4894 = vmatprep.mubr.msk.bf16.mxu1 %vm5218_vm8, %v5217_v60 }
0x2072   :  { %4904 = vmatprep.subr.bf16.mxu1 %v5217_v60 }
0x2075   :  { %v3063_v11 = vpop.f32.mrb[88].mxu0 }
0x2076   :  { %v3069_v57 = vmul.f32 0.25, %v3063_v11  ;;  %v4890_v36 = vpop.f32.mrb[89].mxu0 }
0x2077   :  { %v3066_v54 = vpop.f32.mrb[90].mxu0 }
0x2078   :  { %v4891_v62 = vpop.f32.mrb[91].mxu0  ;;  %v3070_v38 = vsel %vm1225_vm13, -3.4028235e+38, %v3069_v57 }
0x2079   :  { %v3071_v63 = vsel %vm571_vm12, %v3070_v38, -inf }
0x207a   :  { %3072 = vmax.xlane.f32.xlu0 %v3071_v63 }
0x207d   :  { %v3176_v1 = vpop.f32.mrb[92].mxu0 }
0x207e   :  { %v3182_v2 = vmul.f32 0.25, %v3176_v1  ;;  %v4902_v0 = vpop.f32.mrb[93].mxu0 }
0x207f   :  { %v3179_v37 = vpop.f32.mrb[94].mxu0 }
0x2080   :  { %v4903_v3 = vpop.f32.mrb[95].mxu0  ;;  %v3183_v43 = vsel %vm1225_vm13, -3.4028235e+38, %v3182_v2 }
0x2081   :  { %v3184_v4 = vsel %vm571_vm12, %v3183_v43, -inf }
0x2082   :  { %3185 = vmax.xlane.f32.xlu1 %v3184_v4 }
0x2093   :  { %3334 = vrot.lane.b32.xlu1 %v6076_v35, %s5221_s15 }
0x2097   :  { %3332 = vrot.lane.b32.xlu1 %v6067_v21, %s5221_s15 }
0x2107   :  { %v3073_v5 = vpop.xlane.xlu0 %3072 }
0x2108   :  { %v3074_v7 = vsub.f32 %v3070_v38, %v3073_v5 }
0x210a   :  { %v3075_v34 = vmul.f32 1.442695, %v3074_v7 }
0x210c   :  { %5144 = vpow2.f32 %v3075_v34 }
0x210f   :  { %v3186_v9 = vpop.xlane.xlu1 %3185 }
0x2110   :  { %v3187_v10 = vsub.f32 %v3183_v43, %v3186_v9 }
0x2112   :  { %v3188_v12 = vmul.f32 1.442695, %v3187_v10 }
0x2113   :  { %v3335_v42 = vpop.permute.xlu1 %3334 }
0x2114   :  { %5146 = vpow2.f32 %v3188_v12  ;;  %v3340_v51 = vsel %vm515_vm9, %v3335_v42, 0 }
0x2116   :  { %v5145_v30 = vpop.eup %5144 }
0x2117   :  { %v3077_v48 = vsel %vm571_vm12, %v5145_v30, 0.0  ;;  %v3333_v58 = vpop.permute.xlu1 %3332 }
0x2118   :  { %3078 = vadd.xlane.f32.xlu0 %v3077_v48 }
0x211e   :  { %v5147_v6 = vpop.eup %5146 }
0x211f   :  { %v3190_v56 = vsel %vm571_vm12, %v5147_v6, 0.0 }
0x2120   :  { %3191 = vadd.xlane.f32.xlu0 %v3190_v56 }
0x2136   :  { %3197 = vrot.lane.b32.xlu0 %v6109_v50, %s5219_s3  ;;  %s5223_s3 = smov [#allocation5]  }
0x2143   :  { %v3013_v15 = vpop.f32.mrb[84].mxu1 }
0x2144   :  { %v6132_v16 = vadd.f32 %v3013_v15, %v6081_v28  ;;  %v4884_v17 = vpop.f32.mrb[85].mxu1 }
0x2145   :  { %v3016_v20 = vpop.f32.mrb[86].mxu1 }
0x2146   :  { %v4885_v25 = vpop.f32.mrb[87].mxu1 }
0x21a5   :  { %v3079_v22 = vpop.xlane.xlu0 %3078 }
0x21a6   :  { %5148 = vrcp.f32 %v3079_v22 }
0x21ad   :  { %v3192_v23 = vpop.xlane.xlu0 %3191 }
0x21ae   :  { %5150 = vrcp.f32 %v3192_v23  ;;  %v4344_v23 = vld [vmem:[%s6344_s13 + $0x1] ss:$0 sm:$0xff]  ;;  %s4154_s13 = sshll.u32 %s5223_s3, 4  ;;  %s4155_s13 = int_to_ptr.vmem [resolvable:$true] %s4154_s13 }
0x21af   :  { %p5195_p6 = scmp.lt.s32.totalorder %s4155_s13, %s4155_s13 }
0x21b0   :  { %v5149_v24 = vpop.eup %5148 }
0x21b1   :  { %v3081_v61 = vmul.f32 %v5149_v24, %v5145_v30  ;;  %v3198_v26 = vpop.permute.xlu0 %3197 }
0x21b2   :  { %v3203_v27 = vsel %vm194_vm3, %v3198_v26, 0 }
0x21b3   :  { %v3082_v59 = vpack.c.bf16 %v3081_v61, %v3081_v61 }
0x21b5   :  { %4895 = vmatmul.mubr.msk.bf16.vlgmr.msra.gmra.mrb[88].mxu1 %vm571_vm12, %v3082_v59 }
0x21b6   :  { %4905 = vmatpush3.bf16.msra.mxu1 %v3203_v27  ;;  %4906 = vmatprep.mubr.msk.bf16.mxu1 %vm5218_vm8, %v5217_v60 }
0x21b7   :  { %4916 = vmatprep.subr.bf16.mxu1 %v5217_v60 }
0x21b8   :  { %v5151_v28 = vpop.eup %5150 }
0x21b9   :  { %v3194_v29 = vmul.f32 %v5151_v28, %v5147_v6 }
0x21bb   :  { %v3195_v33 = vpack.c.bf16 %v3194_v29, %v3194_v29 }
0x21bd   :  { %4907 = vmatmul.mubr.msk.bf16.vlgmr.msra.gmra.mrb[92].mxu1 %vm571_vm12, %v3195_v33 }
0x21be   :  { %4917 = vmatpush3.bf16.msra.mxu1 %v6010_v14  ;;  %4918 = vmatprep.mubr.msk.bf16.mxu1 %vm5218_vm8, %v5217_v60 }
0x21bf   :  { %4928 = vmatprep.subr.bf16.mxu1 %v5217_v60 }
0x2288   :  { %v3123_v19 = vpop.f32.mrb[88].mxu1 }
0x2289   :  { %v3129_v32 = vpack.c.bf16 %v3123_v19, %v3123_v19  ;;  %v4896_v39 = vpop.f32.mrb[89].mxu1 }
0x228a   :  { %v3126_v40 = vpop.f32.mrb[90].mxu1 }
0x228b   :  { %v4897_v41 = vpop.f32.mrb[91].mxu1  ;;  %4919 = vmatmul.mubr.msk.bf16.vlgmr.msra.gmra.mrb[96].mxu1 %vm515_vm9, %v3129_v32 }
0x228c   :  { %4930 = vmatprep.mubr.msk.bf16.mxu1 %vm5218_vm8, %v5217_v60 }
0x2290   :  { %v3239_v45 = vpop.f32.mrb[92].mxu1 }
0x2291   :  { %v3245_v46 = vpack.c.bf16 %v3239_v45, %v3239_v45  ;;  %v4908_v49 = vpop.f32.mrb[93].mxu1 }
0x2292   :  { %v3242_v14 = vpop.f32.mrb[94].mxu1 }
0x2293   :  { %v4909_v52 = vpop.f32.mrb[95].mxu1  ;;  %4913 = vmatmul.mubr.msk.bf16.vlgmr.msra.gmra.mrb[96].mxu0 %vm515_vm9, %v3245_v46 }
0x2294   :  { %4923 = vmatpush3.bf16.xpose.msra.mxu0 %v3340_v51  ;;  %4924 = vmatprep.mubr.msk.bf16.mxu0 %vm5218_vm8, %v5217_v60 }
0x2295   :  { %4934 = vmatprep.subr.bf16.mxu0 %v5217_v60 }
0x229b   :  { %4925 = vmatmul.mubr.msk.bf16.vlgmr.msra.gmra.mrb[100].mxu0 %vm515_vm9, %v3333_v58 }
0x229c   :  { %4935 = vmatpush3.bf16.msra.mxu0 %v6053_v31  ;;  %4936 = vmatprep.mubr.msk.bf16.mxu0 %vm5218_vm8, %v5217_v60 }
0x229d   :  { %4946 = vmatprep.subr.bf16.mxu0 %v5217_v60 }
0x235e   :  { %v3326_v47 = vpop.f32.mrb[96].mxu1 }
0x235f   :  { %v4920_v53 = vpop.f32.mrb[97].mxu1 }
0x2360   :  { %v3329_v55 = vpop.f32.mrb[98].mxu1 }
0x2361   :  { %v4921_v11 = vpop.f32.mrb[99].mxu1 }
0x2366   :  { %v3283_v57 = vpop.f32.mrb[96].mxu0 }
0x2367   :  { %v6157_v36 = vadd.f32 %v3326_v47, %v3283_v57  ;;  %v4914_v54 = vpop.f32.mrb[97].mxu0 }
0x2368   :  { %v3286_v62 = vpop.f32.mrb[98].mxu0 }
0x2369   :  { %v4915_v38 = vpop.f32.mrb[99].mxu0 }
0x236e   :  { %v3376_v63 = vpop.f32.mrb[100].mxu0 }
0x236f   :  { %v3382_v1 = vmul.f32 0.25, %v3376_v63  ;;  %v4926_v2 = vpop.f32.mrb[101].mxu0 }
0x2370   :  { %v3379_v0 = vpop.f32.mrb[102].mxu0 }
0x2371   :  { %v4927_v31 = vpop.f32.mrb[103].mxu0  ;;  %v3383_v37 = vsel %vm1225_vm13, -3.4028235e+38, %v3382_v1 }
0x2372   :  { %v3384_v3 = vsel %vm571_vm12, %v3383_v37, -inf }
0x2373   :  { %3385 = vmax.xlane.f32.xlu0 %v3384_v3 }
0x2389   :  { %3396 = vrot.lane.b32.xlu0 %v6109_v50, %s5221_s15  ;;  %s5190_s15 = scalar_lea.vmem %s4155_s13, 32 }
0x238a   :  { %p5191_p5 = scmp.ne.s32.totalorder %s4155_s13, %s5190_s15  ;;  %p5196_p7 = scmp.lt.s32.totalorder %s5190_s15, %s5190_s15 }
0x238c   :  { %p5197_p8 = por %p5196_p7, %p5195_p6 }
0x238d   :  { %3489 = vrot.lane.b32.xlu0 %v6067_v21, %s5222_s26 }
0x238e   :  { %p5198_p9 = pnand %p5197_p8, %p5191_p5 }
0x2400   :  { %v3386_v43 = vpop.xlane.xlu0 %3385 }
0x2401   :  { %v3387_v4 = vsub.f32 %v3383_v37, %v3386_v43 }
0x2403   :  { %v3388_v5 = vmul.f32 1.442695, %v3387_v4 }
0x2404   :  { %v3397_v7 = vpop.permute.xlu0 %3396 }
0x2405   :  { %5152 = vpow2.f32 %v3388_v5  ;;  %v3402_v34 = vsel %vm194_vm3, %v3397_v7, 0 }
0x2406   :  { %4929 = vmatpush3.bf16.msra.mxu1 %v3402_v34 }
0x2407   :  { %4940 = vmatprep.subr.bf16.mxu1 %v5217_v60 }
0x2408   :  { %v3490_v15 = vpop.permute.xlu0 %3489 }
0x240f   :  { %v5153_v9 = vpop.eup %5152 }
0x2410   :  { %v3390_v10 = vsel %vm571_vm12, %v5153_v9, 0.0 }
0x2411   :  { %3391 = vadd.xlane.f32.xlu1 %v3390_v10 }
0x2422   :  { %3491 = vrot.lane.b32.xlu1 %v6076_v35, %s5222_s26 }
0x249e   :  { %v3392_v12 = vpop.xlane.xlu1 %3391 }
0x249f   :  { %5154 = vrcp.f32 %v3392_v12  ;;  %v5062_v12 = vld [vmem:[%s6347_s16 + $0x20] sm:$0xff]  }
0x24a2   :  { %v3492_v48 = vpop.permute.xlu1 %3491 }
0x24a3   :  { %v3497_v56 = vsel %vm515_vm9, %v3492_v48, 0  ;;  %v5066_v48 = vld [vmem:[%s6408_s18 + $0x40] sm:$0xff]  }
0x24a9   :  { %v5155_v21 = vpop.eup %5154 }
0x24aa   :  { %v3394_v30 = vmul.f32 %v5155_v21, %v5153_v9  ;;  %v5064_v21 = vld [vmem:[%s6347_s16 + $0x30] sm:$0xff]  }
0x24ac   :  { %v3395_v6 = vpack.c.bf16 %v3394_v30, %v3394_v30  ;;  %v5065_v30 = vld [vmem:[%s6347_s16 + $0x38] sm:$0xff]  }
0x24ae   :  { %4931 = vmatmul.mubr.msk.bf16.vlgmr.msra.gmra.mrb[100].mxu1 %vm571_vm12, %v3395_v6  ;;  %v5067_v6 = vld [vmem:[%s6408_s18 + $0x48] sm:$0xff]  }
0x24af   :  { %4941 = vmatpush3.bf16.xpose.msra.mxu1 %v3497_v56  ;;  %4942 = vmatprep.mubr.msk.bf16.mxu1 %vm5218_vm8, %v5217_v60 }
0x24b0   :  { %4952 = vmatprep.subr.bf16.mxu1 %v5217_v60 }
0x24b6   :  { %4943 = vmatmul.mubr.msk.bf16.vlgmr.msra.gmra.mrb[104].mxu1 %vm515_vm9, %v3490_v15 }
0x24b7   :  { %4953 = vmatpush3.bf16.msra.mxu1 %v6086_v44  ;;  %4954 = vmatprep.mubr.msk.bf16.mxu1 %vm5218_vm8, %v5217_v60  ;;  %v3652_v44 = vadd.f32 %v4344_v23, %v6132_v16 }
0x24b8   :  { %4970 = vmatprep.subr.bf16.mxu1 %v5217_v60 }
0x24b9   :  { %v3654_v33 = vadd.f32 %v3652_v44, %v5910_v8  ;;  %v4347_v44 = vld [vmem:[%s6409_s2 + $0x1] ss:$0 sm:$0xff] }
0x24bb   :  { %v3660_v19 = vsel %vm214_vm7, %v3654_v33, 0.0 }
0x2581   :  { %v3438_v35 = vpop.f32.mrb[100].mxu1 }
0x2582   :  { %v3444_v17 = vpack.c.bf16 %v3438_v35, %v3438_v35  ;;  %v4932_v20 = vpop.f32.mrb[101].mxu1 }
0x2583   :  { %v3441_v25 = vpop.f32.mrb[102].mxu1 }
0x2584   :  { %v4933_v22 = vpop.f32.mrb[103].mxu1  ;;  %4937 = vmatmul.mubr.msk.bf16.vlgmr.msra.gmra.mrb[104].mxu0 %vm515_vm9, %v3444_v17 }
0x2585   :  { %4948 = vmatprep.mubr.msk.bf16.mxu0 %vm5218_vm8, %v5217_v60 }
0x2589   :  { %v3533_v24 = vpop.f32.mrb[104].mxu1 }
0x258a   :  { %v3539_v61 = vmul.f32 0.25, %v3533_v24  ;;  %v4944_v26 = vpop.f32.mrb[105].mxu1 }
0x258b   :  { %v3536_v59 = vpop.f32.mrb[106].mxu1 }
0x258c   :  { %v4945_v27 = vpop.f32.mrb[107].mxu1  ;;  %v3540_v28 = vsel %vm1225_vm13, -3.4028235e+38, %v3539_v61  ;;  %v4348_v59 = vld [vmem:[%s6410_s8 + $0x1] ss:$0 sm:$0xff] }
0x258d   :  { %v3541_v29 = vsel %vm571_vm12, %v3540_v28, -inf }
0x258e   :  { %3542 = vmax.xlane.f32.xlu1 %v3541_v29 }
0x2592   :  { %3661 = vadd.xlane.f32.xlu1 %v3660_v19  ;;  %v5068_v19 = vld [vmem:[%s6408_s18 + $0x50] sm:$0xff]  }
0x261b   :  { %v3543_v32 = vpop.xlane.xlu1 %3542 }
0x261c   :  { %v3544_v39 = vsub.f32 %v3540_v28, %v3543_v32  ;;  %v5069_v32 = vld [vmem:[%s6408_s18 + $0x58] sm:$0xff]  }
0x261e   :  { %v3545_v40 = vmul.f32 1.442695, %v3544_v39  ;;  %v5070_v39 = vld [vmem:[%s6408_s18 + $0x60] sm:$0xff]  }
0x2620   :  { %5156 = vpow2.f32 %v3545_v40  ;;  %v5071_v40 = vld [vmem:[%s6408_s18 + $0x68] sm:$0xff]  }
0x262a   :  { %v5157_v16 = vpop.eup %5156 }
0x262b   :  { %v3547_v41 = vsel %vm571_vm12, %v5157_v16, 0.0 }
0x262c   :  { %3548 = vadd.xlane.f32.xlu0 %v3547_v41  ;;  %v5073_v41 = vld [vmem:[%s6408_s18 + $0x78] sm:$0xff]  }
0x2642   :  { %3553 = vrot.lane.b32.xlu0 %v6109_v50, %s5222_s26 }
0x2657   :  { %v3482_v13 = vpop.f32.mrb[104].mxu0 }
0x2658   :  { %v3488_v42 = vadd.f32 %v3482_v13, %v6157_v36  ;;  %v4938_v45 = vpop.f32.mrb[105].mxu0  ;;  %v3662_v36 = vpop.xlane.xlu1 %3661  ;;  %v4358_v13 = vld [vmem:[%s6411_s5 + $0x1] ss:$0 sm:$0xff] }
0x2659   :  { %v3485_v8 = vpop.f32.mrb[106].mxu0  ;;  %v3666_v54 = vmul.f32 0.015625, %v3662_v36 }
0x265a   :  { %v4939_v46 = vpop.f32.mrb[107].mxu0 }
0x265b   :  { %v3668_v2 = vsub.f32 %v3654_v33, %v3666_v54 }
0x265d   :  { %v3670_v43 = vmul.f32 %v3668_v2, %v3668_v2 }
0x265f   :  { %v3672_v4 = vsel %vm214_vm7, %v3670_v43, 0.0 }
0x26b9   :  { %v3549_v49 = vpop.xlane.xlu0 %3548 }
0x26ba   :  { %5158 = vrcp.f32 %v3549_v49 }
0x26bd   :  { %v3554_v14 = vpop.permute.xlu0 %3553 }
0x26be   :  { %v3559_v51 = vsel %vm194_vm3, %v3554_v14, 0 }
0x26bf   :  { %4947 = vmatpush3.bf16.msra.mxu0 %v3559_v51 }
0x26c0   :  { %4958 = vmatprep.subr.bf16.mxu0 %v5217_v60 }
0x26c4   :  { %v5159_v52 = vpop.eup %5158 }
0x26c5   :  { %v3551_v58 = vmul.f32 %v5159_v52, %v5157_v16  ;;  %v5072_v16 = vld [vmem:[%s6408_s18 + $0x70] sm:$0xff]  }
0x26c7   :  { %v3552_v47 = vpack.c.bf16 %v3551_v58, %v3551_v58 }
0x26c9   :  { %4949 = vmatmul.mubr.msk.bf16.vlgmr.msra.gmra.mrb[108].mxu0 %vm571_vm12, %v3552_v47 }
0x26ca   :  { %4966 = vmatprep.mubr.msk.bf16.mxu0 %vm5218_vm8, %v5217_v60  ;;  %4959 = vmatpush3.bf16.msra.mxu0 %v5062_v12 }
0x26cb   :  { %4960 = vmatprep.subr.bf16.mxu0 %v5217_v60 }
0x279c   :  { %v3595_v50 = vpop.f32.mrb[108].mxu0 }
0x279d   :  { %v3601_v53 = vpack.c.bf16 %v3595_v50, %v3595_v50  ;;  %v4950_v55 = vpop.f32.mrb[109].mxu0 }
0x279e   :  { %v3598_v11 = vpop.f32.mrb[110].mxu0 }
0x279f   :  { %v4951_v57 = vpop.f32.mrb[111].mxu0  ;;  %4955 = vmatmul.mubr.msk.bf16.vlgmr.msra.gmra.mrb[108].mxu1 %vm515_vm9, %v3601_v53 }
0x27a0   :  { %4986 = vmatprep.mubr.msk.bf16.mxu1 %vm5218_vm8, %v5217_v60  ;;  %4971 = vmatpush3.bf16.msra.mxu1 %v5066_v48 }
0x27a1   :  { %4972 = vmatprep.subr.bf16.mxu1 %v5217_v60 }
0x27a4   :  { %4973 = vmatpush3.bf16.msra.mxu1 %v5067_v6  ;;  %v5074_v6 = vld [vmem:[%s6415_s6] sm:$0xff]  }
0x27a5   :  { %4974 = vmatprep.subr.bf16.mxu1 %v5217_v60 }
0x27a8   :  { %4975 = vmatpush3.bf16.msra.mxu1 %v5068_v19 }
0x27a9   :  { %4976 = vmatprep.subr.bf16.mxu1 %v5217_v60 }
0x27ac   :  { %4977 = vmatpush3.bf16.msra.mxu1 %v5069_v32 }
0x27ad   :  { %4978 = vmatprep.subr.bf16.mxu1 %v5217_v60 }
0x27b0   :  { %4979 = vmatpush3.bf16.msra.mxu1 %v5070_v39 }
0x27b1   :  { %4980 = vmatprep.subr.bf16.mxu1 %v5217_v60 }
0x27b4   :  { %4981 = vmatpush3.bf16.msra.mxu1 %v5071_v40 }
0x27b5   :  { %4982 = vmatprep.subr.bf16.mxu1 %v5217_v60 }
0x27b8   :  { %4983 = vmatpush3.bf16.msra.mxu1 %v5072_v16 }
0x27b9   :  { %4984 = vmatprep.subr.bf16.mxu1 %v5217_v60 }
0x27bc   :  { %4985 = vmatpush3.bf16.msra.mxu1 %v5073_v41  ;;  %v5078_v41 = vld [vmem:[%s6416_s22] sm:$0xff]  }
0x2872   :  { %v3639_v62 = vpop.f32.mrb[108].mxu1 }
0x2873   :  { %v3645_v38 = vadd.f32 %v3639_v62, %v3488_v42  ;;  %v4956_v63 = vpop.f32.mrb[109].mxu1  ;;  %v4381_v62 = vld [vmem:[%s6412_s29 + $0x1] ss:$0 sm:$0xff] }
0x2874   :  { %v3642_v1 = vpop.f32.mrb[110].mxu1 }
0x2875   :  { %v3653_v0 = vadd.f32 %v4344_v23, %v3645_v38  ;;  %v4957_v31 = vpop.f32.mrb[111].mxu1 }
0x2877   :  { %v3655_v37 = vadd.f32 %v3653_v0, %v5912_v18  ;;  %v5063_v18 = vld [vmem:[%s6347_s16 + $0x28] sm:$0xff]  }
0x2878   :  { %4961 = vmatpush3.bf16.msra.mxu0 %v5063_v18 }
0x2879   :  { %v3663_v3 = vsel %vm214_vm7, %v3655_v37, 0.0  ;;  %4962 = vmatprep.subr.bf16.mxu0 %v5217_v60 }
0x287a   :  { %3664 = vadd.xlane.f32.xlu1 %v3663_v3 }
0x287c   :  { %4963 = vmatpush3.bf16.msra.mxu0 %v5064_v21 }
0x287d   :  { %4964 = vmatprep.subr.bf16.mxu0 %v5217_v60 }
0x287e   :  { %3673 = vadd.xlane.f32.xlu1 %v3672_v4 }
0x2880   :  { %4965 = vmatpush3.bf16.msra.mxu0 %v5065_v30 }
0x2881   :  { %4990 = vmatprep.subr.bf16.mxu0 %v5217_v60 }
0x2907   :  { %v3665_v5 = vpop.xlane.xlu1 %3664 }
0x2908   :  { %v3667_v7 = vmul.f32 0.015625, %v3665_v5 }
0x290a   :  { %v3669_v34 = vsub.f32 %v3655_v37, %v3667_v7 }
0x290b   :  { %v3674_v56 = vpop.xlane.xlu1 %3673 }
0x290c   :  { %v3671_v9 = vmul.f32 %v3669_v34, %v3669_v34  ;;  %v3678_v15 = vmul.f32 0.015625, %v3674_v56  ;;  %v5075_v56 = vld [vmem:[%s6415_s6 + $0x8] sm:$0xff]  }
0x290e   :  { %v3675_v10 = vsel %vm214_vm7, %v3671_v9, 0.0  ;;  %v3680_v35 = vadd.f32 1e-12, %v3678_v15  ;;  %v5076_v15 = vld [vmem:[%s6415_s6 + $0x10] sm:$0xff]  }
0x290f   :  { %3676 = vadd.xlane.f32.xlu1 %v3675_v10 }
0x2910   :  { %5160 = vrsqrt.f32 %v3680_v35  ;;  %v5077_v35 = vld [vmem:[%s6415_s6 + $0x18] sm:$0xff]  }
0x291a   :  { %v5161_v22 = vpop.eup %5160 }
0x291b   :  { %v3684_v23 = vmul.f32 %v5161_v22, %v3668_v2 }
0x291d   :  { %v3692_v61 = vmul.f32 %v4347_v44, %v3684_v23 }
0x291f   :  { %v3700_v28 = vadd.f32 %v4348_v59, %v3692_v61  ;;  %v4392_v61 = vld [vmem:[%s6413_s7 + $0x1] ss:$0 sm:$0xff] }
0x299c   :  { %v3677_v17 = vpop.xlane.xlu1 %3676 }
0x299d   :  { %v3679_v20 = vmul.f32 0.015625, %v3677_v17 }
0x299f   :  { %v3681_v25 = vadd.f32 1e-12, %v3679_v20 }
0x29a1   :  { %5162 = vrsqrt.f32 %v3681_v25 }
0x29ab   :  { %v5163_v24 = vpop.eup %5162 }
0x29ac   :  { %v3685_v26 = vmul.f32 %v5163_v24, %v3669_v34 }
0x29ae   :  { %v3693_v27 = vmul.f32 %v4347_v44, %v3685_v26 }
0x29b0   :  { %v3701_v29 = vadd.f32 %v4348_v59, %v3693_v27  ;;  %v4393_v59 = vld [vmem:[%s6414_s17 + $0x1] ss:$0 sm:$0xff] }
0x29b2   :  { %v3702_v33 = vpack.c.bf16 %v3701_v29, %v3700_v28 }
0x29b4   :  { %4967 = vmatmul.mubr.msk.bf16.vlgmr.msra.gmra.mrb[112].mxu0 %vm214_vm7, %v3702_v33 }
0x29b5   :  { %4998 = vmatprep.mubr.msk.bf16.mxu0 %vm5218_vm8, %v5217_v60  ;;  %4991 = vmatpush3.bf16.msra.mxu0 %v5074_v6 }
0x29b6   :  { %4992 = vmatprep.subr.bf16.mxu0 %v5217_v60 }
0x29b9   :  { %4993 = vmatpush3.bf16.msra.mxu0 %v5075_v56 }
0x29ba   :  { %4994 = vmatprep.subr.bf16.mxu0 %v5217_v60 }
0x29bd   :  { %4995 = vmatpush3.bf16.msra.mxu0 %v5076_v15 }
0x29be   :  { %4996 = vmatprep.subr.bf16.mxu0 %v5217_v60 }
0x29c1   :  { %4997 = vmatpush3.bf16.msra.mxu0 %v5077_v35 }
0x29c2   :  { %5002 = vmatprep.subr.bf16.mxu0 %v5217_v60 }
0x2a87   :  { %v3781_v42 = vpop.f32.mrb[112].mxu0 }
0x2a88   :  { %v3782_v45 = vadd.f32 %v4358_v13, %v3781_v42  ;;  %v4968_v8 = vpop.f32.mrb[113].mxu0 }
0x2a89   :  { %v3784_v46 = vpop.f32.mrb[114].mxu0 }
0x2a8a   :  { %v3790_v49 = vmul.f32 0.70710677, %v3782_v45  ;;  %v3785_v14 = vadd.f32 %v4358_v13, %v3784_v46  ;;  %v4969_v51 = vpop.f32.mrb[115].mxu0  ;;  %v3788_v53 = vmul.f32 0.5, %v3782_v45  ;;  %v5079_v13 = vld [vmem:[%s6416_s22 + $0x8] sm:$0xff]  }
0x2a8c   :  { %5164 = verf.f32 %v3790_v49  ;;  %v3791_v52 = vmul.f32 0.70710677, %v3785_v14  ;;  %v3789_v55 = vmul.f32 0.5, %v3785_v14 }
0x2a8e   :  { %5166 = verf.f32 %v3791_v52 }
0x2a96   :  { %v5165_v58 = vpop.eup %5164 }
0x2a97   :  { %v3794_v47 = vadd.f32 1.0, %v5165_v58 }
0x2a98   :  { %v5167_v50 = vpop.eup %5166 }
0x2a99   :  { %v3795_v11 = vadd.f32 1.0, %v5167_v50  ;;  %v3796_v57 = vmul.f32 %v3794_v47, %v3788_v53 }
0x2a9b   :  { %v3797_v36 = vmul.f32 %v3795_v11, %v3789_v55 }
0x2a9d   :  { %v3798_v54 = vpack.c.bf16 %v3797_v36, %v3796_v57 }
0x2a9f   :  { %4987 = vmatmul.mubr.bf16.vlgmr.msra.gmra.mrb[112].mxu1 %v3798_v54 }
0x2b72   :  { %v3906_v38 = vpop.f32.mrb[112].mxu1 }
0x2b73   :  { %v3907_v63 = vadd.f32 %v4381_v62, %v3906_v38  ;;  %v4988_v1 = vpop.f32.mrb[113].mxu1 }
0x2b74   :  { %v3909_v2 = vpop.f32.mrb[114].mxu1 }
0x2b75   :  { %v3910_v0 = vadd.f32 %v4381_v62, %v3909_v2  ;;  %v4989_v31 = vpop.f32.mrb[115].mxu1  ;;  %v3913_v37 = vadd.f32 %v3907_v63, %v3700_v28 }
0x2b77   :  { %v3919_v3 = vsel %vm214_vm7, %v3913_v37, 0.0  ;;  %v3914_v43 = vadd.f32 %v3910_v0, %v3701_v29 }
0x2b78   :  { %3920 = vadd.xlane.f32.xlu0 %v3919_v3 }
0x2b79   :  { %v3922_v4 = vsel %vm214_vm7, %v3914_v43, 0.0 }
0x2b7a   :  { %3923 = vadd.xlane.f32.xlu1 %v3922_v4 }
0x2c05   :  { %v3921_v5 = vpop.xlane.xlu0 %3920 }
0x2c06   :  { %v3925_v7 = vmul.f32 0.015625, %v3921_v5 }
0x2c07   :  { %v3924_v34 = vpop.xlane.xlu1 %3923 }
0x2c08   :  { %v3926_v9 = vmul.f32 0.015625, %v3924_v34  ;;  %v3927_v10 = vsub.f32 %v3913_v37, %v3925_v7  ;;  %v4402_v37 = vld [vmem:[%s6417_s14] ss:$0 sm:$0xff] }
0x2c0a   :  { %v3928_v12 = vsub.f32 %v3914_v43, %v3926_v9  ;;  %v3929_v30 = vmul.f32 %v3927_v10, %v3927_v10  ;;  %v4403_v43 = vld [vmem:[%s6418_s12] ss:$0 sm:$0xff] }
0x2c0c   :  { %v3930_v18 = vmul.f32 %v3928_v12, %v3928_v12  ;;  %v3931_v48 = vsel %vm214_vm7, %v3929_v30, 0.0 }
0x2c0e   :  { %v3934_v21 = vsel %vm214_vm7, %v3930_v18, 0.0 }
0x2c0f   :  { %3935 = vadd.xlane.f32.xlu1 %v3934_v21 }
0x2c13   :  { %3932 = vadd.xlane.f32.xlu1 %v3931_v48 }
0x2c9c   :  { %v3936_v17 = vpop.xlane.xlu1 %3935 }
0x2c9d   :  { %v3938_v20 = vmul.f32 0.015625, %v3936_v17 }
0x2c9f   :  { %v3940_v25 = vadd.f32 1e-12, %v3938_v20 }
0x2ca0   :  { %v3933_v22 = vpop.xlane.xlu1 %3932 }
0x2ca1   :  { %5168 = vrsqrt.f32 %v3940_v25  ;;  %v3937_v23 = vmul.f32 0.015625, %v3933_v22 }
0x2ca3   :  { %v3939_v44 = vadd.f32 1e-12, %v3937_v23 }
0x2ca5   :  { %5170 = vrsqrt.f32 %v3939_v44 }
0x2cab   :  { %v5169_v24 = vpop.eup %5168 }
0x2cac   :  { %v3944_v26 = vmul.f32 %v5169_v24, %v3928_v12 }
0x2cae   :  { %v3952_v27 = vmul.f32 %v4392_v61, %v3944_v26 }
0x2caf   :  { %v5171_v28 = vpop.eup %5170 }
0x2cb0   :  { %v3960_v29 = vadd.f32 %v4393_v59, %v3952_v27  ;;  %v3943_v33 = vmul.f32 %v5171_v28, %v3927_v10 }
0x2cb2   :  { %v3951_v19 = vmul.f32 %v4392_v61, %v3943_v33  ;;  %v3962_v39 = vrot.slane %v3960_v29, 7 }
0x2cb4   :  { %v3959_v32 = vadd.f32 %v4393_v59, %v3951_v19 }
0x2cb6   :  { %v3964_v40 = vsel %vm188_vm0, %v3959_v32, %v3962_v39 }
0x2cb7   :  { %v3965_v16 = vpack.c.bf16 %v3964_v40, %v3964_v40 }
0x2cb9   :  { %4999 = vmatmul.mubr.msk.bf16.vlgmr.msra.gmra.mrb[116].mxu0 %vm214_vm7, %v3965_v16 }
0x2cba   :  { %5006 = vmatprep.mubr.msk.bf16.mxu0 %vm5218_vm8, %v5217_v60  ;;  %5003 = vmatpush3.bf16.msra.mxu0 %v5078_v41 }
0x2cbb   :  { %5004 = vmatprep.subr.bf16.mxu0 %v5217_v60 }
0x2cbe   :  { %5005 = vmatpush3.bf16.msra.mxu0 %v5079_v13 }
0x2d8c   :  { %v4035_v42 = vpop.f32.mrb[116].mxu0 }
0x2d8d   :  { %v4042_v45 = vmul.f32 0.70710677, %v4035_v42  ;;  %v5000_v8 = vpop.f32.mrb[117].mxu0  ;;  %v4041_v51 = vmul.f32 0.5, %v4035_v42 }
0x2d8e   :  { %v4038_v46 = vpop.f32.mrb[118].mxu0 }
0x2d8f   :  { %5172 = verf.f32 %v4042_v45  ;;  %v5001_v49 = vpop.f32.mrb[119].mxu0 }
0x2d99   :  { %v5173_v14 = vpop.eup %5172 }
0x2d9a   :  { %v4044_v52 = vadd.f32 1.0, %v5173_v14 }
0x2d9c   :  { %v4045_v58 = vmul.f32 %v4044_v52, %v4041_v51 }
0x2d9e   :  { %v4046_v47 = vpack.c.bf16 %v4045_v58, %v4045_v58 }
0x2da0   :  { %5007 = vmatmul.mubr.msk.bf16.vlgmr.msra.gmra.mrb[120].mxu0 %vm4063_vm14, %v4046_v47 }
0x2e73   :  { %v4101_v60 = vpop.f32.mrb[120].mxu0 }
0x2e74   :  { %v4107_v50 = vadd.f32 %v4101_v60, %v4035_v42  ;;  %v5008_v53 = vpop.f32.mrb[121].mxu0 }
0x2e75   :  { %v4104_v55 = vpop.f32.mrb[122].mxu0 }
0x2e76   :  { %v5009_v11 = vpop.f32.mrb[123].mxu0  ;;  %v4111_v57 = vsel %vm4110_vm15, %v4107_v50, 0.0 }
0x2e77   :  { %4112 = vadd.xlane.f32.xlu1 %v4111_v57 }
0x2f04   :  { %v4113_v36 = vpop.xlane.xlu1 %4112 }
0x2f05   :  { %v4115_v54 = vmul.f32 0.03125, %v4113_v36 }
0x2f07   :  { %v4116_v62 = vsub.f32 %v4107_v50, %v4115_v54 }
0x2f09   :  { %v4117_v38 = vmul.f32 %v4116_v62, %v4116_v62 }
0x2f0b   :  { %v4118_v63 = vsel %vm4110_vm15, %v4117_v38, 0.0 }
0x2f0c   :  { %4119 = vadd.xlane.f32.xlu1 %v4118_v63 }
0x2f99   :  { %v4120_v1 = vpop.xlane.xlu1 %4119 }
0x2f9a   :  { %v4121_v2 = vmul.f32 0.03125, %v4120_v1 }
0x2f9c   :  { %v4122_v0 = vadd.f32 1e-05, %v4121_v2 }
0x2f9e   :  { %5174 = vrsqrt.f32 %v4122_v0 }
0x2fa8   :  { %v5175_v31 = vpop.eup %5174 }
0x2fa9   :  { %v4124_v3 = vmul.f32 %v5175_v31, %v4116_v62 }
0x2fab   :  { %v4131_v4 = vmul.f32 %v4402_v37, %v4124_v3 }
0x2fad   :  { %v4138_v5 = vadd.f32 %v4403_v43, %v4131_v4 }
0x2faf   :  { %v4139_v7 = vmul.f32 %v4138_v5, %v4138_v5 }
0x2fb1   :  { %v4140_v34 = vsel %vm4110_vm15, %v4139_v7, 0.0 }
0x2fb2   :  { %4141 = vadd.xlane.f32.xlu1 %v4140_v34 }
0x303f   :  { %v4142_v9 = vpop.xlane.xlu1 %4141 }
0x3040   :  { %v4143_v10 = vadd.f32 1e-12, %v4142_v9 }
0x3042   :  { %5176 = vrsqrt.f32 %v4143_v10 }
0x304c   :  { %v5177_v12 = vpop.eup %5176 }
0x304d   :  { %v4145_v18 = vmul.f32 %v5177_v12, %v4138_v5 }
0x304f   :  { %v4146_v21 = vsel %vm4063_vm14, %v4145_v18, 0.0 }
0x3050   :  { %4147 = vst [vmem:[#allocation5] sm:$0x3] %v4146_v21 }
0x3051   :  { %5201 = shalt.err (!%p5198_p9)
}
0x3052   :  { %s6419_s18 = sld [smem:[#allocation30_spill]] }
0x3058   :  { %s5202_s5 = scalar_lea.hbm %s6419_s18, 32 }
0x3059   :  { %p5203_p10 = scmp.ne.s32.totalorder %s6419_s18, %s5202_s5  ;;  %p5206_p11 = scmp.lt.u32.totalorder %s5202_s5, %s6419_s18 }
0x305b   :  { %p5208_p12 = pnand %p5206_p11, %p5203_p10 }
0x305d   :  { %5211 = shalt.err (!%p5208_p12)
}
0x305e   :  { %4157 = dma.vmem_to_hbm [thread:$0]  %s4155_s13, 32, %s6419_s18, [#allocation3]  }
0x305f   :  { %5214 = dma.done.wait [#allocation3], 32  }
0x3060   :  { %5215 = vsyncadd [#allocation3], 4294967264 }
0x3061   :  { %4161 = vsyncpa [#allocation3], 1 }
0x3062   :  { %4162 = vsyncpa [#allocation4], 1 }

</bundles_post_ra>
